<compile_context>
chip_gen: v7x
topology: tpu7x:2x2x1
jax: 0.10.0
libtpu: 0.0.40
codegen_flags: <defaults>
</compile_context>

<pallas_src>
import functools

import jax
import jax.numpy as jnp
from jax.experimental import pallas as pl
from jax.experimental.pallas import tpu as pltpu


def _round_up(a, b):
    return (a + b - 1) // b * b


# ---------------------------------------------------------------------------
# Pallas kernel: single-shot matmul (full-K block) + per-channel shift + LeakyReLU
# ---------------------------------------------------------------------------
def _fused_matmul_kernel(x_ref, w_ref, b_ref, o_ref, *, neg_slope):
    acc = jnp.dot(x_ref[...], w_ref[...], preferred_element_type=jnp.float32)
    y = acc + b_ref[...]                                  # f32 epilogue
    if neg_slope is not None:
        y = jnp.where(y >= 0, y, neg_slope * y)           # LeakyReLU(0.2)
    o_ref[...] = y.astype(o_ref.dtype)


def _tile_m(M):
    # Prefer >= 2 blocks along M (megacore / v7x dual-TC), rows a multiple of 8.
    for cand in (512, 256, 128, 64, 32, 16, 8):
        if M % cand == 0 and M // cand >= 2:
            return cand
    return M


def fused_matmul(patches, w_flat, shift, neg_slope, out_dtype):
    """(M, K) bf16 @ (K, Cout) bf16 + shift (+ LeakyReLU); f32 MXU accumulate.

    Requires M % 8 == 0 and K, Cout multiples of 128 (guaranteed by init-time
    channel padding), so no per-call padding or output slicing is needed.
    """
    M, K = patches.shape
    K2, Cout = w_flat.shape
    assert K == K2 and M % 8 == 0 and K % 128 == 0 and Cout % 128 == 0

    tm = _tile_m(M)
    tn = 128
    grid = (M // tm, Cout // tn)

    out_bytes = jnp.dtype(out_dtype).itemsize
    cost = pl.CostEstimate(
        flops=2 * M * K * Cout,
        transcendentals=0,
        bytes_accessed=(M * K + K * Cout) * 2 + Cout * 4 + M * Cout * out_bytes,
    )
    return pl.pallas_call(
        functools.partial(_fused_matmul_kernel, neg_slope=neg_slope),
        out_shape=jax.ShapeDtypeStruct((M, Cout), out_dtype),
        grid_spec=pltpu.PrefetchScalarGridSpec(
            num_scalar_prefetch=0,
            grid=grid,
            in_specs=[
                pl.BlockSpec((tm, K), lambda i, j: (i, 0)),    # patches, full K
                pl.BlockSpec((K, tn), lambda i, j: (0, j)),    # folded weights
                pl.BlockSpec((1, tn), lambda i, j: (0, j)),    # shift (f32)
            ],
            out_specs=pl.BlockSpec((tm, tn), lambda i, j: (i, j)),
        ),
        compiler_params=pltpu.CompilerParams(
            dimension_semantics=("parallel", "parallel")),
        cost_estimate=cost,
    )(patches, w_flat, shift)


# ---------------------------------------------------------------------------
# Conv2d(k=3, pad=1, stride in {1,2}) via im2col (bf16 glue) + fused matmul
# ---------------------------------------------------------------------------
def _im2col(x, stride, k_pad):
    # x: (N, H, W, C) NHWC bf16.  Column order = [(dy,dx) major, channel minor],
    # matching the init-time weight reshape.  If k_pad > 9*C, zero filler
    # columns ride the same concat (the matching weight rows are zero), so no
    # separate padding pass over the patches is ever needed.
    N, H, W, C = x.shape
    xp = jnp.pad(x, ((0, 0), (1, 1), (1, 1), (0, 0)))
    Ho = (H + 2 - 3) // stride + 1
    Wo = (W + 2 - 3) // stride + 1
    cols = [xp[:, dy:dy + stride * (Ho - 1) + 1:stride,
               dx:dx + stride * (Wo - 1) + 1:stride, :]
            for dy in range(3) for dx in range(3)]
    if k_pad > 9 * C:
        cols.append(jnp.zeros((N, Ho, Wo, k_pad - 9 * C), x.dtype))
    patches = jnp.concatenate(cols, axis=-1)               # (N, Ho, Wo, k_pad)
    return patches.reshape(N * Ho * Wo, k_pad), (N, Ho, Wo)


_PALLAS_MIN_M = 16   # below this the pallas_call fixed cost dominates -> XLA dot


def _epilogue(y, shift, neg_slope, out_dtype):
    y = y + shift
    if neg_slope is not None:
        y = jnp.where(y >= 0, y, neg_slope * y)
    return y.astype(out_dtype)


def conv3x3_fused(x, layer, out_dtype):
    w = layer["w"]
    patches, (N, Ho, Wo) = _im2col(x, layer["stride"], w.shape[0])
    M = patches.shape[0]
    Cout = w.shape[1]
    if M >= _PALLAS_MIN_M and M % 8 == 0 and Cout % 128 == 0 and w.shape[0] % 128 == 0:
        out = fused_matmul(patches, w, layer["shift"], layer["neg_slope"], out_dtype)
    else:
        # Tiny-M tail (spatial <= 2x2): MXU row utilization < 1% and the kernel
        # launch overhead dominates, so a plain XLA dot is as fast or faster.
        y = jnp.dot(patches, w, preferred_element_type=jnp.float32)
        out = _epilogue(y, layer["shift"], layer["neg_slope"], out_dtype)
    return out.reshape(N, Ho, Wo, Cout)


# ---------------------------------------------------------------------------
# Parameter construction (deterministic, in-script) mirroring __init__ shapes
# ---------------------------------------------------------------------------
def init_discriminator_params(key, in_channels, eps=1e-5):
    """Eval-mode BN folded; all tile-alignment padding done ONCE here.

    * Cout of every non-final layer is rounded up to a multiple of 128; the
      padded (zero) channels flow through the network (their shift is 0, so
      they stay exactly 0 after LeakyReLU and contribute nothing downstream).
    * K (= 9 * padded Cin) is rounded up to a multiple of 128 with zero rows.
    * BN scale / conv bias folded:  w_folded = w * s,  shift = (b - mean)*s + beta.
    Weights stored in bf16 (MXU native); shifts stay f32 for the f32 epilogue.
    """
    def conv_params(k, cin, cin_eff, cout, cout_pad, stride, use_bn, use_act):
        k1, k2, k3, k4, k5, k6 = jax.random.split(k, 6)
        w = jax.random.normal(k1, (3, 3, cin, cout), jnp.float32) / jnp.sqrt(9.0 * cin)
        b = 0.05 * jax.random.normal(k2, (cout,), jnp.float32)
        if use_bn:
            gamma = 1.0 + 0.1 * jax.random.normal(k3, (cout,), jnp.float32)
            beta = 0.1 * jax.random.normal(k4, (cout,), jnp.float32)
            mean = 0.1 * jax.random.normal(k5, (cout,), jnp.float32)
            var = 1.0 + 0.1 * jax.random.uniform(k6, (cout,), jnp.float32)
            s = gamma / jnp.sqrt(var + eps)
            shift = (b - mean) * s + beta          # BN folded around conv bias
        else:
            s = jnp.ones((cout,), jnp.float32)
            shift = b
        # Fold the per-channel scale into the weights and embed into the padded
        # (cin_eff, cout_pad) channel space.  Row order after reshape is
        # [(dy,dx) major, cin minor], matching _im2col.
        w_emb = jnp.zeros((3, 3, cin_eff, cout_pad), jnp.float32)
        w_emb = w_emb.at[:, :, :cin, :cout].set(w * s[None, None, None, :])
        k_real = 9 * cin_eff
        k_pad = _round_up(k_real, 128)
        w_flat = jnp.zeros((k_pad, cout_pad), jnp.float32)
        w_flat = w_flat.at[:k_real, :].set(w_emb.reshape(k_real, cout_pad))
        shift_pad = jnp.zeros((1, cout_pad), jnp.float32).at[0, :cout].set(shift)
        return {
            "w": w_flat.astype(jnp.bfloat16),
            "shift": shift_pad,
            "stride": stride,
            "neg_slope": 0.2 if use_act else None,
        }

    params = []
    cin, cin_eff = in_channels, in_channels
    for i, cout in enumerate([32, 64, 128, 256, 512, 1024]):
        cout_pad = _round_up(cout, 128)
        key, ka, kb = jax.random.split(key, 3)
        # conv s=1 (BN only if not first block), LeakyReLU(0.2)
        params.append(conv_params(ka, cin, cin_eff, cout, cout_pad, 1,
                                  use_bn=(i != 0), use_act=True))
        # conv s=2, BN, LeakyReLU(0.2)
        params.append(conv_params(kb, cout, cout_pad, cout, cout_pad, 2,
                                  use_bn=True, use_act=True))
        cin, cin_eff = cout, cout_pad
    key, kf = jax.random.split(key)
    # Final Conv2d(1024, 1, 3, 1, 1): no BN, no activation, no channel padding.
    params.append(conv_params(kf, cin, cin_eff, 1, 1, 1, use_bn=False, use_act=False))
    return params


def discriminator_forward(img_nchw, params):
    # NCHW (PyTorch) -> NHWC internal (channels on the 128-lane axis) -> NCHW out.
    x = jnp.transpose(img_nchw, (0, 2, 3, 1)).astype(jnp.bfloat16)
    last = len(params) - 1
    for i, layer in enumerate(params):
        x = conv3x3_fused(x, layer, jnp.float32 if i == last else jnp.bfloat16)
    return jnp.transpose(x, (0, 3, 1, 2))


if __name__ == "__main__":
    key = jax.random.PRNGKey(0)
    kimg, kparam = jax.random.split(key)

    N, C, H, W = 2, 3, 32, 32           # input_shape = (3, 32, 32), batch 2
    img = jax.random.normal(kimg, (N, C, H, W), jnp.float32)
    params = init_discriminator_params(kparam, C)

    fwd = jax.jit(lambda x: discriminator_forward(x, params))
    out = fwd(img)
    jax.block_until_ready(out)

    assert out.shape == (N, 1, 1, 1), out.shape
    assert jnp.all(jnp.isfinite(out))
    print("KERNEL_OK")
</pallas_src>

<mosaic_0001>
module attributes {stable_mosaic.version = 11 : i64} {
  func.func @_fused_matmul_kernel(%arg0: i32, %arg1: i32, %arg2: memref<512x128xbf16, #tpu.memory_space<vmem>>, %arg3: memref<128x128xbf16, #tpu.memory_space<vmem>>, %arg4: memref<1x128xf32, #tpu.memory_space<vmem>>, %arg5: memref<512x128xbf16, #tpu.memory_space<vmem>>) attributes {dimension_semantics = [#tpu.dimension_semantics<parallel>, #tpu.dimension_semantics<parallel>], iteration_bounds = array<i64: 4, 1>, scalar_prefetch = 0 : i64, scratch_operands = 0 : i64, tpu.core_type = #tpu.core_type<tc>, window_params = [{transform_indices = @transform_0, window_bounds = array<i64: 512, 128>}, {transform_indices = @transform_1, window_bounds = array<i64: 128, 128>}, {transform_indices = @transform_2, window_bounds = array<i64: 1, 128>}, {transform_indices = @transform_3, window_bounds = array<i64: 512, 128>}]} {
    %c0 = arith.constant 0 : index
    %c0_0 = arith.constant 0 : index
    %0 = vector.load %arg2[%c0, %c0_0] : memref<512x128xbf16, #tpu.memory_space<vmem>>, vector<512x128xbf16>
    %c0_1 = arith.constant 0 : index
    %c0_2 = arith.constant 0 : index
    %1 = vector.load %arg3[%c0_1, %c0_2] : memref<128x128xbf16, #tpu.memory_space<vmem>>, vector<128x128xbf16>
    %cst = arith.constant dense<0.000000e+00> : vector<512x128xf32>
    %2 = tpu.matmul %0, %1, %cst {dimension_numbers = #tpu.dot_dimension_numbers<[1], [0], [0], [1], [0, 0, 1, 1], [], []>} : vector<512x128xbf16>, vector<128x128xbf16>, vector<512x128xf32> -> vector<512x128xf32>
    %c0_3 = arith.constant 0 : index
    %c0_4 = arith.constant 0 : index
    %3 = vector.load %arg4[%c0_3, %c0_4] : memref<1x128xf32, #tpu.memory_space<vmem>>, vector<1x128xf32>
    %4 = vector.broadcast %3 : vector<1x128xf32> to vector<512x128xf32>
    %5 = arith.addf %2, %4 : vector<512x128xf32>
    %cst_5 = arith.constant 0.000000e+00 : f32
    %6 = vector.broadcast %cst_5 : f32 to vector<512x128xf32>
    %7 = arith.cmpf oge, %5, %6 : vector<512x128xf32>
    %cst_6 = arith.constant 2.000000e-01 : f32
    %8 = vector.broadcast %cst_6 : f32 to vector<512x128xf32>
    %9 = arith.mulf %8, %5 : vector<512x128xf32>
    %10 = arith.select %7, %5, %9 : vector<512x128xi1>, vector<512x128xf32>
    %11 = arith.truncf %10 : vector<512x128xf32> to vector<512x128xbf16>
    %c0_7 = arith.constant 0 : index
    %c0_8 = arith.constant 0 : index
    %12 = vector.load %arg5[%c0_7, %c0_8] : memref<512x128xbf16, #tpu.memory_space<vmem>>, vector<512x128xbf16>
    tpu.vector_store %arg5[%c0_7, %c0_8], %11 {strides = array<i32>} : memref<512x128xbf16, #tpu.memory_space<vmem>>, vector<512x128xbf16>,
    return
  }
  func.func @transform_0(%arg0: i32, %arg1: i32) -> (i32, i32) {
    %c0_i32 = arith.constant 0 : i32
    %c0_i32_0 = arith.constant 0 : i32
    return %arg0, %c0_i32 : i32, i32
  }
  func.func @transform_1(%arg0: i32, %arg1: i32) -> (i32, i32) {
    %c0_i32 = arith.constant 0 : i32
    %c0_i32_0 = arith.constant 0 : i32
    return %c0_i32, %arg1 : i32, i32
  }
  func.func @transform_2(%arg0: i32, %arg1: i32) -> (i32, i32) {
    %c0_i32 = arith.constant 0 : i32
    %c0_i32_0 = arith.constant 0 : i32
    return %c0_i32, %arg1 : i32, i32
  }
  func.func @transform_3(%arg0: i32, %arg1: i32) -> (i32, i32) {
    %c0_i32 = arith.constant 0 : i32
    return %arg0, %arg1 : i32, i32
  }
}

module attributes {stable_mosaic.version = 11 : i64} {
  func.func @_fused_matmul_kernel(%arg0: i32, %arg1: i32, %arg2: memref<256x1152xbf16, #tpu.memory_space<vmem>>, %arg3: memref<1152x128xbf16, #tpu.memory_space<vmem>>, %arg4: memref<1x128xf32, #tpu.memory_space<vmem>>, %arg5: memref<256x128xbf16, #tpu.memory_space<vmem>>) attributes {dimension_semantics = [#tpu.dimension_semantics<parallel>, #tpu.dimension_semantics<parallel>], iteration_bounds = array<i64: 2, 1>, scalar_prefetch = 0 : i64, scratch_operands = 0 : i64, tpu.core_type = #tpu.core_type<tc>, window_params = [{transform_indices = @transform_0, window_bounds = array<i64: 256, 1152>}, {transform_indices = @transform_1, window_bounds = array<i64: 1152, 128>}, {transform_indices = @transform_2, window_bounds = array<i64: 1, 128>}, {transform_indices = @transform_3, window_bounds = array<i64: 256, 128>}]} {
    %c0 = arith.constant 0 : index
    %c0_0 = arith.constant 0 : index
    %0 = vector.load %arg2[%c0, %c0_0] : memref<256x1152xbf16, #tpu.memory_space<vmem>>, vector<256x1152xbf16>
    %c0_1 = arith.constant 0 : index
    %c0_2 = arith.constant 0 : index
    %1 = vector.load %arg3[%c0_1, %c0_2] : memref<1152x128xbf16, #tpu.memory_space<vmem>>, vector<1152x128xbf16>
    %cst = arith.constant dense<0.000000e+00> : vector<256x128xf32>
    %2 = tpu.matmul %0, %1, %cst {dimension_numbers = #tpu.dot_dimension_numbers<[1], [0], [0], [1], [0, 0, 1, 1], [], []>} : vector<256x1152xbf16>, vector<1152x128xbf16>, vector<256x128xf32> -> vector<256x128xf32>
    %c0_3 = arith.constant 0 : index
    %c0_4 = arith.constant 0 : index
    %3 = vector.load %arg4[%c0_3, %c0_4] : memref<1x128xf32, #tpu.memory_space<vmem>>, vector<1x128xf32>
    %4 = vector.broadcast %3 : vector<1x128xf32> to vector<256x128xf32>
    %5 = arith.addf %2, %4 : vector<256x128xf32>
    %cst_5 = arith.constant 0.000000e+00 : f32
    %6 = vector.broadcast %cst_5 : f32 to vector<256x128xf32>
    %7 = arith.cmpf oge, %5, %6 : vector<256x128xf32>
    %cst_6 = arith.constant 2.000000e-01 : f32
    %8 = vector.broadcast %cst_6 : f32 to vector<256x128xf32>
    %9 = arith.mulf %8, %5 : vector<256x128xf32>
    %10 = arith.select %7, %5, %9 : vector<256x128xi1>, vector<256x128xf32>
    %11 = arith.truncf %10 : vector<256x128xf32> to vector<256x128xbf16>
    %c0_7 = arith.constant 0 : index
    %c0_8 = arith.constant 0 : index
    %12 = vector.load %arg5[%c0_7, %c0_8] : memref<256x128xbf16, #tpu.memory_space<vmem>>, vector<256x128xbf16>
    tpu.vector_store %arg5[%c0_7, %c0_8], %11 {strides = array<i32>} : memref<256x128xbf16, #tpu.memory_space<vmem>>, vector<256x128xbf16>,
    return
  }
  func.func @transform_0(%arg0: i32, %arg1: i32) -> (i32, i32) {
    %c0_i32 = arith.constant 0 : i32
    %c0_i32_0 = arith.constant 0 : i32
    return %arg0, %c0_i32 : i32, i32
  }
  func.func @transform_1(%arg0: i32, %arg1: i32) -> (i32, i32) {
    %c0_i32 = arith.constant 0 : i32
    %c0_i32_0 = arith.constant 0 : i32
    return %c0_i32, %arg1 : i32, i32
  }
  func.func @transform_2(%arg0: i32, %arg1: i32) -> (i32, i32) {
    %c0_i32 = arith.constant 0 : i32
    %c0_i32_0 = arith.constant 0 : i32
    return %c0_i32, %arg1 : i32, i32
  }
  func.func @transform_3(%arg0: i32, %arg1: i32) -> (i32, i32) {
    %c0_i32 = arith.constant 0 : i32
    return %arg0, %arg1 : i32, i32
  }
}

module attributes {stable_mosaic.version = 11 : i64} {
  func.func @_fused_matmul_kernel(%arg0: i32, %arg1: i32, %arg2: memref<64x1152xbf16, #tpu.memory_space<vmem>>, %arg3: memref<1152x128xbf16, #tpu.memory_space<vmem>>, %arg4: memref<1x128xf32, #tpu.memory_space<vmem>>, %arg5: memref<64x128xbf16, #tpu.memory_space<vmem>>) attributes {dimension_semantics = [#tpu.dimension_semantics<parallel>, #tpu.dimension_semantics<parallel>], iteration_bounds = array<i64: 2, 1>, scalar_prefetch = 0 : i64, scratch_operands = 0 : i64, tpu.core_type = #tpu.core_type<tc>, window_params = [{transform_indices = @transform_0, window_bounds = array<i64: 64, 1152>}, {transform_indices = @transform_1, window_bounds = array<i64: 1152, 128>}, {transform_indices = @transform_2, window_bounds = array<i64: 1, 128>}, {transform_indices = @transform_3, window_bounds = array<i64: 64, 128>}]} {
    %c0 = arith.constant 0 : index
    %c0_0 = arith.constant 0 : index
    %0 = vector.load %arg2[%c0, %c0_0] : memref<64x1152xbf16, #tpu.memory_space<vmem>>, vector<64x1152xbf16>
    %c0_1 = arith.constant 0 : index
    %c0_2 = arith.constant 0 : index
    %1 = vector.load %arg3[%c0_1, %c0_2] : memref<1152x128xbf16, #tpu.memory_space<vmem>>, vector<1152x128xbf16>
    %cst = arith.constant dense<0.000000e+00> : vector<64x128xf32>
    %2 = tpu.matmul %0, %1, %cst {dimension_numbers = #tpu.dot_dimension_numbers<[1], [0], [0], [1], [0, 0, 1, 1], [], []>} : vector<64x1152xbf16>, vector<1152x128xbf16>, vector<64x128xf32> -> vector<64x128xf32>
    %c0_3 = arith.constant 0 : index
    %c0_4 = arith.constant 0 : index
    %3 = vector.load %arg4[%c0_3, %c0_4] : memref<1x128xf32, #tpu.memory_space<vmem>>, vector<1x128xf32>
    %4 = vector.broadcast %3 : vector<1x128xf32> to vector<64x128xf32>
    %5 = arith.addf %2, %4 : vector<64x128xf32>
    %cst_5 = arith.constant 0.000000e+00 : f32
    %6 = vector.broadcast %cst_5 : f32 to vector<64x128xf32>
    %7 = arith.cmpf oge, %5, %6 : vector<64x128xf32>
    %cst_6 = arith.constant 2.000000e-01 : f32
    %8 = vector.broadcast %cst_6 : f32 to vector<64x128xf32>
    %9 = arith.mulf %8, %5 : vector<64x128xf32>
    %10 = arith.select %7, %5, %9 : vector<64x128xi1>, vector<64x128xf32>
    %11 = arith.truncf %10 : vector<64x128xf32> to vector<64x128xbf16>
    %c0_7 = arith.constant 0 : index
    %c0_8 = arith.constant 0 : index
    %12 = vector.load %arg5[%c0_7, %c0_8] : memref<64x128xbf16, #tpu.memory_space<vmem>>, vector<64x128xbf16>
    tpu.vector_store %arg5[%c0_7, %c0_8], %11 {strides = array<i32>} : memref<64x128xbf16, #tpu.memory_space<vmem>>, vector<64x128xbf16>,
    return
  }
  func.func @transform_0(%arg0: i32, %arg1: i32) -> (i32, i32) {
    %c0_i32 = arith.constant 0 : i32
    %c0_i32_0 = arith.constant 0 : i32
    return %arg0, %c0_i32 : i32, i32
  }
  func.func @transform_1(%arg0: i32, %arg1: i32) -> (i32, i32) {
    %c0_i32 = arith.constant 0 : i32
    %c0_i32_0 = arith.constant 0 : i32
    return %c0_i32, %arg1 : i32, i32
  }
  func.func @transform_2(%arg0: i32, %arg1: i32) -> (i32, i32) {
    %c0_i32 = arith.constant 0 : i32
    %c0_i32_0 = arith.constant 0 : i32
    return %c0_i32, %arg1 : i32, i32
  }
  func.func @transform_3(%arg0: i32, %arg1: i32) -> (i32, i32) {
    %c0_i32 = arith.constant 0 : i32
    return %arg0, %arg1 : i32, i32
  }
}

module attributes {stable_mosaic.version = 11 : i64} {
  func.func @_fused_matmul_kernel(%arg0: i32, %arg1: i32, %arg2: memref<16x1152xbf16, #tpu.memory_space<vmem>>, %arg3: memref<1152x128xbf16, #tpu.memory_space<vmem>>, %arg4: memref<1x128xf32, #tpu.memory_space<vmem>>, %arg5: memref<16x128xbf16, #tpu.memory_space<vmem>>) attributes {dimension_semantics = [#tpu.dimension_semantics<parallel>, #tpu.dimension_semantics<parallel>], iteration_bounds = array<i64: 2, 1>, scalar_prefetch = 0 : i64, scratch_operands = 0 : i64, tpu.core_type = #tpu.core_type<tc>, window_params = [{transform_indices = @transform_0, window_bounds = array<i64: 16, 1152>}, {transform_indices = @transform_1, window_bounds = array<i64: 1152, 128>}, {transform_indices = @transform_2, window_bounds = array<i64: 1, 128>}, {transform_indices = @transform_3, window_bounds = array<i64: 16, 128>}]} {
    %c0 = arith.constant 0 : index
    %c0_0 = arith.constant 0 : index
    %0 = vector.load %arg2[%c0, %c0_0] : memref<16x1152xbf16, #tpu.memory_space<vmem>>, vector<16x1152xbf16>
    %c0_1 = arith.constant 0 : index
    %c0_2 = arith.constant 0 : index
    %1 = vector.load %arg3[%c0_1, %c0_2] : memref<1152x128xbf16, #tpu.memory_space<vmem>>, vector<1152x128xbf16>
    %cst = arith.constant dense<0.000000e+00> : vector<16x128xf32>
    %2 = tpu.matmul %0, %1, %cst {dimension_numbers = #tpu.dot_dimension_numbers<[1], [0], [0], [1], [0, 0, 1, 1], [], []>} : vector<16x1152xbf16>, vector<1152x128xbf16>, vector<16x128xf32> -> vector<16x128xf32>
    %c0_3 = arith.constant 0 : index
    %c0_4 = arith.constant 0 : index
    %3 = vector.load %arg4[%c0_3, %c0_4] : memref<1x128xf32, #tpu.memory_space<vmem>>, vector<1x128xf32>
    %4 = vector.broadcast %3 : vector<1x128xf32> to vector<16x128xf32>
    %5 = arith.addf %2, %4 : vector<16x128xf32>
    %cst_5 = arith.constant 0.000000e+00 : f32
    %6 = vector.broadcast %cst_5 : f32 to vector<16x128xf32>
    %7 = arith.cmpf oge, %5, %6 : vector<16x128xf32>
    %cst_6 = arith.constant 2.000000e-01 : f32
    %8 = vector.broadcast %cst_6 : f32 to vector<16x128xf32>
    %9 = arith.mulf %8, %5 : vector<16x128xf32>
    %10 = arith.select %7, %5, %9 : vector<16x128xi1>, vector<16x128xf32>
    %11 = arith.truncf %10 : vector<16x128xf32> to vector<16x128xbf16>
    %c0_7 = arith.constant 0 : index
    %c0_8 = arith.constant 0 : index
    %12 = vector.load %arg5[%c0_7, %c0_8] : memref<16x128xbf16, #tpu.memory_space<vmem>>, vector<16x128xbf16>
    tpu.vector_store %arg5[%c0_7, %c0_8], %11 {strides = array<i32>} : memref<16x128xbf16, #tpu.memory_space<vmem>>, vector<16x128xbf16>,
    return
  }
  func.func @transform_0(%arg0: i32, %arg1: i32) -> (i32, i32) {
    %c0_i32 = arith.constant 0 : i32
    %c0_i32_0 = arith.constant 0 : i32
    return %arg0, %c0_i32 : i32, i32
  }
  func.func @transform_1(%arg0: i32, %arg1: i32) -> (i32, i32) {
    %c0_i32 = arith.constant 0 : i32
    %c0_i32_0 = arith.constant 0 : i32
    return %c0_i32, %arg1 : i32, i32
  }
  func.func @transform_2(%arg0: i32, %arg1: i32) -> (i32, i32) {
    %c0_i32 = arith.constant 0 : i32
    %c0_i32_0 = arith.constant 0 : i32
    return %c0_i32, %arg1 : i32, i32
  }
  func.func @transform_3(%arg0: i32, %arg1: i32) -> (i32, i32) {
    %c0_i32 = arith.constant 0 : i32
    return %arg0, %arg1 : i32, i32
  }
}

module attributes {stable_mosaic.version = 11 : i64} {
  func.func @_fused_matmul_kernel(%arg0: i32, %arg1: i32, %arg2: memref<16x1152xbf16, #tpu.memory_space<vmem>>, %arg3: memref<1152x128xbf16, #tpu.memory_space<vmem>>, %arg4: memref<1x128xf32, #tpu.memory_space<vmem>>, %arg5: memref<16x128xbf16, #tpu.memory_space<vmem>>) attributes {dimension_semantics = [#tpu.dimension_semantics<parallel>, #tpu.dimension_semantics<parallel>], iteration_bounds = array<i64: 2, 2>, scalar_prefetch = 0 : i64, scratch_operands = 0 : i64, tpu.core_type = #tpu.core_type<tc>, window_params = [{transform_indices = @transform_0, window_bounds = array<i64: 16, 1152>}, {transform_indices = @transform_1, window_bounds = array<i64: 1152, 128>}, {transform_indices = @transform_2, window_bounds = array<i64: 1, 128>}, {transform_indices = @transform_3, window_bounds = array<i64: 16, 128>}]} {
    %c0 = arith.constant 0 : index
    %c0_0 = arith.constant 0 : index
    %0 = vector.load %arg2[%c0, %c0_0] : memref<16x1152xbf16, #tpu.memory_space<vmem>>, vector<16x1152xbf16>
    %c0_1 = arith.constant 0 : index
    %c0_2 = arith.constant 0 : index
    %1 = vector.load %arg3[%c0_1, %c0_2] : memref<1152x128xbf16, #tpu.memory_space<vmem>>, vector<1152x128xbf16>
    %cst = arith.constant dense<0.000000e+00> : vector<16x128xf32>
    %2 = tpu.matmul %0, %1, %cst {dimension_numbers = #tpu.dot_dimension_numbers<[1], [0], [0], [1], [0, 0, 1, 1], [], []>} : vector<16x1152xbf16>, vector<1152x128xbf16>, vector<16x128xf32> -> vector<16x128xf32>
    %c0_3 = arith.constant 0 : index
    %c0_4 = arith.constant 0 : index
    %3 = vector.load %arg4[%c0_3, %c0_4] : memref<1x128xf32, #tpu.memory_space<vmem>>, vector<1x128xf32>
    %4 = vector.broadcast %3 : vector<1x128xf32> to vector<16x128xf32>
    %5 = arith.addf %2, %4 : vector<16x128xf32>
    %cst_5 = arith.constant 0.000000e+00 : f32
    %6 = vector.broadcast %cst_5 : f32 to vector<16x128xf32>
    %7 = arith.cmpf oge, %5, %6 : vector<16x128xf32>
    %cst_6 = arith.constant 2.000000e-01 : f32
    %8 = vector.broadcast %cst_6 : f32 to vector<16x128xf32>
    %9 = arith.mulf %8, %5 : vector<16x128xf32>
    %10 = arith.select %7, %5, %9 : vector<16x128xi1>, vector<16x128xf32>
    %11 = arith.truncf %10 : vector<16x128xf32> to vector<16x128xbf16>
    %c0_7 = arith.constant 0 : index
    %c0_8 = arith.constant 0 : index
    %12 = vector.load %arg5[%c0_7, %c0_8] : memref<16x128xbf16, #tpu.memory_space<vmem>>, vector<16x128xbf16>
    tpu.vector_store %arg5[%c0_7, %c0_8], %11 {strides = array<i32>} : memref<16x128xbf16, #tpu.memory_space<vmem>>, vector<16x128xbf16>,
    return
  }
  func.func @transform_0(%arg0: i32, %arg1: i32) -> (i32, i32) {
    %c0_i32 = arith.constant 0 : i32
    %c0_i32_0 = arith.constant 0 : i32
    return %arg0, %c0_i32 : i32, i32
  }
  func.func @transform_1(%arg0: i32, %arg1: i32) -> (i32, i32) {
    %c0_i32 = arith.constant 0 : i32
    %c0_i32_0 = arith.constant 0 : i32
    return %c0_i32, %arg1 : i32, i32
  }
  func.func @transform_2(%arg0: i32, %arg1: i32) -> (i32, i32) {
    %c0_i32 = arith.constant 0 : i32
    %c0_i32_0 = arith.constant 0 : i32
    return %c0_i32, %arg1 : i32, i32
  }
  func.func @transform_3(%arg0: i32, %arg1: i32) -> (i32, i32) {
    %c0_i32 = arith.constant 0 : i32
    return %arg0, %arg1 : i32, i32
  }
}

</mosaic_0001>

<bundles_post_ra>
// kernel: _lambda_.7
= control target key start
LH: loop header
LB: loop body
LE: loop exit
PB: predicated region body
PF: predicated region fallthrough
CT: control target
= control target key end

     0   :  { %s2073_s12 = smov 0   ;;  %s2075_s13 = smov 0   ;;  %s2283_s0 = inlined_call_operand.vmem [shape: bf16[2048,128], index: 0, kind: input, shape index: {}]   ;;  %s2284_s1 = inlined_call_operand.vmem [shape: bf16[128,128], index: 1, kind: input, shape index: {}]   ;;  %s2285_s2 = inlined_call_operand.vmem [shape: f32[1,128], index: 2, kind: input, shape index: {}]   ;;  %s2286_s3 = inlined_call_operand.vmem [shape: bf16[2048,128], index: 3, kind: output, shape index: {}]  }
   0x1   :  { %s2077_s14 = smov 0  }
   0x2 LB: > { %s25_s15 = sadd.s32 1, %s2047_s13  ;;  %p1462_p0 = scmp.ge.s32.totalorder %s2051_s14, 1  ;;  %s2051_s14 = sphi %s2077_s14, %s13_s14   ;;  %s2047_s13 = sphi %s2075_s13, %s2288_s13   ;;  %s2043_s12 = sphi %s2073_s12, %s2287_s12  }
   0x3   : > { %p27_p1 = scmp.ge.s32.totalorder %s25_s15, 4  ;;  %p169_p2 = scmp.lt.s32.totalorder %s2051_s14, 5 }
   0x5   : > { %s2290_s15 = smov (%p27_p1, %s25_s15), 0  ;;  %p170_p3 = pnand %p1462_p0, %p169_p2 }
   0x6   : > { %v1989_v0 = vld [vmem:[%s2284_s1] sm:$0xff] (!%p170_p3)   ;;  %s1463_s18 = sshll.u32 (!%p170_p3), %s2043_s12, 6  ;;  %v1990_v1 = vld [vmem:[%s2284_s1 + $0x8] sm:$0xff] (!%p170_p3)   ;;  %v1991_v2 = vld [vmem:[%s2284_s1 + $0x10] sm:$0xff] (!%p170_p3)  }
   0x7   : > { %173 = sbr.rel (%p170_p3) target bundleno = 328 (0x148), region = 32  ;;  %p204_p4 = scmp.lt.s32.totalorder (!%p170_p3), %s1463_s18, 255  ;;  %1869 = vmatprep.subr.bf16.mxu0 (!%p170_p3), %v1989_v0  ;;  %1949 = vmatprep.subr.bf16.mxu1 (!%p170_p3), %v1989_v0  ;;  %v1992_v3 = vld [vmem:[%s2284_s1 + $0x18] sm:$0xff] (!%p170_p3)   ;;  %v1993_v6 = vld [vmem:[%s2284_s1 + $0x20] sm:$0xff] (!%p170_p3)   ;;  %v1994_v7 = vld [vmem:[%s2284_s1 + $0x28] sm:$0xff] (!%p170_p3)  }
   0x8   : > { %1870 = vmatpush3.bf16.msra.mxu0 (!%p170_p3), %v1989_v0  ;;  %1957 = vmatpush3.bf16.msra.mxu1 (!%p170_p3), %v1989_v0  ;;  %v1995_v8 = vld [vmem:[%s2284_s1 + $0x30] sm:$0xff] (!%p170_p3)   ;;  %v1996_v9 = vld [vmem:[%s2284_s1 + $0x38] sm:$0xff] (!%p170_p3)   ;;  %v2160_v40 = vld [vmem:[%s2285_s2] ss:$0 sm:$0xff] (!%p170_p3) }
   0x9   : > { %1871 = vmatprep.subr.bf16.mxu0 (!%p170_p3), %v1990_v1  ;;  %1950 = vmatprep.subr.bf16.mxu1 (!%p170_p3), %v1990_v1 }
   0xc   : > { %1872 = vmatpush3.bf16.msra.mxu0 (!%p170_p3), %v1990_v1  ;;  %1958 = vmatpush3.bf16.msra.mxu1 (!%p170_p3), %v1990_v1 }
   0xd   : > { %1873 = vmatprep.subr.bf16.mxu0 (!%p170_p3), %v1991_v2  ;;  %1951 = vmatprep.subr.bf16.mxu1 (!%p170_p3), %v1991_v2 }
   0xe   : > { %s2292_s18 = smov (!%p204_p4, %s1463_s18), 255 }
   0xf   : > { %s1464_s23 = sshll.u32 %s2292_s18, 2 }
  0x10   : > { %s2108_s26 = scalar_lea.vmem %s2283_s0, %s1464_s23  ;;  %1874 = vmatpush3.bf16.msra.mxu0 %v1991_v2  ;;  %1959 = vmatpush3.bf16.msra.mxu1 %v1991_v2  ;;  %s2177_s17 = scalar_lea.vmem %s2286_s3, %s1464_s23 }
  0x11   : > { %v1997_v4 = vld [vmem:[%s2108_s26] sm:$0xff]   ;;  %1875 = vmatprep.subr.bf16.mxu0 %v1992_v3  ;;  %1952 = vmatprep.subr.bf16.mxu1 %v1992_v3  ;;  %v1999_v10 = vld [vmem:[%s2108_s26 + $0x8] sm:$0xff]   ;;  %v2001_v12 = vld [vmem:[%s2108_s26 + $0x10] sm:$0xff]  }
  0x12   : > { %v1998_v5 = vld [vmem:[%s2108_s26 + $0x80] sm:$0xff]   ;;  %1885 = vmatprep.mubr.bf16.mxu0 %v1997_v4  ;;  %v2000_v11 = vld [vmem:[%s2108_s26 + $0x88] sm:$0xff]   ;;  %v2002_v13 = vld [vmem:[%s2108_s26 + $0x90] sm:$0xff]  }
  0x13   : > { %1917 = vmatprep.mubr.bf16.mxu1 %v1998_v5  ;;  %v2003_v14 = vld [vmem:[%s2108_s26 + $0x18] sm:$0xff]   ;;  %v2005_v16 = vld [vmem:[%s2108_s26 + $0x20] sm:$0xff]   ;;  %v2007_v18 = vld [vmem:[%s2108_s26 + $0x28] sm:$0xff]  }
  0x14   : > { %1876 = vmatpush3.bf16.msra.mxu0 %v1992_v3  ;;  %1960 = vmatpush3.bf16.msra.mxu1 %v1992_v3  ;;  %v2004_v15 = vld [vmem:[%s2108_s26 + $0x98] sm:$0xff]   ;;  %v2006_v17 = vld [vmem:[%s2108_s26 + $0xa0] sm:$0xff]   ;;  %v2008_v19 = vld [vmem:[%s2108_s26 + $0xa8] sm:$0xff]  }
  0x15   : > { %1877 = vmatprep.subr.bf16.mxu0 %v1993_v6  ;;  %1953 = vmatprep.subr.bf16.mxu1 %v1993_v6  ;;  %v2009_v20 = vld [vmem:[%s2108_s26 + $0x30] sm:$0xff]   ;;  %v2011_v22 = vld [vmem:[%s2108_s26 + $0x38] sm:$0xff]   ;;  %v2013_v24 = vld [vmem:[%s2108_s26 + $0x40] sm:$0xff]  }
  0x16   : > { %v2010_v21 = vld [vmem:[%s2108_s26 + $0xb0] sm:$0xff]   ;;  %v2012_v23 = vld [vmem:[%s2108_s26 + $0xb8] sm:$0xff]   ;;  %v2014_v25 = vld [vmem:[%s2108_s26 + $0xc0] sm:$0xff]  }
  0x17   : > { %v2015_v26 = vld [vmem:[%s2108_s26 + $0x48] sm:$0xff]   ;;  %v2017_v28 = vld [vmem:[%s2108_s26 + $0x50] sm:$0xff]   ;;  %v2019_v30 = vld [vmem:[%s2108_s26 + $0x58] sm:$0xff]  }
  0x18   : > { %1878 = vmatpush3.bf16.msra.mxu0 %v1993_v6  ;;  %1961 = vmatpush3.bf16.msra.mxu1 %v1993_v6  ;;  %v2016_v27 = vld [vmem:[%s2108_s26 + $0xc8] sm:$0xff]   ;;  %v2018_v29 = vld [vmem:[%s2108_s26 + $0xd0] sm:$0xff]   ;;  %v2020_v31 = vld [vmem:[%s2108_s26 + $0xd8] sm:$0xff]  }
  0x19   : > { %1879 = vmatprep.subr.bf16.mxu0 %v1994_v7  ;;  %1954 = vmatprep.subr.bf16.mxu1 %v1994_v7  ;;  %v2021_v32 = vld [vmem:[%s2108_s26 + $0x60] sm:$0xff]   ;;  %v2023_v34 = vld [vmem:[%s2108_s26 + $0x68] sm:$0xff]   ;;  %v2025_v36 = vld [vmem:[%s2108_s26 + $0x70] sm:$0xff]  }
  0x1a   : > { %v2022_v33 = vld [vmem:[%s2108_s26 + $0xe0] sm:$0xff]   ;;  %v2024_v35 = vld [vmem:[%s2108_s26 + $0xe8] sm:$0xff]   ;;  %v2026_v37 = vld [vmem:[%s2108_s26 + $0xf0] sm:$0xff]  }
  0x1b   : > { %v2027_v38 = vld [vmem:[%s2108_s26 + $0x78] sm:$0xff]  }
  0x1c   : > { %1880 = vmatpush3.bf16.msra.mxu0 %v1994_v7  ;;  %1962 = vmatpush3.bf16.msra.mxu1 %v1994_v7  ;;  %v2028_v39 = vld [vmem:[%s2108_s26 + $0xf8] sm:$0xff]  }
  0x1d   : > { %1881 = vmatprep.subr.bf16.mxu0 %v1995_v8  ;;  %1955 = vmatprep.subr.bf16.mxu1 %v1995_v8 }
  0x20   : > { %1882 = vmatpush3.bf16.msra.mxu0 %v1995_v8  ;;  %1963 = vmatpush3.bf16.msra.mxu1 %v1995_v8 }
  0x21   : > { %1883 = vmatprep.subr.bf16.mxu0 %v1996_v9  ;;  %1956 = vmatprep.subr.bf16.mxu1 %v1996_v9 }
  0x24   : > { %1884 = vmatpush3.bf16.msra.mxu0 %v1996_v9  ;;  %1964 = vmatpush3.bf16.msra.mxu1 %v1996_v9 }
  0x27   : > { %1886 = vmatmul.mubr.bf16.vlgmr.msra.gmra.mrb[0].mxu0 %v1999_v10  ;;  %1918 = vmatmul.mubr.bf16.vlgmr.msra.gmra.mrb[0].mxu1 %v2000_v11 }
  0x28   : > { %1889 = vmatprep.mubr.bf16.mxu0 %v2001_v12  ;;  %1921 = vmatprep.mubr.bf16.mxu1 %v2002_v13 }
  0x2f   : > { %1890 = vmatmul.mubr.bf16.gmra.mrb[4].mxu0 %v2003_v14  ;;  %1922 = vmatmul.mubr.bf16.gmra.mrb[4].mxu1 %v2004_v15 }
  0x30   : > { %1893 = vmatprep.mubr.bf16.mxu0 %v2005_v16  ;;  %1925 = vmatprep.mubr.bf16.mxu1 %v2006_v17 }
  0x37   : > { %1894 = vmatmul.mubr.bf16.gmra.mrb[8].mxu0 %v2007_v18  ;;  %1926 = vmatmul.mubr.bf16.gmra.mrb[8].mxu1 %v2008_v19 }
  0x38   : > { %1897 = vmatprep.mubr.bf16.mxu0 %v2009_v20  ;;  %1929 = vmatprep.mubr.bf16.mxu1 %v2010_v21 }
  0x3f   : > { %1898 = vmatmul.mubr.bf16.gmra.mrb[12].mxu0 %v2011_v22  ;;  %1930 = vmatmul.mubr.bf16.gmra.mrb[12].mxu1 %v2012_v23 }
  0x40   : > { %1901 = vmatprep.mubr.bf16.mxu0 %v2013_v24  ;;  %1933 = vmatprep.mubr.bf16.mxu1 %v2014_v25 }
  0x47   : > { %1902 = vmatmul.mubr.bf16.gmra.mrb[16].mxu0 %v2015_v26  ;;  %1934 = vmatmul.mubr.bf16.gmra.mrb[16].mxu1 %v2016_v27 }
  0x48   : > { %1905 = vmatprep.mubr.bf16.mxu0 %v2017_v28  ;;  %1937 = vmatprep.mubr.bf16.mxu1 %v2018_v29 }
  0x4f   : > { %1906 = vmatmul.mubr.bf16.gmra.mrb[20].mxu0 %v2019_v30  ;;  %1938 = vmatmul.mubr.bf16.gmra.mrb[20].mxu1 %v2020_v31 }
  0x50   : > { %1909 = vmatprep.mubr.bf16.mxu0 %v2021_v32  ;;  %1941 = vmatprep.mubr.bf16.mxu1 %v2022_v33 }
  0x57   : > { %1910 = vmatmul.mubr.bf16.gmra.mrb[24].mxu0 %v2023_v34  ;;  %1942 = vmatmul.mubr.bf16.gmra.mrb[24].mxu1 %v2024_v35 }
  0x58   : > { %1913 = vmatprep.mubr.bf16.mxu0 %v2025_v36  ;;  %1945 = vmatprep.mubr.bf16.mxu1 %v2026_v37 }
  0x5f   : > { %1914 = vmatmul.mubr.bf16.gmra.mrb[28].mxu0 %v2027_v38  ;;  %1946 = vmatmul.mubr.bf16.gmra.mrb[28].mxu1 %v2028_v39 }
  0xfa   : > { %v1887_v41 = vpop.f32.mrb[0].mxu0  ;;  %v1919_v42 = vpop.f32.mrb[0].mxu1 }
  0xfb   : > { %v596_v43 = vadd.f32 %v1887_v41, %v2160_v40  ;;  %v724_v44 = vadd.f32 %v1919_v42, %v2160_v40  ;;  %v587_v45 = vpop.f32.mrb[1].mxu0  ;;  %v715_v46 = vpop.f32.mrb[1].mxu1 }
  0xfc   : > { %v588_v47 = vadd.f32 %v2160_v40, %v587_v45  ;;  %v716_v48 = vadd.f32 %v2160_v40, %v715_v46  ;;  %v1888_v49 = vpop.f32.mrb[2].mxu0  ;;  %v1920_v50 = vpop.f32.mrb[2].mxu1 }
  0xfd   : > { %vm844_vm0 = vcmp.ge.f32.partialorder %v596_v43, 0.0  ;;  %v908_v51 = vmul.f32 0.2, %v596_v43  ;;  %vm876_vm1 = vcmp.ge.f32.partialorder %v724_v44, 0.0  ;;  %v940_v52 = vmul.f32 0.2, %v724_v44 }
  0xfe   : > { %vm842_vm2 = vcmp.ge.f32.partialorder %v588_v47, 0.0  ;;  %v906_v53 = vmul.f32 0.2, %v588_v47  ;;  %vm874_vm3 = vcmp.ge.f32.partialorder %v716_v48, 0.0  ;;  %v938_v54 = vmul.f32 0.2, %v716_v48 }
  0xff   : > { %v599_v55 = vadd.f32 %v1888_v49, %v2160_v40  ;;  %v727_v56 = vadd.f32 %v1920_v50, %v2160_v40  ;;  %v590_v57 = vpop.f32.mrb[3].mxu0  ;;  %v718_v58 = vpop.f32.mrb[3].mxu1  ;;  %v972_v59 = vsel %vm844_vm0, %v596_v43, %v908_v51  ;;  %v1004_v60 = vsel %vm876_vm1, %v724_v44, %v940_v52 }
 0x100   : > { %v591_v61 = vadd.f32 %v2160_v40, %v590_v57  ;;  %v719_v62 = vadd.f32 %v2160_v40, %v718_v58  ;;  %v970_v3 = vsel %vm842_vm2, %v588_v47, %v906_v53  ;;  %v1002_v4 = vsel %vm874_vm3, %v716_v48, %v938_v54 }
 0x101   : > { %vm845_vm4 = vcmp.ge.f32.partialorder %v599_v55, 0.0  ;;  %v909_v63 = vmul.f32 0.2, %v599_v55  ;;  %vm877_vm5 = vcmp.ge.f32.partialorder %v727_v56, 0.0  ;;  %v941_v0 = vmul.f32 0.2, %v727_v56 }
 0x102   : > { %vm843_vm6 = vcmp.ge.f32.partialorder %v591_v61, 0.0  ;;  %v907_v1 = vmul.f32 0.2, %v591_v61  ;;  %vm875_vm7 = vcmp.ge.f32.partialorder %v719_v62, 0.0  ;;  %v939_v2 = vmul.f32 0.2, %v719_v62 }
 0x103   : > { %v973_v5 = vsel %vm845_vm4, %v599_v55, %v909_v63  ;;  %v1005_v6 = vsel %vm877_vm5, %v727_v56, %v941_v0  ;;  %v1891_v7 = vpop.f32.mrb[4].mxu0  ;;  %v1923_v8 = vpop.f32.mrb[4].mxu1 }
 0x104   : > { %v1646_v9 = vpack.c.bf16 %v973_v5, %v972_v59  ;;  %v1726_v10 = vpack.c.bf16 %v1005_v6, %v1004_v60  ;;  %v971_v11 = vsel %vm843_vm6, %v591_v61, %v907_v1  ;;  %v1003_v12 = vsel %vm875_vm7, %v719_v62, %v939_v2  ;;  %v603_v13 = vpop.f32.mrb[5].mxu0  ;;  %v731_v14 = vpop.f32.mrb[5].mxu1 }
 0x105   : > { %v1641_v15 = vpack.c.bf16 %v971_v11, %v970_v3  ;;  %v1721_v16 = vpack.c.bf16 %v1003_v12, %v1002_v4  ;;  %v612_v17 = vadd.f32 %v1891_v7, %v2160_v40  ;;  %v740_v18 = vadd.f32 %v1923_v8, %v2160_v40  ;;  %v1892_v19 = vpop.f32.mrb[6].mxu0  ;;  %v1924_v20 = vpop.f32.mrb[6].mxu1 }
 0x106   : > { %1798 = vst [vmem:[%s2177_s17 + $0x8] sm:$0xff] %v1646_v9   ;;  %1814 = vst [vmem:[%s2177_s17 + $0x88] sm:$0xff] %v1726_v10   ;;  %v604_v21 = vadd.f32 %v2160_v40, %v603_v13  ;;  %v732_v22 = vadd.f32 %v2160_v40, %v731_v14  ;;  %v615_v23 = vadd.f32 %v1892_v19, %v2160_v40  ;;  %v606_v25 = vpop.f32.mrb[7].mxu0  ;;  %v734_v26 = vpop.f32.mrb[7].mxu1 }
 0x107   : > { %v743_v24 = vadd.f32 %v1924_v20, %v2160_v40  ;;  %1642 = vst [vmem:[%s2177_s17] sm:$0xff] %v1641_v15   ;;  %1813 = vst [vmem:[%s2177_s17 + $0x80] sm:$0xff] %v1721_v16   ;;  %vm848_vm8 = vcmp.ge.f32.partialorder %v612_v17, 0.0  ;;  %v912_v27 = vmul.f32 0.2, %v612_v17  ;;  %vm880_vm9 = vcmp.ge.f32.partialorder %v740_v18, 0.0 }
 0x108   : > { %v944_v28 = vmul.f32 0.2, %v740_v18  ;;  %vm846_vm10 = vcmp.ge.f32.partialorder %v604_v21, 0.0  ;;  %v910_v29 = vmul.f32 0.2, %v604_v21  ;;  %vm878_vm11 = vcmp.ge.f32.partialorder %v732_v22, 0.0 }
 0x109   : > { %v942_v30 = vmul.f32 0.2, %v732_v22  ;;  %v976_v31 = vsel %vm848_vm8, %v612_v17, %v912_v27  ;;  %vm849_vm12 = vcmp.ge.f32.partialorder %v615_v23, 0.0  ;;  %v913_v33 = vmul.f32 0.2, %v615_v23 }
 0x10a   : > { %v1008_v32 = vsel %vm880_vm9, %v740_v18, %v944_v28  ;;  %v974_v34 = vsel %vm846_vm10, %v604_v21, %v910_v29  ;;  %vm881_vm13 = vcmp.ge.f32.partialorder %v743_v24, 0.0  ;;  %v945_v36 = vmul.f32 0.2, %v743_v24  ;;  %v1895_v37 = vpop.f32.mrb[8].mxu0  ;;  %v1927_v38 = vpop.f32.mrb[8].mxu1 }
 0x10b   : > { %v1006_v35 = vsel %vm878_vm11, %v732_v22, %v942_v30  ;;  %v977_v39 = vsel %vm849_vm12, %v615_v23, %v913_v33  ;;  %v607_v41 = vadd.f32 %v2160_v40, %v606_v25  ;;  %v735_v42 = vadd.f32 %v2160_v40, %v734_v26  ;;  %v619_v44 = vpop.f32.mrb[9].mxu0  ;;  %v747_v45 = vpop.f32.mrb[9].mxu1 }
 0x10c   : > { %v628_v43 = vadd.f32 %v1895_v37, %v2160_v40  ;;  %v1656_v46 = vpack.c.bf16 %v977_v39, %v976_v31  ;;  %v1009_v47 = vsel %vm881_vm13, %v743_v24, %v945_v36  ;;  %v756_v48 = vadd.f32 %v1927_v38, %v2160_v40  ;;  %v1896_v50 = vpop.f32.mrb[10].mxu0  ;;  %v1928_v51 = vpop.f32.mrb[10].mxu1 }
 0x10d   : > { %v620_v49 = vadd.f32 %v2160_v40, %v619_v44  ;;  %v1736_v52 = vpack.c.bf16 %v1009_v47, %v1008_v32  ;;  %vm847_vm14 = vcmp.ge.f32.partialorder %v607_v41, 0.0  ;;  %v911_v53 = vmul.f32 0.2, %v607_v41  ;;  %v622_v54 = vpop.f32.mrb[11].mxu0  ;;  %v750_v55 = vpop.f32.mrb[11].mxu1 }
 0x10e   : > { %vm879_vm15 = vcmp.ge.f32.partialorder %v735_v42, 0.0  ;;  %1800 = vst [vmem:[%s2177_s17 + $0x18] sm:$0xff] %v1656_v46   ;;  %v943_v56 = vmul.f32 0.2, %v735_v42  ;;  %vm852_vm0 = vcmp.ge.f32.partialorder %v628_v43, 0.0  ;;  %vm884_vm1 = vcmp.ge.f32.partialorder %v756_v48, 0.0 }
 0x10f   : > { %v916_v57 = vmul.f32 0.2, %v628_v43  ;;  %1816 = vst [vmem:[%s2177_s17 + $0x98] sm:$0xff] %v1736_v52   ;;  %v975_v58 = vsel %vm847_vm14, %v607_v41, %v911_v53  ;;  %v948_v59 = vmul.f32 0.2, %v756_v48  ;;  %vm850_vm2 = vcmp.ge.f32.partialorder %v620_v49, 0.0 }
 0x110   : > { %v914_v60 = vmul.f32 0.2, %v620_v49  ;;  %v1651_v61 = vpack.c.bf16 %v975_v58, %v974_v34  ;;  %v1007_v62 = vsel %vm879_vm15, %v735_v42, %v943_v56  ;;  %v748_v0 = vadd.f32 %v2160_v40, %v747_v45 }
 0x111   : > { %v980_v63 = vsel %vm852_vm0, %v628_v43, %v916_v57  ;;  %v1731_v1 = vpack.c.bf16 %v1007_v62, %v1006_v35  ;;  %v1012_v2 = vsel %vm884_vm1, %v756_v48, %v948_v59  ;;  %v631_v4 = vadd.f32 %v1896_v50, %v2160_v40 }
 0x112   : > { %v978_v3 = vsel %vm850_vm2, %v620_v49, %v914_v60  ;;  %1799 = vst [vmem:[%s2177_s17 + $0x10] sm:$0xff] %v1651_v61   ;;  %vm882_vm3 = vcmp.ge.f32.partialorder %v748_v0, 0.0  ;;  %v946_v5 = vmul.f32 0.2, %v748_v0  ;;  %v759_v6 = vadd.f32 %v1928_v51, %v2160_v40  ;;  %v1899_v8 = vpop.f32.mrb[12].mxu0  ;;  %v1931_v9 = vpop.f32.mrb[12].mxu1 }
 0x113   : > { %v623_v7 = vadd.f32 %v2160_v40, %v622_v54  ;;  %1815 = vst [vmem:[%s2177_s17 + $0x90] sm:$0xff] %v1731_v1   ;;  %vm853_vm4 = vcmp.ge.f32.partialorder %v631_v4, 0.0  ;;  %v917_v10 = vmul.f32 0.2, %v631_v4  ;;  %v751_v11 = vadd.f32 %v2160_v40, %v750_v55  ;;  %v635_v13 = vpop.f32.mrb[13].mxu0  ;;  %v763_v14 = vpop.f32.mrb[13].mxu1 }
 0x114   : > { %v644_v12 = vadd.f32 %v1899_v8, %v2160_v40  ;;  %v1010_v15 = vsel %vm882_vm3, %v748_v0, %v946_v5  ;;  %vm885_vm5 = vcmp.ge.f32.partialorder %v759_v6, 0.0  ;;  %v949_v16 = vmul.f32 0.2, %v759_v6  ;;  %v1900_v17 = vpop.f32.mrb[14].mxu0  ;;  %v1932_v18 = vpop.f32.mrb[14].mxu1 }
 0x115   : > { %vm851_vm6 = vcmp.ge.f32.partialorder %v623_v7, 0.0  ;;  %v981_v19 = vsel %vm853_vm4, %v631_v4, %v917_v10  ;;  %v915_v20 = vmul.f32 0.2, %v623_v7  ;;  %vm883_vm7 = vcmp.ge.f32.partialorder %v751_v11, 0.0  ;;  %v638_v22 = vpop.f32.mrb[15].mxu0  ;;  %v766_v26 = vpop.f32.mrb[15].mxu1 }
 0x116   : > { %v947_v21 = vmul.f32 0.2, %v751_v11  ;;  %v1666_v23 = vpack.c.bf16 %v981_v19, %v980_v63  ;;  %v1013_v24 = vsel %vm885_vm5, %v759_v6, %v949_v16  ;;  %vm856_vm8 = vcmp.ge.f32.partialorder %v644_v12, 0.0 }
 0x117   : > { %v920_v25 = vmul.f32 0.2, %v644_v12  ;;  %v1746_v27 = vpack.c.bf16 %v1013_v24, %v1012_v2  ;;  %v979_v28 = vsel %vm851_vm6, %v623_v7, %v915_v20  ;;  %v772_v30 = vadd.f32 %v1931_v9, %v2160_v40 }
 0x118   : > { %v1011_v29 = vsel %vm883_vm7, %v751_v11, %v947_v21  ;;  %1802 = vst [vmem:[%s2177_s17 + $0x28] sm:$0xff] %v1666_v23   ;;  %v1661_v31 = vpack.c.bf16 %v979_v28, %v978_v3  ;;  %v636_v34 = vadd.f32 %v2160_v40, %v635_v13  ;;  %v764_v36 = vadd.f32 %v2160_v40, %v763_v14 }
 0x119   : > { %v1741_v32 = vpack.c.bf16 %v1011_v29, %v1010_v15  ;;  %v984_v33 = vsel %vm856_vm8, %v644_v12, %v920_v25  ;;  %1818 = vst [vmem:[%s2177_s17 + $0xa8] sm:$0xff] %v1746_v27   ;;  %vm888_vm9 = vcmp.ge.f32.partialorder %v772_v30, 0.0  ;;  %v952_v35 = vmul.f32 0.2, %v772_v30 }
 0x11a   : > { %v647_v37 = vadd.f32 %v1900_v17, %v2160_v40  ;;  %1801 = vst [vmem:[%s2177_s17 + $0x20] sm:$0xff] %v1661_v31   ;;  %vm854_vm10 = vcmp.ge.f32.partialorder %v636_v34, 0.0  ;;  %v918_v38 = vmul.f32 0.2, %v636_v34  ;;  %v775_v39 = vadd.f32 %v1932_v18, %v2160_v40  ;;  %v1903_v42 = vpop.f32.mrb[16].mxu0  ;;  %v1935_v43 = vpop.f32.mrb[16].mxu1 }
 0x11b   : > { %1817 = vst [vmem:[%s2177_s17 + $0xa0] sm:$0xff] %v1741_v32   ;;  %v639_v41 = vadd.f32 %v2160_v40, %v638_v22  ;;  %v1016_v44 = vsel %vm888_vm9, %v772_v30, %v952_v35  ;;  %vm886_vm11 = vcmp.ge.f32.partialorder %v764_v36, 0.0  ;;  %v950_v45 = vmul.f32 0.2, %v764_v36  ;;  %v651_v46 = vpop.f32.mrb[17].mxu0  ;;  %v779_v47 = vpop.f32.mrb[17].mxu1 }
 0x11c   : > { %vm857_vm12 = vcmp.ge.f32.partialorder %v647_v37, 0.0  ;;  %v982_v48 = vsel %vm854_vm10, %v636_v34, %v918_v38  ;;  %v921_v49 = vmul.f32 0.2, %v647_v37  ;;  %vm889_vm13 = vcmp.ge.f32.partialorder %v775_v39, 0.0  ;;  %v1904_v51 = vpop.f32.mrb[18].mxu0  ;;  %v1936_v55 = vpop.f32.mrb[18].mxu1 }
 0x11d   : > { %v953_v50 = vmul.f32 0.2, %v775_v39  ;;  %v1014_v52 = vsel %vm886_vm11, %v764_v36, %v950_v45  ;;  %vm855_vm14 = vcmp.ge.f32.partialorder %v639_v41, 0.0  ;;  %v919_v53 = vmul.f32 0.2, %v639_v41  ;;  %v654_v56 = vpop.f32.mrb[19].mxu0 }
 0x11e   : > { %v767_v54 = vadd.f32 %v2160_v40, %v766_v26  ;;  %v985_v57 = vsel %vm857_vm12, %v647_v37, %v921_v49  ;;  %v660_v59 = vadd.f32 %v1903_v42, %v2160_v40  ;;  %v788_v60 = vadd.f32 %v1935_v43, %v2160_v40  ;;  %v782_v61 = vpop.f32.mrb[19].mxu1 }
 0x11f   : > { %v1017_v58 = vsel %vm889_vm13, %v775_v39, %v953_v50  ;;  %v1676_v62 = vpack.c.bf16 %v985_v57, %v984_v33  ;;  %v983_v0 = vsel %vm855_vm14, %v639_v41, %v919_v53  ;;  %v652_v5 = vadd.f32 %v2160_v40, %v651_v46 }
 0x120   : > { %v1756_v63 = vpack.c.bf16 %v1017_v58, %v1016_v44  ;;  %vm887_vm15 = vcmp.ge.f32.partialorder %v767_v54, 0.0  ;;  %v1671_v1 = vpack.c.bf16 %v983_v0, %v982_v48  ;;  %v951_v2 = vmul.f32 0.2, %v767_v54 }
 0x121   : > { %vm860_vm0 = vcmp.ge.f32.partialorder %v660_v59, 0.0  ;;  %v924_v3 = vmul.f32 0.2, %v660_v59  ;;  %1804 = vst [vmem:[%s2177_s17 + $0x38] sm:$0xff] %v1676_v62   ;;  %vm892_vm1 = vcmp.ge.f32.partialorder %v788_v60, 0.0  ;;  %v780_v6 = vadd.f32 %v2160_v40, %v779_v47 }
 0x122   : > { %1820 = vst [vmem:[%s2177_s17 + $0xb8] sm:$0xff] %v1756_v63   ;;  %v956_v4 = vmul.f32 0.2, %v788_v60  ;;  %1803 = vst [vmem:[%s2177_s17 + $0x30] sm:$0xff] %v1671_v1   ;;  %v1015_v7 = vsel %vm887_vm15, %v767_v54, %v951_v2  ;;  %v663_v9 = vadd.f32 %v1904_v51, %v2160_v40  ;;  %v791_v10 = vadd.f32 %v1936_v55, %v2160_v40  ;;  %v1907_v11 = vpop.f32.mrb[20].mxu0  ;;  %v1939_v12 = vpop.f32.mrb[20].mxu1 }
 0x123   : > { %v988_v8 = vsel %vm860_vm0, %v660_v59, %v924_v3  ;;  %v1751_v13 = vpack.c.bf16 %v1015_v7, %v1014_v52  ;;  %vm858_vm2 = vcmp.ge.f32.partialorder %v652_v5, 0.0  ;;  %v922_v15 = vmul.f32 0.2, %v652_v5  ;;  %v667_v16 = vpop.f32.mrb[21].mxu0  ;;  %v795_v17 = vpop.f32.mrb[21].mxu1 }
 0x124   : > { %v1020_v14 = vsel %vm892_vm1, %v788_v60, %v956_v4  ;;  %vm890_vm3 = vcmp.ge.f32.partialorder %v780_v6, 0.0  ;;  %v954_v18 = vmul.f32 0.2, %v780_v6  ;;  %vm861_vm4 = vcmp.ge.f32.partialorder %v663_v9, 0.0  ;;  %v1908_v23 = vpop.f32.mrb[22].mxu0  ;;  %v1940_v24 = vpop.f32.mrb[22].mxu1 }
 0x125   : > { %v925_v19 = vmul.f32 0.2, %v663_v9  ;;  %1819 = vst [vmem:[%s2177_s17 + $0xb0] sm:$0xff] %v1751_v13   ;;  %v986_v20 = vsel %vm858_vm2, %v652_v5, %v922_v15  ;;  %vm893_vm5 = vcmp.ge.f32.partialorder %v791_v10, 0.0  ;;  %v957_v21 = vmul.f32 0.2, %v791_v10 }
 0x126   : > { %v655_v22 = vadd.f32 %v2160_v40, %v654_v56  ;;  %v1018_v25 = vsel %vm890_vm3, %v780_v6, %v954_v18  ;;  %v783_v27 = vadd.f32 %v2160_v40, %v782_v61  ;;  %v676_v28 = vadd.f32 %v1907_v11, %v2160_v40  ;;  %v670_v29 = vpop.f32.mrb[23].mxu0  ;;  %v798_v30 = vpop.f32.mrb[23].mxu1 }
 0x127   : > { %v989_v26 = vsel %vm861_vm4, %v663_v9, %v925_v19  ;;  %v1021_v32 = vsel %vm893_vm5, %v791_v10, %v957_v21  ;;  %v804_v38 = vadd.f32 %v1939_v12, %v2160_v40  ;;  %v668_v39 = vadd.f32 %v2160_v40, %v667_v16 }
 0x128   : > { %v1686_v31 = vpack.c.bf16 %v989_v26, %v988_v8  ;;  %vm859_vm6 = vcmp.ge.f32.partialorder %v655_v22, 0.0  ;;  %v923_v33 = vmul.f32 0.2, %v655_v22  ;;  %v1766_v34 = vpack.c.bf16 %v1021_v32, %v1020_v14 }
 0x129   : > { %vm891_vm7 = vcmp.ge.f32.partialorder %v783_v27, 0.0  ;;  %v955_v35 = vmul.f32 0.2, %v783_v27  ;;  %vm864_vm8 = vcmp.ge.f32.partialorder %v676_v28, 0.0  ;;  %v928_v37 = vmul.f32 0.2, %v676_v28 }
 0x12a   : > { %1806 = vst [vmem:[%s2177_s17 + $0x48] sm:$0xff] %v1686_v31   ;;  %v987_v36 = vsel %vm859_vm6, %v655_v22, %v923_v33  ;;  %1822 = vst [vmem:[%s2177_s17 + $0xc8] sm:$0xff] %v1766_v34   ;;  %v796_v43 = vadd.f32 %v2160_v40, %v795_v17  ;;  %v679_v44 = vadd.f32 %v1908_v23, %v2160_v40  ;;  %v1911_v45 = vpop.f32.mrb[24].mxu0  ;;  %v1943_v46 = vpop.f32.mrb[24].mxu1  ;;  %vm896_vm9 = vcmp.ge.f32.partialorder %v804_v38, 0.0 }
 0x12b   : > { %v1681_v41 = vpack.c.bf16 %v987_v36, %v986_v20  ;;  %v1019_v42 = vsel %vm891_vm7, %v783_v27, %v955_v35  ;;  %v960_v48 = vmul.f32 0.2, %v804_v38  ;;  %v683_v49 = vpop.f32.mrb[25].mxu0  ;;  %v811_v50 = vpop.f32.mrb[25].mxu1  ;;  %v992_v51 = vsel %vm864_vm8, %v676_v28, %v928_v37 }
 0x12c   : > { %v1761_v47 = vpack.c.bf16 %v1019_v42, %v1018_v25  ;;  %vm862_vm10 = vcmp.ge.f32.partialorder %v668_v39, 0.0  ;;  %v926_v52 = vmul.f32 0.2, %v668_v39  ;;  %v958_v53 = vmul.f32 0.2, %v796_v43  ;;  %v1912_v56 = vpop.f32.mrb[26].mxu0 }
 0x12d   : > { %1805 = vst [vmem:[%s2177_s17 + $0x40] sm:$0xff] %v1681_v41   ;;  %vm894_vm11 = vcmp.ge.f32.partialorder %v796_v43, 0.0  ;;  %vm865_vm12 = vcmp.ge.f32.partialorder %v679_v44, 0.0  ;;  %v929_v54 = vmul.f32 0.2, %v679_v44  ;;  %v807_v55 = vadd.f32 %v1940_v24, %v2160_v40  ;;  %v1944_v57 = vpop.f32.mrb[26].mxu1 }
 0x12e   : > { %1821 = vst [vmem:[%s2177_s17 + $0xc0] sm:$0xff] %v1761_v47   ;;  %v1024_v58 = vsel %vm896_vm9, %v804_v38, %v960_v48  ;;  %v990_v59 = vsel %vm862_vm10, %v668_v39, %v926_v52  ;;  %v671_v60 = vadd.f32 %v2160_v40, %v670_v29  ;;  %v799_v61 = vadd.f32 %v2160_v40, %v798_v30  ;;  %v686_v62 = vpop.f32.mrb[27].mxu0  ;;  %v814_v63 = vpop.f32.mrb[27].mxu1 }
 0x12f   : > { %v993_v0 = vsel %vm865_vm12, %v679_v44, %v929_v54  ;;  %vm897_vm13 = vcmp.ge.f32.partialorder %v807_v55, 0.0  ;;  %v961_v1 = vmul.f32 0.2, %v807_v55  ;;  %v692_v2 = vadd.f32 %v1911_v45, %v2160_v40 }
 0x130   : > { %v1696_v3 = vpack.c.bf16 %v993_v0, %v992_v51  ;;  %vm863_vm14 = vcmp.ge.f32.partialorder %v671_v60, 0.0  ;;  %v927_v4 = vmul.f32 0.2, %v671_v60  ;;  %vm895_vm15 = vcmp.ge.f32.partialorder %v799_v61, 0.0 }
 0x131   : > { %v1025_v5 = vsel %vm897_vm13, %v807_v55, %v961_v1  ;;  %v959_v6 = vmul.f32 0.2, %v799_v61  ;;  %vm868_vm0 = vcmp.ge.f32.partialorder %v692_v2, 0.0  ;;  %v932_v7 = vmul.f32 0.2, %v692_v2 }
 0x132   : > { %1808 = vst [vmem:[%s2177_s17 + $0x58] sm:$0xff] %v1696_v3   ;;  %v1776_v8 = vpack.c.bf16 %v1025_v5, %v1024_v58  ;;  %v991_v9 = vsel %vm863_vm14, %v671_v60, %v927_v4  ;;  %v820_v10 = vadd.f32 %v1943_v46, %v2160_v40  ;;  %v684_v11 = vadd.f32 %v2160_v40, %v683_v49  ;;  %v1915_v12 = vpop.f32.mrb[28].mxu0  ;;  %v1947_v13 = vpop.f32.mrb[28].mxu1 }
 0x133   : > { %v1022_v14 = vsel %vm894_vm11, %v796_v43, %v958_v53  ;;  %v1691_v15 = vpack.c.bf16 %v991_v9, %v990_v59  ;;  %v1023_v16 = vsel %vm895_vm15, %v799_v61, %v959_v6  ;;  %v812_v17 = vadd.f32 %v2160_v40, %v811_v50  ;;  %v699_v18 = vpop.f32.mrb[29].mxu0  ;;  %v827_v19 = vpop.f32.mrb[29].mxu1 }
 0x134   : > { %1824 = vst [vmem:[%s2177_s17 + $0xd8] sm:$0xff] %v1776_v8   ;;  %v1771_v20 = vpack.c.bf16 %v1023_v16, %v1022_v14  ;;  %vm900_vm1 = vcmp.ge.f32.partialorder %v820_v10, 0.0  ;;  %v964_v21 = vmul.f32 0.2, %v820_v10  ;;  %vm866_vm2 = vcmp.ge.f32.partialorder %v684_v11, 0.0  ;;  %v1916_v22 = vpop.f32.mrb[30].mxu0 }
 0x135   : > { %v1948_v23 = vpop.f32.mrb[30].mxu1  ;;  %1807 = vst [vmem:[%s2177_s17 + $0x50] sm:$0xff] %v1691_v15   ;;  %v996_v24 = vsel %vm868_vm0, %v692_v2, %v932_v7  ;;  %v930_v25 = vmul.f32 0.2, %v684_v11  ;;  %vm898_vm3 = vcmp.ge.f32.partialorder %v812_v17, 0.0  ;;  %v695_v26 = vadd.f32 %v1912_v56, %v2160_v40  ;;  %v702_v27 = vpop.f32.mrb[31].mxu0 }
 0x136   : > { %1823 = vst [vmem:[%s2177_s17 + $0xd0] sm:$0xff] %v1771_v20   ;;  %v962_v28 = vmul.f32 0.2, %v812_v17  ;;  %v823_v29 = vadd.f32 %v1944_v57, %v2160_v40  ;;  %v687_v30 = vadd.f32 %v2160_v40, %v686_v62  ;;  %v815_v31 = vadd.f32 %v2160_v40, %v814_v63  ;;  %v830_v32 = vpop.f32.mrb[31].mxu1 }
 0x137   : > { %v1028_v33 = vsel %vm900_vm1, %v820_v10, %v964_v21  ;;  %v994_v34 = vsel %vm866_vm2, %v684_v11, %v930_v25  ;;  %vm869_vm4 = vcmp.ge.f32.partialorder %v695_v26, 0.0  ;;  %v933_v35 = vmul.f32 0.2, %v695_v26 }
 0x138   : > { %vm901_vm5 = vcmp.ge.f32.partialorder %v823_v29, 0.0  ;;  %v965_v36 = vmul.f32 0.2, %v823_v29  ;;  %vm867_vm6 = vcmp.ge.f32.partialorder %v687_v30, 0.0  ;;  %v931_v37 = vmul.f32 0.2, %v687_v30 }
 0x139   : > { %v997_v38 = vsel %vm869_vm4, %v695_v26, %v933_v35  ;;  %vm899_vm7 = vcmp.ge.f32.partialorder %v815_v31, 0.0  ;;  %v963_v39 = vmul.f32 0.2, %v815_v31  ;;  %v708_v41 = vadd.f32 %v1915_v12, %v2160_v40 }
 0x13a   : > { %v1706_v42 = vpack.c.bf16 %v997_v38, %v996_v24  ;;  %v1029_v43 = vsel %vm901_vm5, %v823_v29, %v965_v36  ;;  %v995_v44 = vsel %vm867_vm6, %v687_v30, %v931_v37  ;;  %v836_v45 = vadd.f32 %v1947_v13, %v2160_v40 }
 0x13b   : > { %v1026_v46 = vsel %vm898_vm3, %v812_v17, %v962_v28  ;;  %v1786_v47 = vpack.c.bf16 %v1029_v43, %v1028_v33  ;;  %v1701_v48 = vpack.c.bf16 %v995_v44, %v994_v34  ;;  %v1027_v49 = vsel %vm899_vm7, %v815_v31, %v963_v39 }
 0x13c   : > { %1810 = vst [vmem:[%s2177_s17 + $0x68] sm:$0xff] %v1706_v42   ;;  %v1781_v50 = vpack.c.bf16 %v1027_v49, %v1026_v46  ;;  %vm872_vm8 = vcmp.ge.f32.partialorder %v708_v41, 0.0  ;;  %v936_v51 = vmul.f32 0.2, %v708_v41  ;;  %v968_v52 = vmul.f32 0.2, %v836_v45 }
 0x13d   : > { %1826 = vst [vmem:[%s2177_s17 + $0xe8] sm:$0xff] %v1786_v47   ;;  %1809 = vst [vmem:[%s2177_s17 + $0x60] sm:$0xff] %v1701_v48   ;;  %v700_v53 = vadd.f32 %v2160_v40, %v699_v18  ;;  %v828_v54 = vadd.f32 %v2160_v40, %v827_v19  ;;  %v711_v55 = vadd.f32 %v1916_v22, %v2160_v40  ;;  %vm904_vm9 = vcmp.ge.f32.partialorder %v836_v45, 0.0 }
 0x13e   : > { %v839_v56 = vadd.f32 %v1948_v23, %v2160_v40  ;;  %1825 = vst [vmem:[%s2177_s17 + $0xe0] sm:$0xff] %v1781_v50   ;;  %v703_v57 = vadd.f32 %v2160_v40, %v702_v27  ;;  %v831_v58 = vadd.f32 %v2160_v40, %v830_v32  ;;  %v1000_v59 = vsel %vm872_vm8, %v708_v41, %v936_v51 }
 0x13f   : > { %vm870_vm10 = vcmp.ge.f32.partialorder %v700_v53, 0.0  ;;  %v934_v60 = vmul.f32 0.2, %v700_v53  ;;  %v966_v61 = vmul.f32 0.2, %v828_v54  ;;  %vm873_vm11 = vcmp.ge.f32.partialorder %v711_v55, 0.0 }
 0x140   : > { %v937_v62 = vmul.f32 0.2, %v711_v55  ;;  %vm905_vm12 = vcmp.ge.f32.partialorder %v839_v56, 0.0  ;;  %v969_v63 = vmul.f32 0.2, %v839_v56  ;;  %v1032_v0 = vsel %vm904_vm9, %v836_v45, %v968_v52 }
 0x141   : > { %vm902_vm13 = vcmp.ge.f32.partialorder %v828_v54, 0.0  ;;  %vm871_vm14 = vcmp.ge.f32.partialorder %v703_v57, 0.0  ;;  %v935_v1 = vmul.f32 0.2, %v703_v57  ;;  %vm903_vm15 = vcmp.ge.f32.partialorder %v831_v58, 0.0 }
 0x142   : > { %v1001_v2 = vsel %vm873_vm11, %v711_v55, %v937_v62  ;;  %v1033_v3 = vsel %vm905_vm12, %v839_v56, %v969_v63  ;;  %v967_v40 = vmul.f32 0.2, %v831_v58  ;;  %v998_v4 = vsel %vm870_vm10, %v700_v53, %v934_v60 }
 0x143   : > { %v1716_v5 = vpack.c.bf16 %v1001_v2, %v1000_v59  ;;  %v1796_v6 = vpack.c.bf16 %v1033_v3, %v1032_v0  ;;  %v999_v7 = vsel %vm871_vm14, %v703_v57, %v935_v1  ;;  %v1030_v8 = vsel %vm902_vm13, %v828_v54, %v966_v61 }
 0x144   : > { %v1711_v9 = vpack.c.bf16 %v999_v7, %v998_v4  ;;  %v1031_v10 = vsel %vm903_vm15, %v831_v58, %v967_v40 }
 0x145   : > { %1812 = vst [vmem:[%s2177_s17 + $0x78] sm:$0xff] %v1716_v5   ;;  %1828 = vst [vmem:[%s2177_s17 + $0xf8] sm:$0xff] %v1796_v6   ;;  %v1791_v11 = vpack.c.bf16 %v1031_v10, %v1030_v8 }
 0x146   : > { %1811 = vst [vmem:[%s2177_s17 + $0x70] sm:$0xff] %v1711_v9  }
 0x147   : > { %1827 = vst [vmem:[%s2177_s17 + $0xf0] sm:$0xff] %v1791_v11  }
 0x148 PF: > { %s13_s14 = sadd.s32 1, %s2051_s14   ;;  %s2287_s12 = smov %s2047_s13 }
 0x149   : > { %p10_p5 = scmp.ge.s32.totalorder %s13_s14, 6   ;;  %s2288_s13 = smov %s2290_s15 }
 0x14b   :  { %12 = sbr.rel (!%p10_p5) target bundleno = 2 (0x2), region = 68 }

// kernel: _lambda_.8
= control target key start
LH: loop header
LB: loop body
LE: loop exit
PB: predicated region body
PF: predicated region fallthrough
CT: control target
= control target key end

     0   :  { %s4145_s12 = smov 0   ;;  %s4147_s13 = smov 0   ;;  %s4947_s0 = inlined_call_operand.vmem [shape: bf16[512,1152], index: 0, kind: input, shape index: {}]   ;;  %s4948_s1 = inlined_call_operand.vmem [shape: bf16[1152,128], index: 1, kind: input, shape index: {}]   ;;  %s4949_s2 = inlined_call_operand.vmem [shape: f32[1,128], index: 2, kind: input, shape index: {}]   ;;  %s4950_s3 = inlined_call_operand.vmem [shape: bf16[512,128], index: 3, kind: output, shape index: {}]  }
   0x1   :  { %s4149_s14 = smov 0  }
   0x2 LB: > { %s25_s15 = sadd.s32 1, %s4119_s13  ;;  %p2877_p0 = scmp.ge.s32.totalorder %s4123_s14, 1  ;;  %s4123_s14 = sphi %s4149_s14, %s13_s14   ;;  %s4119_s13 = sphi %s4147_s13, %s4952_s13   ;;  %s4115_s12 = sphi %s4145_s12, %s4951_s12  }
   0x3   : > { %p27_p1 = scmp.ge.s32.totalorder %s25_s15, 2  ;;  %p170_p2 = scmp.lt.s32.totalorder %s4123_s14, 3 }
   0x5   : > { %s4954_s15 = smov (%p27_p1, %s25_s15), 0  ;;  %p171_p3 = pnand %p2877_p0, %p170_p2 }
   0x6   : > { %v3821_v0 = vld [vmem:[%s4948_s1 + $0x40] sm:$0xff] (!%p171_p3)   ;;  %s2878_s18 = sshll.u32 (!%p171_p3), %s4115_s12, 5  ;;  %v3823_v2 = vld [vmem:[%s4948_s1 + $0x48] sm:$0xff] (!%p171_p3)   ;;  %v3825_v4 = vld [vmem:[%s4948_s1 + $0x50] sm:$0xff] (!%p171_p3)  }
   0x7   : > { %174 = sbr.rel (%p171_p3) target bundleno = 546 (0x222), region = 32  ;;  %v3822_v1 = vld [vmem:[%s4948_s1] sm:$0xff] (!%p171_p3)   ;;  %3260 = vmatprep.subr.bf16.mxu0 (!%p171_p3), %v3821_v0  ;;  %3780 = vmatprep.subr.bf16.mxu1 (!%p171_p3), %v3821_v0  ;;  %p206_p4 = scmp.lt.s32.totalorder (!%p171_p3), %s2878_s18, 63  ;;  %v3824_v3 = vld [vmem:[%s4948_s1 + $0x8] sm:$0xff] (!%p171_p3)   ;;  %v3826_v5 = vld [vmem:[%s4948_s1 + $0x10] sm:$0xff] (!%p171_p3)  }
   0x8   : > { %3261 = vmatpush3.bf16.msra.mxu0 (!%p171_p3), %v3822_v1  ;;  %3788 = vmatpush3.bf16.msra.mxu1 (!%p171_p3), %v3822_v1  ;;  %v3827_v6 = vld [vmem:[%s4948_s1 + $0x58] sm:$0xff] (!%p171_p3)   ;;  %v3829_v8 = vld [vmem:[%s4948_s1 + $0x60] sm:$0xff] (!%p171_p3)   ;;  %v3831_v10 = vld [vmem:[%s4948_s1 + $0x68] sm:$0xff] (!%p171_p3)  }
   0x9   : > { %3262 = vmatprep.subr.bf16.mxu0 (!%p171_p3), %v3823_v2  ;;  %3781 = vmatprep.subr.bf16.mxu1 (!%p171_p3), %v3823_v2  ;;  %v3828_v7 = vld [vmem:[%s4948_s1 + $0x18] sm:$0xff] (!%p171_p3)   ;;  %v3830_v9 = vld [vmem:[%s4948_s1 + $0x20] sm:$0xff] (!%p171_p3)   ;;  %v3832_v13 = vld [vmem:[%s4948_s1 + $0x28] sm:$0xff] (!%p171_p3)  }
   0xa   : > { %v3833_v14 = vld [vmem:[%s4948_s1 + $0x70] sm:$0xff] (!%p171_p3)   ;;  %v3835_v16 = vld [vmem:[%s4948_s1 + $0x78] sm:$0xff] (!%p171_p3)   ;;  %v3843_v18 = vld [vmem:[%s4948_s1 + $0xc0] sm:$0xff] (!%p171_p3)  }
   0xb   : > { %v3834_v15 = vld [vmem:[%s4948_s1 + $0x30] sm:$0xff] (!%p171_p3)   ;;  %v3836_v17 = vld [vmem:[%s4948_s1 + $0x38] sm:$0xff] (!%p171_p3)   ;;  %v3846_v21 = vld [vmem:[%s4948_s1 + $0x140] sm:$0xff] (!%p171_p3)  }
   0xc   : > { %3263 = vmatpush3.bf16.msra.mxu0 (!%p171_p3), %v3824_v3  ;;  %3789 = vmatpush3.bf16.msra.mxu1 (!%p171_p3), %v3824_v3  ;;  %v3844_v22 = vld [vmem:[%s4948_s1 + $0x80] sm:$0xff] (!%p171_p3)   ;;  %v3845_v23 = vld [vmem:[%s4948_s1 + $0xc8] sm:$0xff] (!%p171_p3)   ;;  %v3855_v31 = vld [vmem:[%s4948_s1 + $0xd0] sm:$0xff] (!%p171_p3)  }
   0xd   : > { %3264 = vmatprep.subr.bf16.mxu0 (!%p171_p3), %v3825_v4  ;;  %3782 = vmatprep.subr.bf16.mxu1 (!%p171_p3), %v3825_v4  ;;  %v3848_v24 = vld [vmem:[%s4948_s1 + $0x100] sm:$0xff] (!%p171_p3)   ;;  %v3847_v27 = vld [vmem:[%s4948_s1 + $0x88] sm:$0xff] (!%p171_p3)   ;;  %v3856_v32 = vld [vmem:[%s4948_s1 + $0x90] sm:$0xff] (!%p171_p3)  }
   0xe   : > { %s4956_s18 = smov (!%p206_p4, %s2878_s18), 63  ;;  %v3866_v28 = vld [vmem:[%s4948_s1 + $0x148] sm:$0xff]   ;;  %v3857_v34 = vld [vmem:[%s4948_s1 + $0xd8] sm:$0xff]   ;;  %v3865_v40 = vld [vmem:[%s4948_s1 + $0xe0] sm:$0xff]  }
   0xf   : > { %s3796_s4 = smul.u32 36, %s4956_s18  ;;  %v3868_v33 = vld [vmem:[%s4948_s1 + $0x108] sm:$0xff]   ;;  %v3858_v37 = vld [vmem:[%s4948_s1 + $0x98] sm:$0xff]   ;;  %v3867_v41 = vld [vmem:[%s4948_s1 + $0xa0] sm:$0xff]  }
  0x10   : > { %3265 = vmatpush3.bf16.msra.mxu0 %v3826_v5  ;;  %3790 = vmatpush3.bf16.msra.mxu1 %v3826_v5  ;;  %v3869_v42 = vld [vmem:[%s4948_s1 + $0xe8] sm:$0xff]   ;;  %v3880_v43 = vld [vmem:[%s4948_s1 + $0x150] sm:$0xff]   ;;  %v3879_v52 = vld [vmem:[%s4948_s1 + $0xf8] sm:$0xff]  }
  0x11   : > { %3266 = vmatprep.subr.bf16.mxu0 %v3827_v6  ;;  %3783 = vmatprep.subr.bf16.mxu1 %v3827_v6  ;;  %s4196_s11 = scalar_lea.vmem %s4947_s0, %s3796_s4  ;;  %v3882_v46 = vld [vmem:[%s4948_s1 + $0x110] sm:$0xff]   ;;  %v3870_v47 = vld [vmem:[%s4948_s1 + $0xa8] sm:$0xff]   ;;  %v3897_v55 = vld [vmem:[%s4948_s1 + $0x158] sm:$0xff]  }
  0x12   : > { %v3839_v11 = vld [vmem:[%s4196_s11 + $0x4] ss:$36 sps:$4 sm:$0xff]   ;;  %v3849_v25 = vld [vmem:[%s4196_s11 + $0x4c] ss:$36 sps:$4 sm:$0xff]   ;;  %v3859_v35 = vld [vmem:[%s4196_s11 + $0x94] ss:$36 sps:$4 sm:$0xff]  }
  0x13   : > { %v3842_v12 = vld [vmem:[%s4196_s11 + $0x364] ss:$36 sps:$4 sm:$0xff]   ;;  %1740 = vmatprep.mubr.bf16.mxu0 %v3839_v11  ;;  %v3851_v26 = vld [vmem:[%s4196_s11 + $0x3ac] ss:$36 sps:$4 sm:$0xff]   ;;  %v3861_v36 = vld [vmem:[%s4196_s11 + $0x3f4] ss:$36 sps:$4 sm:$0xff]  }
  0x14   : > { %3267 = vmatpush3.bf16.msra.mxu0 %v3828_v7  ;;  %3791 = vmatpush3.bf16.msra.mxu1 %v3828_v7  ;;  %v3837_v19 = vld [vmem:[%s4196_s11] ss:$36 sps:$4 sm:$0xff]   ;;  %v3853_v29 = vld [vmem:[%s4196_s11 + $0x48] ss:$36 sps:$4 sm:$0xff]   ;;  %v3863_v38 = vld [vmem:[%s4196_s11 + $0x90] ss:$36 sps:$4 sm:$0xff]  }
  0x15   : > { %3268 = vmatprep.subr.bf16.mxu0 %v3829_v8  ;;  %3784 = vmatprep.subr.bf16.mxu1 %v3829_v8  ;;  %v3840_v20 = vld [vmem:[%s4196_s11 + $0x360] ss:$36 sps:$4 sm:$0xff]   ;;  %v3854_v30 = vld [vmem:[%s4196_s11 + $0x3a8] ss:$36 sps:$4 sm:$0xff]   ;;  %v3864_v39 = vld [vmem:[%s4196_s11 + $0x3f0] ss:$36 sps:$4 sm:$0xff]  }
  0x16   : > { %1836 = vmatprep.mubr.bf16.mxu1 %v3842_v12  ;;  %v3871_v44 = vld [vmem:[%s4196_s11 + $0xdc] ss:$36 sps:$4 sm:$0xff]   ;;  %v3877_v48 = vld [vmem:[%s4948_s1 + $0xf0] sm:$0xff]   ;;  %v3883_v53 = vld [vmem:[%s4196_s11 + $0x124] ss:$36 sps:$4 sm:$0xff]  }
  0x17   : > { %v3873_v45 = vld [vmem:[%s4196_s11 + $0x43c] ss:$36 sps:$4 sm:$0xff]   ;;  %v3878_v51 = vld [vmem:[%s4948_s1 + $0xb0] sm:$0xff]   ;;  %v3885_v58 = vld [vmem:[%s4196_s11 + $0x8] ss:$36 sps:$4 sm:$0xff]  }
  0x18   : > { %3269 = vmatpush3.bf16.msra.mxu0 %v3830_v9  ;;  %3792 = vmatpush3.bf16.msra.mxu1 %v3830_v9  ;;  %v3875_v49 = vld [vmem:[%s4196_s11 + $0xd8] ss:$36 sps:$4 sm:$0xff]   ;;  %v3887_v54 = vld [vmem:[%s4196_s11 + $0xc] ss:$36 sps:$4 sm:$0xff]   ;;  %v3888_v59 = vld [vmem:[%s4196_s11 + $0x120] ss:$36 sps:$4 sm:$0xff]  }
  0x19   : > { %3270 = vmatprep.subr.bf16.mxu0 %v3831_v10  ;;  %3785 = vmatprep.subr.bf16.mxu1 %v3831_v10  ;;  %v3876_v50 = vld [vmem:[%s4196_s11 + $0x438] ss:$36 sps:$4 sm:$0xff]   ;;  %v3889_v60 = vld [vmem:[%s4948_s1 + $0x1c0] sm:$0xff]   ;;  %v3891_v62 = vld [vmem:[%s4196_s11 + $0x16c] ss:$36 sps:$4 sm:$0xff]  }
  0x1a   : > { %v3898_v56 = vld [vmem:[%s4948_s1 + $0x118] sm:$0xff]   ;;  %v3890_v61 = vld [vmem:[%s4948_s1 + $0x180] sm:$0xff]   ;;  %v3905_v1 = vld [vmem:[%s4948_s1 + $0x1c8] sm:$0xff]  }
  0x1b   : > { %v3881_v57 = vld [vmem:[%s4948_s1 + $0xb8] sm:$0xff]   ;;  %v3907_v0 = vld [vmem:[%s4948_s1 + $0x160] sm:$0xff]   ;;  %v3906_v3 = vld [vmem:[%s4948_s1 + $0x188] sm:$0xff]  }
  0x1c   : > { %3271 = vmatpush3.bf16.msra.mxu0 %v3832_v13  ;;  %3793 = vmatpush3.bf16.msra.mxu1 %v3832_v13  ;;  %v3893_v63 = vld [vmem:[%s4196_s11 + $0x54] ss:$36 sps:$4 sm:$0xff]   ;;  %v3908_v2 = vld [vmem:[%s4948_s1 + $0x120] sm:$0xff]   ;;  %v3895_v4 = vld [vmem:[%s4196_s11 + $0x168] ss:$36 sps:$4 sm:$0xff]  }
  0x1d   : > { %3272 = vmatprep.subr.bf16.mxu0 %v3833_v14  ;;  %3786 = vmatprep.subr.bf16.mxu1 %v3833_v14  ;;  %v3896_v5 = vld [vmem:[%s4196_s11 + $0x50] ss:$36 sps:$4 sm:$0xff]   ;;  %v3901_v7 = vld [vmem:[%s4196_s11 + $0x9c] ss:$36 sps:$4 sm:$0xff]   ;;  %v3921_v8 = vld [vmem:[%s4948_s1 + $0x168] sm:$0xff]  }
  0x1e   : > { %v3899_v6 = vld [vmem:[%s4196_s11 + $0x1b4] ss:$36 sps:$4 sm:$0xff]   ;;  %v3923_v10 = vld [vmem:[%s4948_s1 + $0x128] sm:$0xff]   ;;  %v3909_v14 = vld [vmem:[%s4196_s11 + $0x1fc] ss:$36 sps:$4 sm:$0xff]  }
  0x1f   : > { %v3922_v9 = vld [vmem:[%s4948_s1 + $0x1d0] sm:$0xff]   ;;  %v3904_v13 = vld [vmem:[%s4196_s11 + $0x98] ss:$36 sps:$4 sm:$0xff]  }
  0x20   : > { %3273 = vmatpush3.bf16.msra.mxu0 %v3834_v15  ;;  %3794 = vmatpush3.bf16.msra.mxu1 %v3834_v15  ;;  %v3924_v11 = vld [vmem:[%s4948_s1 + $0x190] sm:$0xff]  }
  0x21   : > { %3274 = vmatprep.subr.bf16.mxu0 %v3835_v16  ;;  %3787 = vmatprep.subr.bf16.mxu1 %v3835_v16  ;;  %v3903_v12 = vld [vmem:[%s4196_s11 + $0x1b0] ss:$36 sps:$4 sm:$0xff]  }
  0x22   : > { %v3931_v15 = vld [vmem:[%s4948_s1 + $0x170] sm:$0xff]  }
  0x23   : > { %v3932_v16 = vld [vmem:[%s4948_s1 + $0x130] sm:$0xff]  }
  0x24   : > { %3275 = vmatpush3.bf16.msra.mxu0 %v3836_v17  ;;  %3795 = vmatpush3.bf16.msra.mxu1 %v3836_v17  ;;  %v3911_v17 = vld [vmem:[%s4196_s11 + $0xe4] ss:$36 sps:$4 sm:$0xff]  }
  0x25   : > { %3372 = vmatprep.subr.bf16.mxu1 %v3843_v18  ;;  %3484 = vmatprep.subr.bf16.mxu0 %v3846_v21  ;;  %v3939_v18 = vld [vmem:[%s4948_s1 + $0x1d8] sm:$0xff]   ;;  %v3914_v21 = vld [vmem:[%s4196_s11 + $0xe0] ss:$36 sps:$4 sm:$0xff]  }
  0x27   : > { %1741 = vmatmul.mubr.bf16.vlgmr.msra.gmra.mrb[0].mxu0 %v3837_v19  ;;  %1837 = vmatmul.mubr.bf16.vlgmr.msra.gmra.mrb[0].mxu1 %v3840_v20  ;;  %v3940_v19 = vld [vmem:[%s4948_s1 + $0x198] sm:$0xff]  }
  0x28   : > { %3373 = vmatpush3.bf16.msra.mxu1 %v3844_v22  ;;  %3485 = vmatpush3.bf16.msra.mxu0 %v3848_v24  ;;  %v3913_v20 = vld [vmem:[%s4196_s11 + $0x1f8] ss:$36 sps:$4 sm:$0xff]   ;;  %v3915_v22 = vld [vmem:[%s4196_s11 + $0x244] ss:$36 sps:$4 sm:$0xff]  }
  0x29   : > { %3374 = vmatprep.subr.bf16.mxu1 %v3845_v23  ;;  %1748 = vmatprep.mubr.bf16.mxu0 %v3849_v25  ;;  %v3917_v23 = vld [vmem:[%s4196_s11 + $0x12c] ss:$36 sps:$4 sm:$0xff]   ;;  %v3947_v24 = vld [vmem:[%s4948_s1 + $0x178] sm:$0xff]  }
  0x2a   : > { %1844 = vmatprep.mubr.bf16.mxu1 %v3851_v26  ;;  %3486 = vmatprep.subr.bf16.mxu0 %v3866_v28  ;;  %v3948_v25 = vld [vmem:[%s4948_s1 + $0x138] sm:$0xff]   ;;  %v3955_v26 = vld [vmem:[%s4948_s1 + $0x1e0] sm:$0xff]  }
  0x2b   : > { %v3956_v28 = vld [vmem:[%s4948_s1 + $0x1a0] sm:$0xff]  }
  0x2c   : > { %3375 = vmatpush3.bf16.msra.mxu1 %v3847_v27  ;;  %3487 = vmatpush3.bf16.msra.mxu0 %v3868_v33  ;;  %v3919_v27 = vld [vmem:[%s4196_s11 + $0x240] ss:$36 sps:$4 sm:$0xff]   ;;  %v3970_v33 = vld [vmem:[%s4948_s1 + $0x1e8] sm:$0xff]  }
  0x2d   : > { %3376 = vmatprep.subr.bf16.mxu1 %v3855_v31  ;;  %3488 = vmatprep.subr.bf16.mxu0 %v3880_v43  ;;  %v3925_v31 = vld [vmem:[%s4196_s11 + $0x28c] ss:$36 sps:$4 sm:$0xff]   ;;  %v3941_v43 = vld [vmem:[%s4196_s11 + $0x31c] ss:$36 sps:$4 sm:$0xff]  }
  0x2f   : > { %1749 = vmatmul.mubr.bf16.gmra.mrb[4].mxu0 %v3853_v29  ;;  %1845 = vmatmul.mubr.bf16.gmra.mrb[4].mxu1 %v3854_v30  ;;  %v3957_v29 = vld [vmem:[%s4948_s1 + $0x200] sm:$0xff]   ;;  %v3920_v30 = vld [vmem:[%s4196_s11 + $0x128] ss:$36 sps:$4 sm:$0xff]  }
  0x30   : > { %3377 = vmatpush3.bf16.msra.mxu1 %v3856_v32  ;;  %1756 = vmatprep.mubr.bf16.mxu0 %v3859_v35  ;;  %v3927_v32 = vld [vmem:[%s4196_s11 + $0x174] ss:$36 sps:$4 sm:$0xff]   ;;  %v3971_v35 = vld [vmem:[%s4948_s1 + $0x1a8] sm:$0xff]  }
  0x31   : > { %3378 = vmatprep.subr.bf16.mxu1 %v3857_v34  ;;  %1852 = vmatprep.mubr.bf16.mxu1 %v3861_v36  ;;  %v3929_v34 = vld [vmem:[%s4196_s11 + $0x288] ss:$36 sps:$4 sm:$0xff]   ;;  %v3930_v36 = vld [vmem:[%s4196_s11 + $0x170] ss:$36 sps:$4 sm:$0xff]  }
  0x32   : > { %3489 = vmatpush3.bf16.msra.mxu0 %v3882_v46  ;;  %v3946_v46 = vld [vmem:[%s4196_s11 + $0x200] ss:$36 sps:$4 sm:$0xff]  }
  0x33   : > { %3490 = vmatprep.subr.bf16.mxu0 %v3897_v55  ;;  %v3972_v55 = vld [vmem:[%s4948_s1 + $0x208] sm:$0xff]  }
  0x34   : > { %3379 = vmatpush3.bf16.msra.mxu1 %v3858_v37  ;;  %v3933_v37 = vld [vmem:[%s4196_s11 + $0x2d4] ss:$36 sps:$4 sm:$0xff]  }
  0x35   : > { %3380 = vmatprep.subr.bf16.mxu1 %v3865_v40  ;;  %v3938_v40 = vld [vmem:[%s4196_s11 + $0x1b8] ss:$36 sps:$4 sm:$0xff]  }
  0x36   : > { %3491 = vmatpush3.bf16.msra.mxu0 %v3898_v56  ;;  %v3987_v56 = vld [vmem:[%s4948_s1 + $0x210] sm:$0xff]  }
  0x37   : > { %1757 = vmatmul.mubr.bf16.gmra.mrb[8].mxu0 %v3863_v38  ;;  %1853 = vmatmul.mubr.bf16.gmra.mrb[8].mxu1 %v3864_v39  ;;  %v3935_v38 = vld [vmem:[%s4196_s11 + $0x1bc] ss:$36 sps:$4 sm:$0xff]   ;;  %v3937_v39 = vld [vmem:[%s4196_s11 + $0x2d0] ss:$36 sps:$4 sm:$0xff]  }
  0x38   : > { %3381 = vmatpush3.bf16.msra.mxu1 %v3867_v41  ;;  %1764 = vmatprep.mubr.bf16.mxu0 %v3871_v44  ;;  %v3985_v41 = vld [vmem:[%s4948_s1 + $0x1f0] sm:$0xff]   ;;  %v3943_v44 = vld [vmem:[%s4196_s11 + $0x204] ss:$36 sps:$4 sm:$0xff]  }
  0x39   : > { %3382 = vmatprep.subr.bf16.mxu1 %v3869_v42  ;;  %1860 = vmatprep.mubr.bf16.mxu1 %v3873_v45  ;;  %v3986_v42 = vld [vmem:[%s4948_s1 + $0x1b0] sm:$0xff]   ;;  %v3945_v45 = vld [vmem:[%s4196_s11 + $0x318] ss:$36 sps:$4 sm:$0xff]  }
  0x3a   : > { %3492 = vmatprep.subr.bf16.mxu0 %v3907_v0  ;;  %v3969_v0 = vld [vmem:[%s4196_s11 + $0xa0] ss:$36 sps:$4 sm:$0xff]  }
  0x3b   : > { %3493 = vmatpush3.bf16.msra.mxu0 %v3908_v2  ;;  %v3975_v2 = vld [vmem:[%s4196_s11 + $0xec] ss:$36 sps:$4 sm:$0xff]  }
  0x3c   : > { %3383 = vmatpush3.bf16.msra.mxu1 %v3870_v47  ;;  %3494 = vmatprep.subr.bf16.mxu0 %v3921_v8  ;;  %v4000_v47 = vld [vmem:[%s4948_s1 + $0x1f8] sm:$0xff]  }
  0x3d   : > { %3384 = vmatprep.subr.bf16.mxu1 %v3877_v48  ;;  %v4001_v48 = vld [vmem:[%s4948_s1 + $0x1b8] sm:$0xff]  }
  0x3e   : > { %v3981_v8 = vld [vmem:[%s4196_s11 + $0x134] ss:$36 sps:$4 sm:$0xff]  }
  0x3f   : > { %1765 = vmatmul.mubr.bf16.gmra.mrb[12].mxu0 %v3875_v49  ;;  %1861 = vmatmul.mubr.bf16.gmra.mrb[12].mxu1 %v3876_v50  ;;  %v3949_v49 = vld [vmem:[%s4196_s11 + $0x24c] ss:$36 sps:$4 sm:$0xff]   ;;  %v3953_v50 = vld [vmem:[%s4196_s11 + $0x14] ss:$36 sps:$4 sm:$0xff]  }
  0x40   : > { %3385 = vmatpush3.bf16.msra.mxu1 %v3878_v51  ;;  %1772 = vmatprep.mubr.bf16.mxu0 %v3883_v53  ;;  %v3951_v51 = vld [vmem:[%s4196_s11 + $0x10] ss:$36 sps:$4 sm:$0xff]  }
  0x41   : > { %3386 = vmatprep.subr.bf16.mxu1 %v3879_v52  ;;  %1901 = vmatprep.mubr.bf16.mxu1 %v3887_v54  ;;  %v3954_v52 = vld [vmem:[%s4196_s11 + $0x248] ss:$36 sps:$4 sm:$0xff]   ;;  %v3958_v53 = vld [vmem:[%s4196_s11 + $0x294] ss:$36 sps:$4 sm:$0xff]   ;;  %v3960_v54 = vld [vmem:[%s4196_s11 + $0x5c] ss:$36 sps:$4 sm:$0xff]  }
  0x42   : > { %3495 = vmatpush3.bf16.msra.mxu0 %v3923_v10  ;;  %v3983_v10 = vld [vmem:[%s4196_s11 + $0x368] ss:$36 sps:$4 sm:$0xff]  }
  0x43   : > { %3496 = vmatprep.subr.bf16.mxu0 %v3931_v15  ;;  %v3993_v15 = vld [vmem:[%s4196_s11 + $0x178] ss:$36 sps:$4 sm:$0xff]  }
  0x44   : > { %3387 = vmatpush3.bf16.msra.mxu1 %v3881_v57  ;;  %v3962_v57 = vld [vmem:[%s4196_s11 + $0x290] ss:$36 sps:$4 sm:$0xff]  }
  0x45   : > { %3596 = vmatprep.subr.bf16.mxu1 %v3889_v60  ;;  %v3966_v60 = vld [vmem:[%s4196_s11 + $0xa4] ss:$36 sps:$4 sm:$0xff]  }
  0x46   : > { %3497 = vmatpush3.bf16.msra.mxu0 %v3932_v16  ;;  %v3994_v16 = vld [vmem:[%s4196_s11 + $0x3fc] ss:$36 sps:$4 sm:$0xff]  }
  0x47   : > { %1773 = vmatmul.mubr.bf16.gmra.mrb[16].mxu0 %v3888_v59  ;;  %1902 = vmatmul.mubr.bf16.vlgmr.msra.gmra.mrb[16].mxu1 %v3885_v58  ;;  %v3963_v58 = vld [vmem:[%s4196_s11 + $0x58] ss:$36 sps:$4 sm:$0xff]  }
  0x48   : > { %3597 = vmatpush3.bf16.msra.mxu1 %v3890_v61  ;;  %1780 = vmatprep.mubr.bf16.mxu0 %v3891_v62  ;;  %v3964_v59 = vld [vmem:[%s4196_s11 + $0x2dc] ss:$36 sps:$4 sm:$0xff]  }
  0x49   : > { %1909 = vmatprep.mubr.bf16.mxu1 %v3893_v63  ;;  %3598 = vmatprep.subr.bf16.mxu1 %v3905_v1  ;;  %v4002_v61 = vld [vmem:[%s4948_s1 + $0x218] sm:$0xff]   ;;  %v4015_v62 = vld [vmem:[%s4948_s1 + $0x220] sm:$0xff]  }
  0x4a   : > { %3498 = vmatprep.subr.bf16.mxu0 %v3947_v24  ;;  %v3968_v63 = vld [vmem:[%s4196_s11 + $0x2d8] ss:$36 sps:$4 sm:$0xff]   ;;  %v3973_v1 = vld [vmem:[%s4196_s11 + $0x324] ss:$36 sps:$4 sm:$0xff]  }
  0x4b   : > { %3499 = vmatpush3.bf16.msra.mxu0 %v3948_v25  ;;  %v4009_v24 = vld [vmem:[%s4196_s11 + $0x254] ss:$36 sps:$4 sm:$0xff]   ;;  %v4013_v25 = vld [vmem:[%s4196_s11 + $0x1c] ss:$36 sps:$4 sm:$0xff]  }
  0x4c   : > { %3599 = vmatpush3.bf16.msra.mxu1 %v3906_v3  ;;  %3732 = vmatprep.subr.bf16.mxu0 %v3957_v29  ;;  %v4028_v3 = vld [vmem:[%s4948_s1 + $0x228] sm:$0xff]  }
  0x4d   : > { %3600 = vmatprep.subr.bf16.mxu1 %v3922_v9  ;;  %v4054_v9 = vld [vmem:[%s4948_s1 + $0x238] sm:$0xff]  }
  0x4f   : > { %1781 = vmatmul.mubr.bf16.gmra.mrb[20].mxu0 %v3895_v4  ;;  %1910 = vmatmul.mubr.bf16.gmra.mrb[20].mxu1 %v3896_v5  ;;  %v3977_v4 = vld [vmem:[%s4196_s11 + $0x320] ss:$36 sps:$4 sm:$0xff]   ;;  %v3978_v5 = vld [vmem:[%s4196_s11 + $0xe8] ss:$36 sps:$4 sm:$0xff]  }
  0x50   : > { %1788 = vmatprep.mubr.bf16.mxu0 %v3899_v6  ;;  %1917 = vmatprep.mubr.bf16.mxu1 %v3901_v7  ;;  %v4041_v6 = vld [vmem:[%s4948_s1 + $0x230] sm:$0xff]  }
  0x51   : > { %3601 = vmatpush3.bf16.msra.mxu1 %v3924_v11  ;;  %v3979_v7 = vld [vmem:[%s4196_s11 + $0x36c] ss:$36 sps:$4 sm:$0xff]  }
  0x52   : > { %3602 = vmatprep.subr.bf16.mxu1 %v3939_v18  ;;  %v3984_v11 = vld [vmem:[%s4196_s11 + $0x130] ss:$36 sps:$4 sm:$0xff]   ;;  %v3998_v18 = vld [vmem:[%s4196_s11 + $0x3f8] ss:$36 sps:$4 sm:$0xff]  }
  0x55   : > { %3603 = vmatpush3.bf16.msra.mxu1 %v3940_v19  ;;  %v3999_v19 = vld [vmem:[%s4196_s11 + $0x1c0] ss:$36 sps:$4 sm:$0xff]  }
  0x56   : > { %3604 = vmatprep.subr.bf16.mxu1 %v3955_v26  ;;  %v4011_v26 = vld [vmem:[%s4196_s11 + $0x18] ss:$36 sps:$4 sm:$0xff]  }
  0x57   : > { %1789 = vmatmul.mubr.bf16.gmra.mrb[24].mxu0 %v3903_v12  ;;  %1918 = vmatmul.mubr.bf16.gmra.mrb[24].mxu1 %v3904_v13  ;;  %v3988_v12 = vld [vmem:[%s4196_s11 + $0x3b4] ss:$36 sps:$4 sm:$0xff]   ;;  %v3990_v13 = vld [vmem:[%s4196_s11 + $0x17c] ss:$36 sps:$4 sm:$0xff]  }
  0x58   : > { %1796 = vmatprep.mubr.bf16.mxu0 %v3909_v14  ;;  %1925 = vmatprep.mubr.bf16.mxu1 %v3911_v17  ;;  %v3992_v14 = vld [vmem:[%s4196_s11 + $0x3b0] ss:$36 sps:$4 sm:$0xff]   ;;  %v3996_v17 = vld [vmem:[%s4196_s11 + $0x1c4] ss:$36 sps:$4 sm:$0xff]  }
  0x59   : > { %3605 = vmatpush3.bf16.msra.mxu1 %v3956_v28  ;;  %v4016_v28 = vld [vmem:[%s4196_s11 + $0x29c] ss:$36 sps:$4 sm:$0xff]  }
  0x5a   : > { %3606 = vmatprep.subr.bf16.mxu1 %v3970_v33  ;;  %v4024_v33 = vld [vmem:[%s4196_s11 + $0xac] ss:$36 sps:$4 sm:$0xff]  }
  0x5d   : > { %3607 = vmatpush3.bf16.msra.mxu1 %v3971_v35  ;;  %v4027_v35 = vld [vmem:[%s4196_s11 + $0xa8] ss:$36 sps:$4 sm:$0xff]  }
  0x5e   : > { %3608 = vmatprep.subr.bf16.mxu1 %v3985_v41  ;;  %v4037_v41 = vld [vmem:[%s4196_s11 + $0x13c] ss:$36 sps:$4 sm:$0xff]  }
  0x5f   : > { %1797 = vmatmul.mubr.bf16.gmra.mrb[28].mxu0 %v3913_v20  ;;  %1926 = vmatmul.mubr.bf16.gmra.mrb[28].mxu1 %v3914_v21  ;;  %v4003_v20 = vld [vmem:[%s4196_s11 + $0x444] ss:$36 sps:$4 sm:$0xff]   ;;  %v4005_v21 = vld [vmem:[%s4196_s11 + $0x20c] ss:$36 sps:$4 sm:$0xff]  }
  0x60   : > { %1804 = vmatprep.mubr.bf16.mxu0 %v3915_v22  ;;  %1933 = vmatprep.mubr.bf16.mxu1 %v3917_v23  ;;  %v4007_v22 = vld [vmem:[%s4196_s11 + $0x440] ss:$36 sps:$4 sm:$0xff]   ;;  %v4008_v23 = vld [vmem:[%s4196_s11 + $0x208] ss:$36 sps:$4 sm:$0xff]  }
  0x61   : > { %3609 = vmatpush3.bf16.msra.mxu1 %v3986_v42  ;;  %v4039_v42 = vld [vmem:[%s4196_s11 + $0x370] ss:$36 sps:$4 sm:$0xff]  }
  0x62   : > { %3610 = vmatprep.subr.bf16.mxu1 %v4000_v47  ;;  %v4047_v47 = vld [vmem:[%s4196_s11 + $0x180] ss:$36 sps:$4 sm:$0xff]  }
  0x65   : > { %3611 = vmatpush3.bf16.msra.mxu1 %v4001_v48  ;;  %v4048_v48 = vld [vmem:[%s4196_s11 + $0x404] ss:$36 sps:$4 sm:$0xff]  }
  0x67   : > { %1805 = vmatmul.mubr.bf16.gmra.mrb[32].mxu0 %v3919_v27  ;;  %1934 = vmatmul.mubr.bf16.gmra.mrb[32].mxu1 %v3920_v30  ;;  %v4014_v27 = vld [vmem:[%s4196_s11 + $0x250] ss:$36 sps:$4 sm:$0xff]   ;;  %v4020_v30 = vld [vmem:[%s4196_s11 + $0x298] ss:$36 sps:$4 sm:$0xff]  }
  0x68   : > { %1812 = vmatprep.mubr.bf16.mxu0 %v3925_v31  ;;  %1941 = vmatprep.mubr.bf16.mxu1 %v3927_v32  ;;  %v4021_v31 = vld [vmem:[%s4196_s11 + $0x60] ss:$36 sps:$4 sm:$0xff]  }
  0x69   : > { %v4022_v32 = vld [vmem:[%s4196_s11 + $0x2e4] ss:$36 sps:$4 sm:$0xff]  }
  0x6f   : > { %1813 = vmatmul.mubr.bf16.gmra.mrb[36].mxu0 %v3929_v34  ;;  %1942 = vmatmul.mubr.bf16.gmra.mrb[36].mxu1 %v3930_v36  ;;  %v4026_v34 = vld [vmem:[%s4196_s11 + $0x2e0] ss:$36 sps:$4 sm:$0xff]   ;;  %v4029_v36 = vld [vmem:[%s4196_s11 + $0x32c] ss:$36 sps:$4 sm:$0xff]  }
  0x70   : > { %1820 = vmatprep.mubr.bf16.mxu0 %v3933_v37  ;;  %1949 = vmatprep.mubr.bf16.mxu1 %v3935_v38  ;;  %v4031_v37 = vld [vmem:[%s4196_s11 + $0xf4] ss:$36 sps:$4 sm:$0xff]   ;;  %v4033_v38 = vld [vmem:[%s4196_s11 + $0x328] ss:$36 sps:$4 sm:$0xff]  }
  0x77   : > { %1821 = vmatmul.mubr.bf16.gmra.mrb[40].mxu0 %v3937_v39  ;;  %1950 = vmatmul.mubr.bf16.gmra.mrb[40].mxu1 %v3938_v40  ;;  %v4034_v39 = vld [vmem:[%s4196_s11 + $0xf0] ss:$36 sps:$4 sm:$0xff]  }
  0x78   : > { %1828 = vmatprep.mubr.bf16.mxu0 %v3941_v43  ;;  %1957 = vmatprep.mubr.bf16.mxu1 %v3943_v44  ;;  %v4035_v40 = vld [vmem:[%s4196_s11 + $0x374] ss:$36 sps:$4 sm:$0xff]   ;;  %v4042_v44 = vld [vmem:[%s4196_s11 + $0x3bc] ss:$36 sps:$4 sm:$0xff]  }
  0x79   : > { %v4040_v43 = vld [vmem:[%s4196_s11 + $0x138] ss:$36 sps:$4 sm:$0xff]  }
  0x7f   : > { %1829 = vmatmul.mubr.bf16.gmra.mrb[44].mxu0 %v3945_v45  ;;  %1958 = vmatmul.mubr.bf16.gmra.mrb[44].mxu1 %v3946_v46  ;;  %v4044_v45 = vld [vmem:[%s4196_s11 + $0x184] ss:$36 sps:$4 sm:$0xff]   ;;  %v4046_v46 = vld [vmem:[%s4196_s11 + $0x3b8] ss:$36 sps:$4 sm:$0xff]  }
  0x80   : > { %1965 = vmatprep.mubr.bf16.mxu1 %v3949_v49  ;;  %2062 = vmatprep.mubr.bf16.mxu0 %v3953_v50  ;;  %v4050_v49 = vld [vmem:[%s4196_s11 + $0x1cc] ss:$36 sps:$4 sm:$0xff]   ;;  %v4052_v50 = vld [vmem:[%s4196_s11 + $0x400] ss:$36 sps:$4 sm:$0xff]  }
  0x87   : > { %1966 = vmatmul.mubr.bf16.gmra.mrb[48].mxu1 %v3954_v52  ;;  %2063 = vmatmul.mubr.bf16.vlgmr.msra.gmra.mrb[48].mxu0 %v3951_v51  ;;  %v4053_v51 = vld [vmem:[%s4196_s11 + $0x1c8] ss:$36 sps:$4 sm:$0xff]  }
  0x88   : > { %3733 = vmatpush3.bf16.msra.mxu0 %v3957_v29  ;;  %1973 = vmatprep.mubr.bf16.mxu1 %v3958_v53  ;;  %v4018_v29 = vld [vmem:[%s4196_s11 + $0x64] ss:$36 sps:$4 sm:$0xff]   ;;  %v4055_v52 = vld [vmem:[%s4196_s11 + $0x44c] ss:$36 sps:$4 sm:$0xff]   ;;  %v4057_v53 = vld [vmem:[%s4196_s11 + $0x214] ss:$36 sps:$4 sm:$0xff]  }
  0x89   : > { %2070 = vmatprep.mubr.bf16.mxu0 %v3960_v54  ;;  %3734 = vmatprep.subr.bf16.mxu0 %v3972_v55 }
  0x8c   : > { %3735 = vmatpush3.bf16.msra.mxu0 %v3972_v55 }
  0x8d   : > { %3736 = vmatprep.subr.bf16.mxu0 %v3987_v56 }
  0x8f   : > { %1974 = vmatmul.mubr.bf16.gmra.mrb[52].mxu1 %v3962_v57  ;;  %2071 = vmatmul.mubr.bf16.gmra.mrb[52].mxu0 %v3963_v58  ;;  %v4059_v58 = vld [vmem:[%s4196_s11 + $0x448] ss:$36 sps:$4 sm:$0xff]  }
  0x90   : > { %1981 = vmatprep.mubr.bf16.mxu1 %v3964_v59  ;;  %2078 = vmatprep.mubr.bf16.mxu0 %v3966_v60  ;;  %v4060_v59 = vld [vmem:[%s4196_s11 + $0x210] ss:$36 sps:$4 sm:$0xff]  }
  0x91   : > { %3737 = vmatpush3.bf16.msra.mxu0 %v3987_v56 }
  0x92   : > { %3738 = vmatprep.subr.bf16.mxu0 %v4002_v61 }
  0x95   : > { %3739 = vmatpush3.bf16.msra.mxu0 %v4002_v61 }
  0x96   : > { %3740 = vmatprep.subr.bf16.mxu0 %v4015_v62 }
  0x97   : > { %1982 = vmatmul.mubr.bf16.gmra.mrb[56].mxu1 %v3968_v63  ;;  %2079 = vmatmul.mubr.bf16.gmra.mrb[56].mxu0 %v3969_v0  ;;  %v4061_v0 = vld [vmem:[%s4196_s11 + $0x25c] ss:$36 sps:$4 sm:$0xff]  }
  0x98   : > { %1989 = vmatprep.mubr.bf16.mxu1 %v3973_v1  ;;  %2086 = vmatprep.mubr.bf16.mxu0 %v3975_v2  ;;  %v4063_v1 = vld [vmem:[%s4196_s11 + $0x20] ss:$36 sps:$4 sm:$0xff]  }
  0x99   : > { %3741 = vmatpush3.bf16.msra.mxu0 %v4015_v62 }
  0x9a   : > { %3742 = vmatprep.subr.bf16.mxu0 %v4028_v3 }
  0x9d   : > { %3743 = vmatpush3.bf16.msra.mxu0 %v4028_v3 }
  0x9e   : > { %3744 = vmatprep.subr.bf16.mxu0 %v4041_v6 }
  0x9f   : > { %1990 = vmatmul.mubr.bf16.gmra.mrb[60].mxu1 %v3977_v4  ;;  %2087 = vmatmul.mubr.bf16.gmra.mrb[60].mxu0 %v3978_v5 }
  0xa0   : > { %1997 = vmatprep.mubr.bf16.mxu1 %v3979_v7  ;;  %2094 = vmatprep.mubr.bf16.mxu0 %v3981_v8 }
  0xa1   : > { %3745 = vmatpush3.bf16.msra.mxu0 %v4041_v6 }
  0xa2   : > { %3746 = vmatprep.subr.bf16.mxu0 %v4054_v9 }
  0xa5   : > { %3747 = vmatpush3.bf16.msra.mxu0 %v4054_v9 }
  0xa7   : > { %1998 = vmatmul.mubr.bf16.gmra.mrb[64].mxu1 %v3983_v10  ;;  %2095 = vmatmul.mubr.bf16.gmra.mrb[64].mxu0 %v3984_v11  ;;  %v4064_v10 = vld [vmem:[%s4196_s11 + $0x258] ss:$36 sps:$4 sm:$0xff]   ;;  %v4065_v11 = vld [vmem:[%s4196_s11 + $0x68] ss:$36 sps:$4 sm:$0xff]  }
  0xa8   : > { %2005 = vmatprep.mubr.bf16.mxu1 %v3988_v12  ;;  %2102 = vmatprep.mubr.bf16.mxu0 %v3990_v13 }
  0xaf   : > { %2006 = vmatmul.mubr.bf16.gmra.mrb[68].mxu1 %v3992_v14  ;;  %2103 = vmatmul.mubr.bf16.gmra.mrb[68].mxu0 %v3993_v15 }
  0xb0   : > { %2013 = vmatprep.mubr.bf16.mxu1 %v3994_v16  ;;  %2110 = vmatprep.mubr.bf16.mxu0 %v3996_v17  ;;  %v4066_v16 = vld [vmem:[%s4196_s11 + $0x2a4] ss:$36 sps:$4 sm:$0xff]   ;;  %v4068_v17 = vld [vmem:[%s4196_s11 + $0xb0] ss:$36 sps:$4 sm:$0xff]  }
  0xb7   : > { %2014 = vmatmul.mubr.bf16.gmra.mrb[72].mxu1 %v3998_v18  ;;  %2111 = vmatmul.mubr.bf16.gmra.mrb[72].mxu0 %v3999_v19 }
  0xb8   : > { %2021 = vmatprep.mubr.bf16.mxu1 %v4003_v20  ;;  %2118 = vmatprep.mubr.bf16.mxu0 %v4005_v21 }
  0xbf   : > { %2022 = vmatmul.mubr.bf16.gmra.mrb[76].mxu1 %v4007_v22  ;;  %2119 = vmatmul.mubr.bf16.gmra.mrb[76].mxu0 %v4008_v23 }
  0xc0   : > { %2126 = vmatprep.mubr.bf16.mxu0 %v4009_v24  ;;  %2223 = vmatprep.mubr.bf16.mxu1 %v4013_v25 }
  0xc7   : > { %2127 = vmatmul.mubr.bf16.gmra.mrb[80].mxu0 %v4014_v27  ;;  %2224 = vmatmul.mubr.bf16.vlgmr.msra.gmra.mrb[80].mxu1 %v4011_v26  ;;  %v4069_v26 = vld [vmem:[%s4196_s11 + $0x2a0] ss:$36 sps:$4 sm:$0xff]   ;;  %v4070_v27 = vld [vmem:[%s4196_s11 + $0xf8] ss:$36 sps:$4 sm:$0xff]  }
  0xc8   : > { %2134 = vmatprep.mubr.bf16.mxu0 %v4016_v28  ;;  %2231 = vmatprep.mubr.bf16.mxu1 %v4018_v29 }
  0xcf   : > { %2135 = vmatmul.mubr.bf16.gmra.mrb[84].mxu0 %v4020_v30  ;;  %2232 = vmatmul.mubr.bf16.gmra.mrb[84].mxu1 %v4021_v31 }
  0xd0   : > { %2142 = vmatprep.mubr.bf16.mxu0 %v4022_v32  ;;  %2239 = vmatprep.mubr.bf16.mxu1 %v4024_v33  ;;  %v4071_v32 = vld [vmem:[%s4196_s11 + $0x2ec] ss:$36 sps:$4 sm:$0xff]   ;;  %v4073_v33 = vld [vmem:[%s4196_s11 + $0x140] ss:$36 sps:$4 sm:$0xff]  }
  0xd7   : > { %2143 = vmatmul.mubr.bf16.gmra.mrb[88].mxu0 %v4026_v34  ;;  %2240 = vmatmul.mubr.bf16.gmra.mrb[88].mxu1 %v4027_v35 }
  0xd8   : > { %2150 = vmatprep.mubr.bf16.mxu0 %v4029_v36  ;;  %2247 = vmatprep.mubr.bf16.mxu1 %v4031_v37 }
  0xdf   : > { %2151 = vmatmul.mubr.bf16.gmra.mrb[92].mxu0 %v4033_v38  ;;  %2248 = vmatmul.mubr.bf16.gmra.mrb[92].mxu1 %v4034_v39 }
  0xe0   : > { %2158 = vmatprep.mubr.bf16.mxu0 %v4035_v40  ;;  %2255 = vmatprep.mubr.bf16.mxu1 %v4037_v41 }
  0xe7   : > { %2159 = vmatmul.mubr.bf16.gmra.mrb[96].mxu0 %v4039_v42  ;;  %2256 = vmatmul.mubr.bf16.gmra.mrb[96].mxu1 %v4040_v43  ;;  %v4074_v42 = vld [vmem:[%s4196_s11 + $0x2e8] ss:$36 sps:$4 sm:$0xff]  }
  0xe8   : > { %2166 = vmatprep.mubr.bf16.mxu0 %v4042_v44  ;;  %2263 = vmatprep.mubr.bf16.mxu1 %v4044_v45  ;;  %v4075_v43 = vld [vmem:[%s4196_s11 + $0x188] ss:$36 sps:$4 sm:$0xff]  }
  0xef   : > { %2167 = vmatmul.mubr.bf16.gmra.mrb[100].mxu0 %v4046_v46  ;;  %2264 = vmatmul.mubr.bf16.gmra.mrb[100].mxu1 %v4047_v47 }
  0xf0   : > { %2174 = vmatprep.mubr.bf16.mxu0 %v4048_v48  ;;  %2271 = vmatprep.mubr.bf16.mxu1 %v4050_v49  ;;  %v4076_v48 = vld [vmem:[%s4196_s11 + $0x334] ss:$36 sps:$4 sm:$0xff]  }
  0xf1   : > { %v4078_v49 = vld [vmem:[%s4196_s11 + $0x1d0] ss:$36 sps:$4 sm:$0xff]  }
  0xf7   : > { %2175 = vmatmul.mubr.bf16.gmra.mrb[104].mxu0 %v4052_v50  ;;  %2272 = vmatmul.mubr.bf16.gmra.mrb[104].mxu1 %v4053_v51 }
  0xf8   : > { %2182 = vmatprep.mubr.bf16.mxu0 %v4055_v52  ;;  %2279 = vmatprep.mubr.bf16.mxu1 %v4057_v53 }
  0xfa   : > { %v3348_v54 = vpop.f32.mrb[0].mxu1  ;;  %v3276_v55 = vpop.f32.mrb[0].mxu0 }
  0xfb   : > { %v3349_v56 = vpop.f32.mrb[1].mxu1  ;;  %v3277_v57 = vpop.f32.mrb[1].mxu0 }
  0xfc   : > { %v4499_v60 = vadd.f32 %v3349_v56, %v3348_v54  ;;  %v3351_v61 = vpop.f32.mrb[2].mxu1  ;;  %v4501_v62 = vadd.f32 %v3277_v57, %v3276_v55  ;;  %v3279_v63 = vpop.f32.mrb[2].mxu0  ;;  %v4548_v54 = vld [vmem:[%s4949_s2] ss:$0 sm:$0xff] }
  0xfd   : > { %v3352_v2 = vpop.f32.mrb[3].mxu1  ;;  %v3280_v3 = vpop.f32.mrb[3].mxu0 }
  0xfe   : > { %v4505_v4 = vadd.f32 %v3352_v2, %v3351_v61  ;;  %v4507_v5 = vadd.f32 %v3280_v3, %v3279_v63  ;;  %v4080_v61 = vld [vmem:[%s4196_s11 + $0x218] ss:$36 sps:$4 sm:$0xff]   ;;  %v1743_v63 = vadd.f32 %v4501_v62, %v4548_v54 }
  0xff   : > { %2183 = vmatmul.mubr.bf16.gmra.mrb[108].mxu0 %v4059_v58  ;;  %2280 = vmatmul.mubr.bf16.gmra.mrb[108].mxu1 %v4060_v59  ;;  %v4079_v59 = vld [vmem:[%s4196_s11 + $0x330] ss:$36 sps:$4 sm:$0xff]  }
 0x100   : > { %2287 = vmatprep.mubr.bf16.mxu1 %v4061_v0  ;;  %3748 = vmatprep.mubr.bf16.mxu0 %v4063_v1 }
 0x102   : > { %v3354_v6 = vpop.f32.mrb[4].mxu1  ;;  %v3282_v7 = vpop.f32.mrb[4].mxu0 }
 0x103   : > { %v3355_v8 = vpop.f32.mrb[5].mxu1  ;;  %v3283_v9 = vpop.f32.mrb[5].mxu0 }
 0x104   : > { %v4511_v12 = vadd.f32 %v3355_v8, %v3354_v6  ;;  %v3357_v13 = vpop.f32.mrb[6].mxu1  ;;  %v4513_v14 = vadd.f32 %v3283_v9, %v3282_v7  ;;  %v3285_v15 = vpop.f32.mrb[6].mxu0  ;;  %v4081_v6 = vld [vmem:[%s4196_s11 + $0x37c] ss:$36 sps:$4 sm:$0xff]  }
 0x105   : > { %v3358_v18 = vpop.f32.mrb[7].mxu1  ;;  %v3286_v19 = vpop.f32.mrb[7].mxu0  ;;  %v4083_v7 = vld [vmem:[%s4196_s11 + $0x260] ss:$36 sps:$4 sm:$0xff]  }
 0x106   : > { %v4517_v20 = vadd.f32 %v3358_v18, %v3357_v13  ;;  %v4519_v21 = vadd.f32 %v3286_v19, %v3285_v15 }
 0x107   : > { %2288 = vmatmul.mubr.bf16.gmra.mrb[112].mxu1 %v4064_v10  ;;  %3749 = vmatmul.mubr.bf16.vlgmr.msra.gmra.mrb[112].mxu0 %v4065_v11  ;;  %v1746_v10 = vadd.f32 %v4507_v5, %v4548_v54  ;;  %v1751_v5 = vadd.f32 %v4513_v14, %v4548_v54 }
 0x108   : > { %2295 = vmatprep.mubr.bf16.mxu1 %v4066_v16  ;;  %3752 = vmatprep.mubr.bf16.mxu0 %v4068_v17 }
 0x10a   : > { %v3360_v22 = vpop.f32.mrb[8].mxu1  ;;  %v3288_v23 = vpop.f32.mrb[8].mxu0 }
 0x10b   : > { %v3361_v24 = vpop.f32.mrb[9].mxu1  ;;  %v3289_v25 = vpop.f32.mrb[9].mxu0 }
 0x10c   : > { %v4523_v28 = vadd.f32 %v3361_v24, %v3360_v22  ;;  %v3363_v29 = vpop.f32.mrb[10].mxu1  ;;  %v4525_v30 = vadd.f32 %v3289_v25, %v3288_v23  ;;  %v3291_v31 = vpop.f32.mrb[10].mxu0  ;;  %v4084_v22 = vld [vmem:[%s4196_s11 + $0x378] ss:$36 sps:$4 sm:$0xff]   ;;  %v4085_v23 = vld [vmem:[%s4196_s11 + $0x2a8] ss:$36 sps:$4 sm:$0xff]  }
 0x10d   : > { %v3364_v34 = vpop.f32.mrb[11].mxu1  ;;  %v3292_v35 = vpop.f32.mrb[11].mxu0 }
 0x10e   : > { %v4529_v36 = vadd.f32 %v3364_v34, %v3363_v29  ;;  %v4531_v37 = vadd.f32 %v3292_v35, %v3291_v31  ;;  %v4086_v29 = vld [vmem:[%s4196_s11 + $0x3c4] ss:$36 sps:$4 sm:$0xff]   ;;  %v4088_v31 = vld [vmem:[%s4196_s11 + $0x2f0] ss:$36 sps:$4 sm:$0xff]   ;;  %v1754_v34 = vadd.f32 %v4519_v21, %v4548_v54  ;;  %v1759_v21 = vadd.f32 %v4525_v30, %v4548_v54 }
 0x10f   : > { %2296 = vmatmul.mubr.bf16.gmra.mrb[116].mxu1 %v4069_v26  ;;  %3753 = vmatmul.mubr.bf16.gmra.mrb[116].mxu0 %v4070_v27 }
 0x110   : > { %2303 = vmatprep.mubr.bf16.mxu1 %v4071_v32  ;;  %3756 = vmatprep.mubr.bf16.mxu0 %v4073_v33 }
 0x112   : > { %v3366_v38 = vpop.f32.mrb[12].mxu1  ;;  %v3294_v39 = vpop.f32.mrb[12].mxu0 }
 0x113   : > { %v3367_v40 = vpop.f32.mrb[13].mxu1  ;;  %v3295_v41 = vpop.f32.mrb[13].mxu0 }
 0x114   : > { %v4535_v44 = vadd.f32 %v3367_v40, %v3366_v38  ;;  %v3369_v45 = vpop.f32.mrb[14].mxu1  ;;  %v4537_v46 = vadd.f32 %v3295_v41, %v3294_v39  ;;  %v3297_v47 = vpop.f32.mrb[14].mxu0 }
 0x115   : > { %v3370_v50 = vpop.f32.mrb[15].mxu1  ;;  %v3298_v51 = vpop.f32.mrb[15].mxu0 }
 0x116   : > { %v4541_v52 = vadd.f32 %v3370_v50, %v3369_v45  ;;  %v4543_v53 = vadd.f32 %v3298_v51, %v3297_v47  ;;  %v4089_v45 = vld [vmem:[%s4196_s11 + $0x3c0] ss:$36 sps:$4 sm:$0xff]   ;;  %v4090_v47 = vld [vmem:[%s4196_s11 + $0x338] ss:$36 sps:$4 sm:$0xff]  }
 0x117   : > { %2304 = vmatmul.mubr.bf16.gmra.mrb[120].mxu1 %v4074_v42  ;;  %3757 = vmatmul.mubr.bf16.gmra.mrb[120].mxu0 %v4075_v43 }
 0x118   : > { %2311 = vmatprep.mubr.bf16.mxu1 %v4076_v48  ;;  %3760 = vmatprep.mubr.bf16.mxu0 %v4078_v49 }
 0x11a   : > { %v3388_v55 = vpop.f32.mrb[16].mxu1  ;;  %v3300_v56 = vpop.f32.mrb[16].mxu0 }
 0x11b   : > { %v3389_v57 = vpop.f32.mrb[17].mxu1  ;;  %v3301_v58 = vpop.f32.mrb[17].mxu0 }
 0x11c   : > { %v3390_v0 = vadd.f32 %v3389_v57, %v3388_v55  ;;  %v3391_v1 = vpop.f32.mrb[18].mxu1  ;;  %v4554_v2 = vadd.f32 %v3301_v58, %v3300_v56  ;;  %v3303_v3 = vpop.f32.mrb[18].mxu0  ;;  %v4091_v55 = vld [vmem:[%s4196_s11 + $0x40c] ss:$36 sps:$4 sm:$0xff]   ;;  %v4093_v56 = vld [vmem:[%s4196_s11 + $0x380] ss:$36 sps:$4 sm:$0xff]  }
 0x11d   : > { %v3392_v8 = vpop.f32.mrb[19].mxu1  ;;  %v3304_v9 = vpop.f32.mrb[19].mxu0 }
 0x11e   : > { %v4560_v11 = vadd.f32 %v3390_v0, %v1743_v63  ;;  %v3393_v13 = vadd.f32 %v3392_v8, %v3391_v1  ;;  %v4562_v15 = vadd.f32 %v3304_v9, %v3303_v3  ;;  %v4094_v8 = vld [vmem:[%s4196_s11 + $0x408] ss:$36 sps:$4 sm:$0xff]  }
 0x11f   : > { %2312 = vmatmul.mubr.bf16.gmra.mrb[124].mxu1 %v4079_v59  ;;  %3761 = vmatmul.mubr.bf16.gmra.mrb[124].mxu0 %v4080_v61  ;;  %v1762_v59 = vadd.f32 %v4531_v37, %v4548_v54  ;;  %v4095_v9 = vld [vmem:[%s4196_s11 + $0x3c8] ss:$36 sps:$4 sm:$0xff]   ;;  %v1767_v37 = vadd.f32 %v4537_v46, %v4548_v54 }
 0x120   : > { %v4564_v62 = vadd.f32 %v3393_v13, %v1746_v10  ;;  %2319 = vmatprep.mubr.bf16.mxu1 %v4081_v6  ;;  %3764 = vmatprep.mubr.bf16.mxu0 %v4083_v7 }
 0x122   : > { %v3394_v16 = vpop.f32.mrb[20].mxu1  ;;  %v3306_v17 = vpop.f32.mrb[20].mxu0 }
 0x123   : > { %v3395_v18 = vpop.f32.mrb[21].mxu1  ;;  %v3307_v19 = vpop.f32.mrb[21].mxu0 }
 0x124   : > { %v3396_v24 = vadd.f32 %v3395_v18, %v3394_v16  ;;  %v3397_v25 = vpop.f32.mrb[22].mxu1  ;;  %v4570_v26 = vadd.f32 %v3307_v19, %v3306_v17  ;;  %v3309_v27 = vpop.f32.mrb[22].mxu0  ;;  %v4096_v18 = vld [vmem:[%s4196_s11 + $0x454] ss:$36 sps:$4 sm:$0xff]  }
 0x125   : > { %v3398_v32 = vpop.f32.mrb[23].mxu1  ;;  %v3310_v33 = vpop.f32.mrb[23].mxu0  ;;  %v4098_v19 = vld [vmem:[%s4196_s11 + $0x410] ss:$36 sps:$4 sm:$0xff]  }
 0x126   : > { %v4576_v35 = vadd.f32 %v3396_v24, %v1751_v5  ;;  %v3399_v38 = vadd.f32 %v3398_v32, %v3397_v25  ;;  %v4578_v39 = vadd.f32 %v3310_v33, %v3309_v27  ;;  %v1770_v5 = vadd.f32 %v4543_v53, %v4548_v54 }
 0x127   : > { %2320 = vmatmul.mubr.bf16.gmra.mrb[128].mxu1 %v4084_v22  ;;  %3765 = vmatmul.mubr.bf16.gmra.mrb[128].mxu0 %v4085_v23  ;;  %v1775_v53 = vadd.f32 %v4554_v2, %v4548_v54 }
 0x128   : > { %v4580_v14 = vadd.f32 %v3399_v38, %v1754_v34  ;;  %2327 = vmatprep.mubr.bf16.mxu1 %v4086_v29  ;;  %3768 = vmatprep.mubr.bf16.mxu0 %v4088_v31  ;;  %v4099_v34 = vld [vmem:[%s4196_s11 + $0x450] ss:$36 sps:$4 sm:$0xff]   ;;  %v4100_v38 = vld [vmem:[%s4196_s11 + $0x458] ss:$36 sps:$4 sm:$0xff]   ;;  %s2881_s11 = sshll.u32 %s4956_s18, 2 }
 0x129   : > { %s4880_s9 = scalar_lea.vmem %s4950_s3, %s2881_s11 }
 0x12a   : > { %v3400_v40 = vpop.f32.mrb[24].mxu1  ;;  %v3312_v41 = vpop.f32.mrb[24].mxu0 }
 0x12b   : > { %v3401_v42 = vpop.f32.mrb[25].mxu1  ;;  %v3313_v43 = vpop.f32.mrb[25].mxu0 }
 0x12c   : > { %v3402_v48 = vadd.f32 %v3401_v42, %v3400_v40  ;;  %v3403_v49 = vpop.f32.mrb[26].mxu1  ;;  %v4586_v50 = vadd.f32 %v3313_v43, %v3312_v41  ;;  %v3315_v51 = vpop.f32.mrb[26].mxu0 }
 0x12d   : > { %v3404_v57 = vpop.f32.mrb[27].mxu1  ;;  %v3316_v58 = vpop.f32.mrb[27].mxu0 }
 0x12e   : > { %v4592_v61 = vadd.f32 %v3402_v48, %v1759_v21  ;;  %v3405_v63 = vadd.f32 %v3404_v57, %v3403_v49  ;;  %v4594_v0 = vadd.f32 %v3316_v58, %v3315_v51  ;;  %v1778_v21 = vadd.f32 %v4562_v15, %v4548_v54 }
 0x12f   : > { %2328 = vmatmul.mubr.bf16.gmra.mrb[132].mxu1 %v4089_v45  ;;  %3769 = vmatmul.mubr.bf16.gmra.mrb[132].mxu0 %v4090_v47 }
 0x130   : > { %v4596_v30 = vadd.f32 %v3405_v63, %v1762_v59  ;;  %2335 = vmatprep.mubr.bf16.mxu1 %v4091_v55  ;;  %3772 = vmatprep.mubr.bf16.mxu0 %v4093_v56  ;;  %v1783_v59 = vadd.f32 %v4570_v26, %v4548_v54 }
 0x132   : > { %v3406_v1 = vpop.f32.mrb[28].mxu1  ;;  %v3318_v3 = vpop.f32.mrb[28].mxu0 }
 0x133   : > { %v3407_v6 = vpop.f32.mrb[29].mxu1  ;;  %v3319_v7 = vpop.f32.mrb[29].mxu0 }
 0x134   : > { %v3408_v10 = vadd.f32 %v3407_v6, %v3406_v1  ;;  %v3409_v13 = vpop.f32.mrb[30].mxu1  ;;  %v4602_v16 = vadd.f32 %v3319_v7, %v3318_v3  ;;  %v3321_v17 = vpop.f32.mrb[30].mxu0 }
 0x135   : > { %v3410_v22 = vpop.f32.mrb[31].mxu1  ;;  %v3322_v23 = vpop.f32.mrb[31].mxu0 }
 0x136   : > { %v4608_v24 = vadd.f32 %v3408_v10, %v1767_v37  ;;  %v3411_v25 = vadd.f32 %v3410_v22, %v3409_v13  ;;  %v4610_v27 = vadd.f32 %v3322_v23, %v3321_v17  ;;  %v1791_v22 = vadd.f32 %v4586_v50, %v4548_v54 }
 0x137   : > { %2336 = vmatmul.mubr.bf16.gmra.mrb[136].mxu1 %v4094_v8  ;;  %3773 = vmatmul.mubr.bf16.gmra.mrb[136].mxu0 %v4095_v9  ;;  %v1786_v8 = vadd.f32 %v4578_v39, %v4548_v54 }
 0x138   : > { %v4612_v46 = vadd.f32 %v3411_v25, %v1770_v5  ;;  %2343 = vmatprep.mubr.bf16.mxu1 %v4096_v18  ;;  %3776 = vmatprep.mubr.bf16.mxu0 %v4098_v19 }
 0x13a   : > { %v3412_v29 = vpop.f32.mrb[32].mxu1  ;;  %v3324_v31 = vpop.f32.mrb[32].mxu0 }
 0x13b   : > { %v3413_v32 = vpop.f32.mrb[33].mxu1  ;;  %v3325_v33 = vpop.f32.mrb[33].mxu0 }
 0x13c   : > { %v3414_v40 = vadd.f32 %v3413_v32, %v3412_v29  ;;  %v3415_v41 = vpop.f32.mrb[34].mxu1  ;;  %v4618_v42 = vadd.f32 %v3325_v33, %v3324_v31  ;;  %v3327_v43 = vpop.f32.mrb[34].mxu0  ;;  %v1794_v32 = vadd.f32 %v4594_v0, %v4548_v54 }
 0x13d   : > { %v3416_v45 = vpop.f32.mrb[35].mxu1  ;;  %v3328_v47 = vpop.f32.mrb[35].mxu0 }
 0x13e   : > { %v4622_v48 = vadd.f32 %v3414_v40, %v1775_v53  ;;  %v3417_v49 = vadd.f32 %v3416_v45, %v3415_v41  ;;  %v3329_v51 = vadd.f32 %v3328_v47, %v3327_v43  ;;  %v1799_v45 = vadd.f32 %v4602_v16, %v4548_v54 }
 0x13f   : > { %2344 = vmatmul.mubr.bf16.gmra.mrb[140].mxu1 %v4099_v34  ;;  %3777 = vmatmul.mubr.bf16.gmra.mrb[140].mxu0 %v4100_v38 }
 0x140   : > { %v4624_v55 = vadd.f32 %v3417_v49, %v1778_v21 }
 0x142   : > { %v3418_v56 = vpop.f32.mrb[36].mxu1  ;;  %v3330_v2 = vpop.f32.mrb[36].mxu0 }
 0x143   : > { %v3419_v57 = vpop.f32.mrb[37].mxu1  ;;  %v3331_v58 = vpop.f32.mrb[37].mxu0 }
 0x144   : > { %v3420_v63 = vadd.f32 %v3419_v57, %v3418_v56  ;;  %v3421_v1 = vpop.f32.mrb[38].mxu1  ;;  %v4628_v3 = vadd.f32 %v3331_v58, %v3330_v2  ;;  %v3333_v15 = vpop.f32.mrb[38].mxu0  ;;  %v1802_v57 = vadd.f32 %v4610_v27, %v4548_v54  ;;  %v1810_v27 = vadd.f32 %v3329_v51, %v4548_v54 }
 0x145   : > { %v3422_v6 = vpop.f32.mrb[39].mxu1  ;;  %v3334_v7 = vpop.f32.mrb[39].mxu0 }
 0x146   : > { %v4632_v9 = vadd.f32 %v3420_v63, %v1783_v59  ;;  %v3423_v37 = vadd.f32 %v3422_v6, %v3421_v1  ;;  %v3335_v10 = vadd.f32 %v3334_v7, %v3333_v15  ;;  %v1815_v51 = vadd.f32 %v4628_v3, %v4548_v54 }
 0x148   : > { %v4634_v13 = vadd.f32 %v3423_v37, %v1786_v8  ;;  %v1807_v8 = vadd.f32 %v4618_v42, %v4548_v54 }
 0x14a   : > { %v3424_v17 = vpop.f32.mrb[40].mxu1  ;;  %v3336_v18 = vpop.f32.mrb[40].mxu0 }
 0x14b   : > { %v3425_v19 = vpop.f32.mrb[41].mxu1  ;;  %v3337_v26 = vpop.f32.mrb[41].mxu0 }
 0x14c   : > { %v3426_v23 = vadd.f32 %v3425_v19, %v3424_v17  ;;  %v3427_v5 = vpop.f32.mrb[42].mxu1  ;;  %v4638_v25 = vadd.f32 %v3337_v26, %v3336_v18  ;;  %v3339_v29 = vpop.f32.mrb[42].mxu0 }
 0x14d   : > { %v3428_v31 = vpop.f32.mrb[43].mxu1  ;;  %v3340_v39 = vpop.f32.mrb[43].mxu0 }
 0x14e   : > { %v4642_v33 = vadd.f32 %v3426_v23, %v1791_v22  ;;  %v3429_v34 = vadd.f32 %v3428_v31, %v3427_v5  ;;  %v4644_v38 = vadd.f32 %v3340_v39, %v3339_v29 }
 0x150   : > { %v4646_v53 = vadd.f32 %v3429_v34, %v1794_v32 }
 0x152   : > { %v3430_v40 = vpop.f32.mrb[44].mxu1  ;;  %v3342_v41 = vpop.f32.mrb[44].mxu0 }
 0x153   : > { %v3431_v50 = vpop.f32.mrb[45].mxu1  ;;  %v3343_v43 = vpop.f32.mrb[45].mxu0 }
 0x154   : > { %v3432_v47 = vadd.f32 %v3431_v50, %v3430_v40  ;;  %v3433_v21 = vpop.f32.mrb[46].mxu1  ;;  %v4650_v49 = vadd.f32 %v3343_v43, %v3342_v41  ;;  %v3345_v56 = vpop.f32.mrb[46].mxu0 }
 0x155   : > { %v3434_v0 = vpop.f32.mrb[47].mxu1  ;;  %v3346_v2 = vpop.f32.mrb[47].mxu0 }
 0x156   : > { %v4654_v58 = vadd.f32 %v3432_v47, %v1799_v45  ;;  %v3435_v59 = vadd.f32 %v3434_v0, %v3433_v21  ;;  %v4656_v63 = vadd.f32 %v3346_v2, %v3345_v56 }
 0x158   : > { %v4658_v1 = vadd.f32 %v3435_v59, %v1802_v57 }
 0x15a   : > { %v3436_v15 = vpop.f32.mrb[48].mxu1  ;;  %v3500_v6 = vpop.f32.mrb[48].mxu0 }
 0x15b   : > { %v3437_v16 = vpop.f32.mrb[49].mxu1  ;;  %v3501_v7 = vpop.f32.mrb[49].mxu0 }
 0x15c   : > { %v3438_v37 = vadd.f32 %v3437_v16, %v3436_v15  ;;  %v3502_v17 = vadd.f32 %v3501_v7, %v3500_v6  ;;  %v3439_v18 = vpop.f32.mrb[50].mxu1  ;;  %v3503_v19 = vpop.f32.mrb[50].mxu0 }
 0x15d   : > { %v3440_v26 = vpop.f32.mrb[51].mxu1  ;;  %v3504_v22 = vpop.f32.mrb[51].mxu0 }
 0x15e   : > { %v4663_v23 = vadd.f32 %v3438_v37, %v1807_v8  ;;  %v4666_v5 = vadd.f32 %v3502_v17, %v4560_v11  ;;  %v3441_v29 = vadd.f32 %v3440_v26, %v3439_v18  ;;  %v3505_v31 = vadd.f32 %v3504_v22, %v3503_v19 }
 0x15f   : > { %v1818_v11 = vadd.f32 %v3335_v10, %v4548_v54  ;;  %v1823_v10 = vadd.f32 %v4638_v25, %v4548_v54 }
 0x160   : > { %v4668_v39 = vadd.f32 %v3441_v29, %v1810_v27  ;;  %v4671_v32 = vadd.f32 %v3505_v31, %v4564_v62 }
 0x162   : > { %v3442_v42 = vpop.f32.mrb[52].mxu1  ;;  %v3506_v34 = vpop.f32.mrb[52].mxu0 }
 0x163   : > { %v3443_v40 = vpop.f32.mrb[53].mxu1  ;;  %v3507_v41 = vpop.f32.mrb[53].mxu0 }
 0x164   : > { %v3444_v50 = vadd.f32 %v3443_v40, %v3442_v42  ;;  %v3508_v43 = vadd.f32 %v3507_v41, %v3506_v34  ;;  %v3445_v45 = vpop.f32.mrb[54].mxu1  ;;  %v3509_v47 = vpop.f32.mrb[54].mxu0 }
 0x165   : > { %v3446_v21 = vpop.f32.mrb[55].mxu1  ;;  %v3510_v56 = vpop.f32.mrb[55].mxu0 }
 0x166   : > { %v4676_v0 = vadd.f32 %v3444_v50, %v1815_v51  ;;  %v4679_v62 = vadd.f32 %v3508_v43, %v4576_v35  ;;  %v3447_v2 = vadd.f32 %v3446_v21, %v3445_v45  ;;  %v3511_v57 = vadd.f32 %v3510_v56, %v3509_v47 }
 0x167   : > { %v1826_v35 = vadd.f32 %v4644_v38, %v4548_v54  ;;  %v1831_v38 = vadd.f32 %v4650_v49, %v4548_v54 }
 0x168   : > { %v4681_v59 = vadd.f32 %v3447_v2, %v1818_v11  ;;  %v4684_v15 = vadd.f32 %v3511_v57, %v4580_v14 }
 0x16a   : > { %v3448_v3 = vpop.f32.mrb[56].mxu1  ;;  %v3512_v6 = vpop.f32.mrb[56].mxu0 }
 0x16b   : > { %v3449_v16 = vpop.f32.mrb[57].mxu1  ;;  %v3513_v7 = vpop.f32.mrb[57].mxu0 }
 0x16c   : > { %v3450_v8 = vadd.f32 %v3449_v16, %v3448_v3  ;;  %v3514_v37 = vadd.f32 %v3513_v7, %v3512_v6  ;;  %v3451_v17 = vpop.f32.mrb[58].mxu1  ;;  %v3515_v18 = vpop.f32.mrb[58].mxu0 }
 0x16d   : > { %v3452_v19 = vpop.f32.mrb[59].mxu1  ;;  %v3516_v27 = vpop.f32.mrb[59].mxu0 }
 0x16e   : > { %v4690_v26 = vadd.f32 %v3450_v8, %v1823_v10  ;;  %v4693_v14 = vadd.f32 %v3514_v37, %v4592_v61  ;;  %v3453_v22 = vadd.f32 %v3452_v19, %v3451_v17  ;;  %v3517_v29 = vadd.f32 %v3516_v27, %v3515_v18 }
 0x16f   : > { %v1834_v61 = vadd.f32 %v4656_v63, %v4548_v54  ;;  %v1839_v63 = vadd.f32 %v4499_v60, %v4548_v54 }
 0x170   : > { %v4695_v31 = vadd.f32 %v3453_v22, %v1826_v35  ;;  %v4698_v25 = vadd.f32 %v3517_v29, %v4596_v30 }
 0x172   : > { %v3454_v42 = vpop.f32.mrb[60].mxu1  ;;  %v3518_v34 = vpop.f32.mrb[60].mxu0 }
 0x173   : > { %v3455_v40 = vpop.f32.mrb[61].mxu1  ;;  %v3519_v41 = vpop.f32.mrb[61].mxu0 }
 0x174   : > { %v3456_v51 = vadd.f32 %v3455_v40, %v3454_v42  ;;  %v3520_v50 = vadd.f32 %v3519_v41, %v3518_v34  ;;  %v3457_v43 = vpop.f32.mrb[62].mxu1  ;;  %v3521_v45 = vpop.f32.mrb[62].mxu0 }
 0x175   : > { %v3458_v47 = vpop.f32.mrb[63].mxu1  ;;  %v3522_v11 = vpop.f32.mrb[63].mxu0 }
 0x176   : > { %v4704_v21 = vadd.f32 %v3456_v51, %v1831_v38  ;;  %v4707_v30 = vadd.f32 %v3520_v50, %v4608_v24  ;;  %v3459_v56 = vadd.f32 %v3458_v47, %v3457_v43  ;;  %v3523_v2 = vadd.f32 %v3522_v11, %v3521_v45 }
 0x177   : > { %v1842_v24 = vadd.f32 %v4505_v4, %v4548_v54  ;;  %v1847_v4 = vadd.f32 %v4511_v12, %v4548_v54 }
 0x178   : > { %v4709_v57 = vadd.f32 %v3459_v56, %v1834_v61  ;;  %v4712_v49 = vadd.f32 %v3523_v2, %v4612_v46 }
 0x17a   : > { %v3460_v3 = vpop.f32.mrb[64].mxu1  ;;  %v3524_v6 = vpop.f32.mrb[64].mxu0 }
 0x17b   : > { %v3461_v16 = vpop.f32.mrb[65].mxu1  ;;  %v3525_v7 = vpop.f32.mrb[65].mxu0 }
 0x17c   : > { %v3462_v10 = vadd.f32 %v3461_v16, %v3460_v3  ;;  %v3526_v8 = vadd.f32 %v3525_v7, %v3524_v6  ;;  %v3463_v37 = vpop.f32.mrb[66].mxu1  ;;  %v3527_v17 = vpop.f32.mrb[66].mxu0 }
 0x17d   : > { %v3464_v18 = vpop.f32.mrb[67].mxu1  ;;  %v3528_v35 = vpop.f32.mrb[67].mxu0 }
 0x17e   : > { %v4718_v19 = vadd.f32 %v3462_v10, %v1839_v63  ;;  %v4721_v46 = vadd.f32 %v3526_v8, %v4622_v48  ;;  %v3465_v27 = vadd.f32 %v3464_v18, %v3463_v37  ;;  %v3529_v22 = vadd.f32 %v3528_v35, %v3527_v17 }
 0x17f   : > { %v1850_v48 = vadd.f32 %v4517_v20, %v4548_v54  ;;  %v1855_v20 = vadd.f32 %v4523_v28, %v4548_v54 }
 0x180   : > { %v4723_v29 = vadd.f32 %v3465_v27, %v1842_v24  ;;  %v4726_v60 = vadd.f32 %v3529_v22, %v4624_v55 }
 0x182   : > { %v3466_v42 = vpop.f32.mrb[68].mxu1  ;;  %v3530_v34 = vpop.f32.mrb[68].mxu0 }
 0x183   : > { %v3467_v40 = vpop.f32.mrb[69].mxu1  ;;  %v3531_v41 = vpop.f32.mrb[69].mxu0 }
 0x184   : > { %v3468_v38 = vadd.f32 %v3467_v40, %v3466_v42  ;;  %v3532_v51 = vadd.f32 %v3531_v41, %v3530_v34  ;;  %v3469_v50 = vpop.f32.mrb[70].mxu1  ;;  %v3533_v43 = vpop.f32.mrb[70].mxu0 }
 0x185   : > { %v3470_v45 = vpop.f32.mrb[71].mxu1  ;;  %v3534_v61 = vpop.f32.mrb[71].mxu0 }
 0x186   : > { %v4732_v47 = vadd.f32 %v3468_v38, %v1847_v4  ;;  %v4735_v55 = vadd.f32 %v3532_v51, %v4632_v9  ;;  %v3471_v11 = vadd.f32 %v3470_v45, %v3469_v50  ;;  %v3535_v56 = vadd.f32 %v3534_v61, %v3533_v43 }
 0x187   : > { %v1858_v9 = vadd.f32 %v4529_v36, %v4548_v54  ;;  %v1863_v36 = vadd.f32 %v4535_v44, %v4548_v54 }
 0x188   : > { %v4737_v2 = vadd.f32 %v3471_v11, %v1850_v48  ;;  %v4740_v12 = vadd.f32 %v3535_v56, %v4634_v13 }
 0x18a   : > { %v3472_v3 = vpop.f32.mrb[72].mxu1  ;;  %v3536_v6 = vpop.f32.mrb[72].mxu0 }
 0x18b   : > { %v3473_v16 = vpop.f32.mrb[73].mxu1  ;;  %v3537_v7 = vpop.f32.mrb[73].mxu0 }
 0x18c   : > { %v3474_v63 = vadd.f32 %v3473_v16, %v3472_v3  ;;  %v3538_v10 = vadd.f32 %v3537_v7, %v3536_v6  ;;  %v3475_v8 = vpop.f32.mrb[74].mxu1  ;;  %v3539_v37 = vpop.f32.mrb[74].mxu0 }
 0x18d   : > { %v3476_v17 = vpop.f32.mrb[75].mxu1  ;;  %v3540_v24 = vpop.f32.mrb[75].mxu0 }
 0x18e   : > { %v4746_v18 = vadd.f32 %v3474_v63, %v1855_v20  ;;  %v4749_v13 = vadd.f32 %v3538_v10, %v4642_v33  ;;  %v3477_v35 = vadd.f32 %v3476_v17, %v3475_v8  ;;  %v3541_v27 = vadd.f32 %v3540_v24, %v3539_v37 }
 0x18f   : > { %v1866_v33 = vadd.f32 %v4541_v52, %v4548_v54 }
 0x190   : > { %v4751_v22 = vadd.f32 %v3477_v35, %v1858_v9  ;;  %v4754_v28 = vadd.f32 %v3541_v27, %v4646_v53 }
 0x192   : > { %v3478_v42 = vpop.f32.mrb[76].mxu1  ;;  %v3542_v34 = vpop.f32.mrb[76].mxu0 }
 0x193   : > { %v3479_v40 = vpop.f32.mrb[77].mxu1  ;;  %v3543_v41 = vpop.f32.mrb[77].mxu0 }
 0x194   : > { %v3480_v4 = vadd.f32 %v3479_v40, %v3478_v42  ;;  %v3544_v38 = vadd.f32 %v3543_v41, %v3542_v34  ;;  %v3481_v51 = vpop.f32.mrb[78].mxu1  ;;  %v3545_v50 = vpop.f32.mrb[78].mxu0 }
 0x195   : > { %v3482_v43 = vpop.f32.mrb[79].mxu1  ;;  %v3546_v48 = vpop.f32.mrb[79].mxu0 }
 0x196   : > { %v4760_v45 = vadd.f32 %v3480_v4, %v1863_v36  ;;  %v4763_v53 = vadd.f32 %v3544_v38, %v4654_v58  ;;  %v3483_v61 = vadd.f32 %v3482_v43, %v3481_v51  ;;  %v3547_v11 = vadd.f32 %v3546_v48, %v3545_v50 }
 0x198   : > { %v4765_v56 = vadd.f32 %v3483_v61, %v1866_v33  ;;  %v4768_v44 = vadd.f32 %v3547_v11, %v4658_v1 }
 0x19a   : > { %v3548_v3 = vpop.f32.mrb[80].mxu0  ;;  %v3612_v6 = vpop.f32.mrb[80].mxu1 }
 0x19b   : > { %v3549_v16 = vpop.f32.mrb[81].mxu0  ;;  %v3613_v7 = vpop.f32.mrb[81].mxu1 }
 0x19c   : > { %v3550_v20 = vadd.f32 %v3549_v16, %v3548_v3  ;;  %v3614_v52 = vadd.f32 %v3613_v7, %v3612_v6  ;;  %v3551_v54 = vpop.f32.mrb[82].mxu0  ;;  %v3615_v63 = vpop.f32.mrb[82].mxu1 }
 0x19d   : > { %v3552_v10 = vpop.f32.mrb[83].mxu0  ;;  %v3616_v8 = vpop.f32.mrb[83].mxu1 }
 0x19e   : > { %v4771_v58 = vadd.f32 %v3550_v20, %v4663_v23  ;;  %v3553_v37 = vadd.f32 %v3552_v10, %v3551_v54  ;;  %v3617_v9 = vadd.f32 %v3616_v8, %v3615_v63  ;;  %v4774_v17 = vadd.f32 %v3614_v52, %v4666_v5 }
 0x1a0   : > { %v4777_v1 = vadd.f32 %v3553_v37, %v4668_v39  ;;  %v4780_v24 = vadd.f32 %v3617_v9, %v4671_v32 }
 0x1a2   : > { %v3554_v35 = vpop.f32.mrb[84].mxu0  ;;  %v3618_v27 = vpop.f32.mrb[84].mxu1 }
 0x1a3   : > { %v3555_v42 = vpop.f32.mrb[85].mxu0  ;;  %v3619_v34 = vpop.f32.mrb[85].mxu1 }
 0x1a4   : > { %v3556_v40 = vadd.f32 %v3555_v42, %v3554_v35  ;;  %v3620_v41 = vadd.f32 %v3619_v34, %v3618_v27  ;;  %v3557_v36 = vpop.f32.mrb[86].mxu0  ;;  %v3621_v23 = vpop.f32.mrb[86].mxu1 }
 0x1a5   : > { %v3558_v4 = vpop.f32.mrb[87].mxu0  ;;  %v3622_v38 = vpop.f32.mrb[87].mxu1 }
 0x1a6   : > { %v4783_v51 = vadd.f32 %v3556_v40, %v4676_v0  ;;  %v3559_v5 = vadd.f32 %v3558_v4, %v3557_v36  ;;  %v3623_v50 = vadd.f32 %v3622_v38, %v3621_v23  ;;  %v4786_v39 = vadd.f32 %v3620_v41, %v4679_v62 }
 0x1a8   : > { %v4789_v32 = vadd.f32 %v3559_v5, %v4681_v59  ;;  %v4792_v33 = vadd.f32 %v3623_v50, %v4684_v15 }
 0x1aa   : > { %v3560_v43 = vpop.f32.mrb[88].mxu0  ;;  %v3624_v48 = vpop.f32.mrb[88].mxu1 }
 0x1ab   : > { %v3561_v61 = vpop.f32.mrb[89].mxu0  ;;  %v3625_v11 = vpop.f32.mrb[89].mxu1 }
 0x1ac   : > { %v3562_v3 = vadd.f32 %v3561_v61, %v3560_v43  ;;  %v3626_v6 = vadd.f32 %v3625_v11, %v3624_v48  ;;  %v3563_v16 = vpop.f32.mrb[90].mxu0  ;;  %v3627_v0 = vpop.f32.mrb[90].mxu1 }
 0x1ad   : > { %v3564_v7 = vpop.f32.mrb[91].mxu0  ;;  %v3628_v20 = vpop.f32.mrb[91].mxu1 }
 0x1ae   : > { %v4795_v52 = vadd.f32 %v3562_v3, %v4690_v26  ;;  %v3565_v62 = vadd.f32 %v3564_v7, %v3563_v16  ;;  %v3629_v54 = vadd.f32 %v3628_v20, %v3627_v0  ;;  %v4798_v59 = vadd.f32 %v3626_v6, %v4693_v14 }
 0x1b0   : > { %v4801_v15 = vadd.f32 %v3565_v62, %v4695_v31  ;;  %v4804_v63 = vadd.f32 %v3629_v54, %v4698_v25 }
 0x1b2   : > { %v3566_v10 = vpop.f32.mrb[92].mxu0  ;;  %v3630_v8 = vpop.f32.mrb[92].mxu1 }
 0x1b3   : > { %v3567_v37 = vpop.f32.mrb[93].mxu0  ;;  %v3631_v9 = vpop.f32.mrb[93].mxu1 }
 0x1b4   : > { %v3568_v35 = vadd.f32 %v3567_v37, %v3566_v10  ;;  %v3632_v27 = vadd.f32 %v3631_v9, %v3630_v8  ;;  %v3569_v42 = vpop.f32.mrb[94].mxu0  ;;  %v3633_v26 = vpop.f32.mrb[94].mxu1 }
 0x1b5   : > { %v3570_v34 = vpop.f32.mrb[95].mxu0  ;;  %v3634_v40 = vpop.f32.mrb[95].mxu1 }
 0x1b6   : > { %v4807_v41 = vadd.f32 %v3568_v35, %v4704_v21  ;;  %v3571_v14 = vadd.f32 %v3570_v34, %v3569_v42  ;;  %v3635_v36 = vadd.f32 %v3634_v40, %v3633_v26  ;;  %v4810_v31 = vadd.f32 %v3632_v27, %v4707_v30 }
 0x1b8   : > { %v4813_v25 = vadd.f32 %v3571_v14, %v4709_v57  ;;  %v4816_v23 = vadd.f32 %v3635_v36, %v4712_v49 }
 0x1ba   : > { %v3572_v4 = vpop.f32.mrb[96].mxu0  ;;  %v3636_v38 = vpop.f32.mrb[96].mxu1 }
 0x1bb   : > { %v3573_v5 = vpop.f32.mrb[97].mxu0  ;;  %v3637_v50 = vpop.f32.mrb[97].mxu1 }
 0x1bc   : > { %v3574_v43 = vadd.f32 %v3573_v5, %v3572_v4  ;;  %v3638_v48 = vadd.f32 %v3637_v50, %v3636_v38  ;;  %v3575_v61 = vpop.f32.mrb[98].mxu0  ;;  %v3639_v21 = vpop.f32.mrb[98].mxu1 }
 0x1bd   : > { %v3576_v11 = vpop.f32.mrb[99].mxu0  ;;  %v3640_v3 = vpop.f32.mrb[99].mxu1 }
 0x1be   : > { %v4819_v6 = vadd.f32 %v3574_v43, %v4718_v19  ;;  %v3577_v30 = vadd.f32 %v3576_v11, %v3575_v61  ;;  %v3641_v16 = vadd.f32 %v3640_v3, %v3639_v21  ;;  %v4822_v57 = vadd.f32 %v3638_v48, %v4721_v46 }
 0x1c0   : > { %v4825_v49 = vadd.f32 %v3577_v30, %v4723_v29  ;;  %v4828_v0 = vadd.f32 %v3641_v16, %v4726_v60 }
 0x1c2   : > { %v3578_v7 = vpop.f32.mrb[100].mxu0  ;;  %v3642_v20 = vpop.f32.mrb[100].mxu1 }
 0x1c3   : > { %v3579_v62 = vpop.f32.mrb[101].mxu0  ;;  %v3643_v54 = vpop.f32.mrb[101].mxu1 }
 0x1c4   : > { %v3580_v10 = vadd.f32 %v3579_v62, %v3578_v7  ;;  %v3644_v8 = vadd.f32 %v3643_v54, %v3642_v20  ;;  %v3581_v37 = vpop.f32.mrb[102].mxu0  ;;  %v3645_v19 = vpop.f32.mrb[102].mxu1 }
 0x1c5   : > { %v3582_v9 = vpop.f32.mrb[103].mxu0  ;;  %v3646_v35 = vpop.f32.mrb[103].mxu1 }
 0x1c6   : > { %v4831_v27 = vadd.f32 %v3580_v10, %v4732_v47  ;;  %v3583_v46 = vadd.f32 %v3582_v9, %v3581_v37  ;;  %v3647_v42 = vadd.f32 %v3646_v35, %v3645_v19  ;;  %v4834_v29 = vadd.f32 %v3644_v8, %v4735_v55 }
 0x1c8   : > { %v4837_v60 = vadd.f32 %v3583_v46, %v4737_v2  ;;  %v4840_v26 = vadd.f32 %v3647_v42, %v4740_v12 }
 0x1ca   : > { %v3584_v34 = vpop.f32.mrb[104].mxu0  ;;  %v3648_v40 = vpop.f32.mrb[104].mxu1 }
 0x1cb   : > { %v3585_v14 = vpop.f32.mrb[105].mxu0  ;;  %v3649_v36 = vpop.f32.mrb[105].mxu1 }
 0x1cc   : > { %v3586_v4 = vadd.f32 %v3585_v14, %v3584_v34  ;;  %v3650_v38 = vadd.f32 %v3649_v36, %v3648_v40  ;;  %v3587_v5 = vpop.f32.mrb[106].mxu0  ;;  %v3651_v47 = vpop.f32.mrb[106].mxu1 }
 0x1cd   : > { %v3588_v50 = vpop.f32.mrb[107].mxu0  ;;  %v3652_v43 = vpop.f32.mrb[107].mxu1 }
 0x1ce   : > { %v4843_v48 = vadd.f32 %v3586_v4, %v4746_v18  ;;  %v3589_v55 = vadd.f32 %v3588_v50, %v3587_v5  ;;  %v3653_v61 = vadd.f32 %v3652_v43, %v3651_v47  ;;  %v4846_v2 = vadd.f32 %v3650_v38, %v4749_v13 }
 0x1d0   : > { %v4849_v12 = vadd.f32 %v3589_v55, %v4751_v22  ;;  %v4852_v21 = vadd.f32 %v3653_v61, %v4754_v28 }
 0x1d2   : > { %v3590_v11 = vpop.f32.mrb[108].mxu0  ;;  %v3654_v3 = vpop.f32.mrb[108].mxu1 }
 0x1d3   : > { %v3591_v30 = vpop.f32.mrb[109].mxu0  ;;  %v3655_v16 = vpop.f32.mrb[109].mxu1 }
 0x1d4   : > { %v3592_v7 = vadd.f32 %v3591_v30, %v3590_v11  ;;  %v3656_v20 = vadd.f32 %v3655_v16, %v3654_v3  ;;  %v3593_v62 = vpop.f32.mrb[110].mxu0  ;;  %v3657_v18 = vpop.f32.mrb[110].mxu1 }
 0x1d5   : > { %v3594_v54 = vpop.f32.mrb[111].mxu0  ;;  %v3658_v10 = vpop.f32.mrb[111].mxu1 }
 0x1d6   : > { %v4855_v8 = vadd.f32 %v3592_v7, %v4760_v45  ;;  %v3595_v13 = vadd.f32 %v3594_v54, %v3593_v62  ;;  %v3659_v37 = vadd.f32 %v3658_v10, %v3657_v18  ;;  %v4858_v22 = vadd.f32 %v3656_v20, %v4763_v53 }
 0x1d8   : > { %v4861_v28 = vadd.f32 %v3595_v13, %v4765_v56  ;;  %v4864_v19 = vadd.f32 %v3659_v37, %v4768_v44 }
 0x1da   : > { %v3660_v9 = vpop.f32.mrb[112].mxu1  ;;  %v3750_v35 = vpop.f32.mrb[112].mxu0 }
 0x1db   : > { %v2395_v46 = vadd.f32 %v3750_v35, %v4786_v39  ;;  %v3661_v42 = vpop.f32.mrb[113].mxu1  ;;  %v2386_v34 = vpop.f32.mrb[113].mxu0 }
 0x1dc   : > { %v3662_v45 = vadd.f32 %v3661_v42, %v3660_v9  ;;  %v2387_v40 = vadd.f32 %v2386_v34, %v4774_v17  ;;  %v3663_v14 = vpop.f32.mrb[114].mxu1  ;;  %v3751_v36 = vpop.f32.mrb[114].mxu0 }
 0x1dd   : > { %v2547_v53 = vmul.f32 0.2, %v2395_v46  ;;  %v2398_v4 = vadd.f32 %v3751_v36, %v4792_v33  ;;  %v3664_v56 = vpop.f32.mrb[115].mxu1  ;;  %v2389_v38 = vpop.f32.mrb[115].mxu0  ;;  %vm2515_vm0 = vcmp.ge.f32.partialorder %v2395_v46, 0.0 }
 0x1de   : > { %v2545_v44 = vmul.f32 0.2, %v2387_v40  ;;  %v3665_v5 = vadd.f32 %v3664_v56, %v3663_v14  ;;  %v2390_v47 = vadd.f32 %v2389_v38, %v4780_v24  ;;  %vm2513_vm1 = vcmp.ge.f32.partialorder %v2387_v40, 0.0 }
 0x1df   : > { %vm2516_vm2 = vcmp.ge.f32.partialorder %v2398_v4, 0.0  ;;  %v2548_v39 = vmul.f32 0.2, %v2398_v4  ;;  %v4872_v50 = vadd.f32 %v3662_v45, %v4771_v58  ;;  %v2579_v33 = vsel %vm2515_vm0, %v2395_v46, %v2547_v53 }
 0x1e0   : > { %vm2514_vm3 = vcmp.ge.f32.partialorder %v2390_v47, 0.0  ;;  %v2546_v17 = vmul.f32 0.2, %v2390_v47  ;;  %v4875_v43 = vadd.f32 %v3665_v5, %v4777_v1  ;;  %v2577_v55 = vsel %vm2513_vm1, %v2387_v40, %v2545_v44 }
 0x1e1   : > { %v2580_v24 = vsel %vm2516_vm2, %v2398_v4, %v2548_v39 }
 0x1e2   : > { %v3173_v61 = vpack.c.bf16 %v2580_v24, %v2579_v33  ;;  %v2578_v11 = vsel %vm2514_vm3, %v2390_v47, %v2546_v17  ;;  %v3666_v3 = vpop.f32.mrb[116].mxu1  ;;  %v3754_v58 = vpop.f32.mrb[116].mxu0 }
 0x1e3   : > { %v3168_v30 = vpack.c.bf16 %v2578_v11, %v2577_v55  ;;  %v2411_v16 = vadd.f32 %v3754_v58, %v4810_v31  ;;  %v3667_v7 = vpop.f32.mrb[117].mxu1  ;;  %v2402_v1 = vpop.f32.mrb[117].mxu0 }
 0x1e4   : > { %3245 = vst [vmem:[%s4880_s9 + $0x8] sm:$0xff] %v3173_v61   ;;  %v3668_v20 = vadd.f32 %v3667_v7, %v3666_v3  ;;  %v2403_v62 = vadd.f32 %v2402_v1, %v4798_v59  ;;  %v3669_v18 = vpop.f32.mrb[118].mxu1  ;;  %v3755_v54 = vpop.f32.mrb[118].mxu0 }
 0x1e5   : > { %3169 = vst [vmem:[%s4880_s9] sm:$0xff] %v3168_v30   ;;  %v2551_v10 = vmul.f32 0.2, %v2411_v16  ;;  %v2414_v13 = vadd.f32 %v3755_v54, %v4816_v23  ;;  %v3670_v37 = vpop.f32.mrb[119].mxu1  ;;  %v2405_v9 = vpop.f32.mrb[119].mxu0  ;;  %vm2519_vm4 = vcmp.ge.f32.partialorder %v2411_v16, 0.0 }
 0x1e6   : > { %v2549_v35 = vmul.f32 0.2, %v2403_v62  ;;  %v3671_v46 = vadd.f32 %v3670_v37, %v3669_v18  ;;  %v2406_v42 = vadd.f32 %v2405_v9, %v4804_v63  ;;  %vm2517_vm5 = vcmp.ge.f32.partialorder %v2403_v62, 0.0 }
 0x1e7   : > { %vm2520_vm6 = vcmp.ge.f32.partialorder %v2414_v13, 0.0  ;;  %v2552_v31 = vmul.f32 0.2, %v2414_v13  ;;  %v4889_v34 = vadd.f32 %v3668_v20, %v4783_v51  ;;  %v2583_v23 = vsel %vm2519_vm4, %v2411_v16, %v2551_v10 }
 0x1e8   : > { %vm2518_vm7 = vcmp.ge.f32.partialorder %v2406_v42, 0.0  ;;  %v2550_v59 = vmul.f32 0.2, %v2406_v42  ;;  %v4892_v45 = vadd.f32 %v3671_v46, %v4789_v32  ;;  %v2581_v14 = vsel %vm2517_vm5, %v2403_v62, %v2549_v35 }
 0x1e9   : > { %v2584_v40 = vsel %vm2520_vm6, %v2414_v13, %v2552_v31 }
 0x1ea   : > { %v3183_v36 = vpack.c.bf16 %v2584_v40, %v2583_v23  ;;  %v2582_v53 = vsel %vm2518_vm7, %v2406_v42, %v2550_v59  ;;  %v3672_v4 = vpop.f32.mrb[120].mxu1  ;;  %v3758_v63 = vpop.f32.mrb[120].mxu0 }
 0x1eb   : > { %v3178_v56 = vpack.c.bf16 %v2582_v53, %v2581_v14  ;;  %v2427_v38 = vadd.f32 %v3758_v63, %v4834_v29  ;;  %v3673_v44 = vpop.f32.mrb[121].mxu1  ;;  %v2418_v5 = vpop.f32.mrb[121].mxu0 }
 0x1ec   : > { %3247 = vst [vmem:[%s4880_s9 + $0x18] sm:$0xff] %v3183_v36   ;;  %v3674_v51 = vadd.f32 %v3673_v44, %v3672_v4  ;;  %v2419_v47 = vadd.f32 %v2418_v5, %v4822_v57  ;;  %v3675_v39 = vpop.f32.mrb[122].mxu1  ;;  %v3759_v32 = vpop.f32.mrb[122].mxu0 }
 0x1ed   : > { %3246 = vst [vmem:[%s4880_s9 + $0x10] sm:$0xff] %v3178_v56   ;;  %v2555_v17 = vmul.f32 0.2, %v2427_v38  ;;  %v2430_v33 = vadd.f32 %v3759_v32, %v4840_v26  ;;  %v3676_v24 = vpop.f32.mrb[123].mxu1  ;;  %v2421_v55 = vpop.f32.mrb[123].mxu0  ;;  %vm2523_vm8 = vcmp.ge.f32.partialorder %v2427_v38, 0.0 }
 0x1ee   : > { %v2553_v61 = vmul.f32 0.2, %v2419_v47  ;;  %v3677_v11 = vadd.f32 %v3676_v24, %v3675_v39  ;;  %v2422_v3 = vadd.f32 %v2421_v55, %v4828_v0  ;;  %vm2521_vm9 = vcmp.ge.f32.partialorder %v2419_v47, 0.0 }
 0x1ef   : > { %vm2524_vm10 = vcmp.ge.f32.partialorder %v2430_v33, 0.0  ;;  %v2556_v29 = vmul.f32 0.2, %v2430_v33  ;;  %v4901_v58 = vadd.f32 %v3674_v51, %v4795_v52  ;;  %v2587_v26 = vsel %vm2523_vm8, %v2427_v38, %v2555_v17 }
 0x1f0   : > { %vm2522_vm11 = vcmp.ge.f32.partialorder %v2422_v3, 0.0  ;;  %v2554_v57 = vmul.f32 0.2, %v2422_v3  ;;  %v4904_v30 = vadd.f32 %v3677_v11, %v4801_v15  ;;  %v2585_v7 = vsel %vm2521_vm9, %v2419_v47, %v2553_v61 }
 0x1f1   : > { %v2588_v16 = vsel %vm2524_vm10, %v2430_v33, %v2556_v29 }
 0x1f2   : > { %v3193_v1 = vpack.c.bf16 %v2588_v16, %v2587_v26  ;;  %v2586_v20 = vsel %vm2522_vm11, %v2422_v3, %v2554_v57  ;;  %v3678_v62 = vpop.f32.mrb[124].mxu1  ;;  %v3762_v0 = vpop.f32.mrb[124].mxu0 }
 0x1f3   : > { %v3188_v18 = vpack.c.bf16 %v2586_v20, %v2585_v7  ;;  %v2443_v54 = vadd.f32 %v3762_v0, %v4858_v22  ;;  %v3679_v10 = vpop.f32.mrb[125].mxu1  ;;  %v2434_v13 = vpop.f32.mrb[125].mxu0 }
 0x1f4   : > { %3249 = vst [vmem:[%s4880_s9 + $0x28] sm:$0xff] %v3193_v1   ;;  %v3680_v52 = vadd.f32 %v3679_v10, %v3678_v62  ;;  %v2435_v37 = vadd.f32 %v2434_v13, %v4846_v2  ;;  %v3681_v9 = vpop.f32.mrb[126].mxu1  ;;  %v3763_v15 = vpop.f32.mrb[126].mxu0 }
 0x1f5   : > { %3248 = vst [vmem:[%s4880_s9 + $0x20] sm:$0xff] %v3188_v18   ;;  %v2559_v35 = vmul.f32 0.2, %v2443_v54  ;;  %v2446_v46 = vadd.f32 %v3763_v15, %v4864_v19  ;;  %v3682_v42 = vpop.f32.mrb[127].mxu1  ;;  %v2437_v31 = vpop.f32.mrb[127].mxu0  ;;  %vm2527_vm12 = vcmp.ge.f32.partialorder %v2443_v54, 0.0 }
 0x1f6   : > { %v2557_v59 = vmul.f32 0.2, %v2435_v37  ;;  %v3683_v23 = vadd.f32 %v3682_v42, %v3681_v9  ;;  %v2438_v40 = vadd.f32 %v2437_v31, %v4852_v21  ;;  %vm2525_vm13 = vcmp.ge.f32.partialorder %v2435_v37, 0.0 }
 0x1f7   : > { %vm2528_vm14 = vcmp.ge.f32.partialorder %v2446_v46, 0.0  ;;  %v2560_v22 = vmul.f32 0.2, %v2446_v46  ;;  %v2314_v14 = vadd.f32 %v3680_v52, %v4807_v41  ;;  %v2591_v53 = vsel %vm2527_vm12, %v2443_v54, %v2559_v35 }
 0x1f8   : > { %vm2526_vm15 = vcmp.ge.f32.partialorder %v2438_v40, 0.0  ;;  %v2558_v2 = vmul.f32 0.2, %v2438_v40  ;;  %v2317_v36 = vadd.f32 %v3683_v23, %v4813_v25  ;;  %v2589_v4 = vsel %vm2525_vm13, %v2435_v37, %v2557_v59 }
 0x1f9   : > { %v2592_v19 = vsel %vm2528_vm14, %v2446_v46, %v2560_v22 }
 0x1fa   : > { %v3203_v63 = vpack.c.bf16 %v2592_v19, %v2591_v53  ;;  %v2590_v56 = vsel %vm2526_vm15, %v2438_v40, %v2558_v2  ;;  %v3684_v38 = vpop.f32.mrb[128].mxu1  ;;  %v3766_v44 = vpop.f32.mrb[128].mxu0 }
 0x1fb   : > { %v3198_v5 = vpack.c.bf16 %v2590_v56, %v2589_v4  ;;  %v2459_v21 = vadd.f32 %v3766_v44, %v4889_v34  ;;  %v3685_v51 = vpop.f32.mrb[129].mxu1  ;;  %v2450_v47 = vpop.f32.mrb[129].mxu0 }
 0x1fc   : > { %3251 = vst [vmem:[%s4880_s9 + $0x38] sm:$0xff] %v3203_v63   ;;  %v3686_v39 = vadd.f32 %v3685_v51, %v3684_v38  ;;  %v2451_v41 = vadd.f32 %v2450_v47, %v4872_v50  ;;  %v3687_v32 = vpop.f32.mrb[130].mxu1  ;;  %v3767_v17 = vpop.f32.mrb[130].mxu0 }
 0x1fd   : > { %3250 = vst [vmem:[%s4880_s9 + $0x30] sm:$0xff] %v3198_v5   ;;  %v2563_v25 = vmul.f32 0.2, %v2459_v21  ;;  %v2462_v33 = vadd.f32 %v3767_v17, %v4892_v45  ;;  %v3688_v24 = vpop.f32.mrb[131].mxu1  ;;  %v2453_v55 = vpop.f32.mrb[131].mxu0  ;;  %vm2531_vm0 = vcmp.ge.f32.partialorder %v2459_v21, 0.0 }
 0x1fe   : > { %v2561_v61 = vmul.f32 0.2, %v2451_v41  ;;  %v3689_v11 = vadd.f32 %v3688_v24, %v3687_v32  ;;  %v2454_v3 = vadd.f32 %v2453_v55, %v4875_v43  ;;  %vm2529_vm1 = vcmp.ge.f32.partialorder %v2451_v41, 0.0 }
 0x1ff   : > { %vm2532_vm2 = vcmp.ge.f32.partialorder %v2462_v33, 0.0  ;;  %v2564_v34 = vmul.f32 0.2, %v2462_v33  ;;  %v2322_v29 = vadd.f32 %v3686_v39, %v4819_v6  ;;  %v2595_v26 = vsel %vm2531_vm0, %v2459_v21, %v2563_v25 }
 0x200   : > { %vm2530_vm3 = vcmp.ge.f32.partialorder %v2454_v3, 0.0  ;;  %v2562_v50 = vmul.f32 0.2, %v2454_v3  ;;  %v2325_v57 = vadd.f32 %v3689_v11, %v4825_v49  ;;  %v2593_v16 = vsel %vm2529_vm1, %v2451_v41, %v2561_v61 }
 0x201   : > { %v2596_v45 = vsel %vm2532_vm2, %v2462_v33, %v2564_v34 }
 0x202   : > { %v3213_v7 = vpack.c.bf16 %v2596_v45, %v2595_v26  ;;  %v2594_v1 = vsel %vm2530_vm3, %v2454_v3, %v2562_v50  ;;  %v3690_v20 = vpop.f32.mrb[132].mxu1  ;;  %v3770_v62 = vpop.f32.mrb[132].mxu0 }
 0x203   : > { %v3208_v0 = vpack.c.bf16 %v2594_v1, %v2593_v16  ;;  %v2475_v43 = vadd.f32 %v3770_v62, %v2314_v14  ;;  %v3691_v18 = vpop.f32.mrb[133].mxu1  ;;  %v2466_v54 = vpop.f32.mrb[133].mxu0 }
 0x204   : > { %3253 = vst [vmem:[%s4880_s9 + $0x48] sm:$0xff] %v3213_v7   ;;  %v3692_v10 = vadd.f32 %v3691_v18, %v3690_v20  ;;  %v2467_v6 = vadd.f32 %v2466_v54, %v4901_v58  ;;  %v3693_v13 = vpop.f32.mrb[134].mxu1  ;;  %v3771_v52 = vpop.f32.mrb[134].mxu0 }
 0x205   : > { %3252 = vst [vmem:[%s4880_s9 + $0x40] sm:$0xff] %v3208_v0   ;;  %v2567_v49 = vmul.f32 0.2, %v2475_v43  ;;  %v2478_v37 = vadd.f32 %v3771_v52, %v2317_v36  ;;  %v3694_v9 = vpop.f32.mrb[135].mxu1  ;;  %v2469_v15 = vpop.f32.mrb[135].mxu0  ;;  %vm2535_vm4 = vcmp.ge.f32.partialorder %v2475_v43, 0.0 }
 0x206   : > { %v2565_v35 = vmul.f32 0.2, %v2467_v6  ;;  %v3695_v46 = vadd.f32 %v3694_v9, %v3693_v13  ;;  %v2470_v42 = vadd.f32 %v2469_v15, %v4904_v30  ;;  %vm2533_vm5 = vcmp.ge.f32.partialorder %v2467_v6, 0.0 }
 0x207   : > { %vm2536_vm6 = vcmp.ge.f32.partialorder %v2478_v37, 0.0  ;;  %v2568_v31 = vmul.f32 0.2, %v2478_v37  ;;  %v2330_v59 = vadd.f32 %v3692_v10, %v4831_v27  ;;  %v2599_v40 = vsel %vm2535_vm4, %v2475_v43, %v2567_v49 }
 0x208   : > { %vm2534_vm7 = vcmp.ge.f32.partialorder %v2470_v42, 0.0  ;;  %v2566_v58 = vmul.f32 0.2, %v2470_v42  ;;  %v2333_v23 = vadd.f32 %v3695_v46, %v4837_v60  ;;  %v2597_v14 = vsel %vm2533_vm5, %v2467_v6, %v2565_v35 }
 0x209   : > { %v2600_v22 = vsel %vm2536_vm6, %v2478_v37, %v2568_v31 }
 0x20a   : > { %v3223_v2 = vpack.c.bf16 %v2600_v22, %v2599_v40  ;;  %v2598_v36 = vsel %vm2534_vm7, %v2470_v42, %v2566_v58  ;;  %v3696_v53 = vpop.f32.mrb[136].mxu1  ;;  %v3774_v19 = vpop.f32.mrb[136].mxu0 }
 0x20b   : > { %v3218_v4 = vpack.c.bf16 %v2598_v36, %v2597_v14  ;;  %v2491_v30 = vadd.f32 %v3774_v19, %v2330_v59  ;;  %v3697_v63 = vpop.f32.mrb[137].mxu1  ;;  %v2482_v56 = vpop.f32.mrb[137].mxu0 }
 0x20c   : > { %3255 = vst [vmem:[%s4880_s9 + $0x58] sm:$0xff] %v3223_v2   ;;  %v3698_v38 = vadd.f32 %v3697_v63, %v3696_v53  ;;  %v2483_v44 = vadd.f32 %v2482_v56, %v2322_v29  ;;  %v3699_v27 = vpop.f32.mrb[138].mxu1  ;;  %v3775_v5 = vpop.f32.mrb[138].mxu0 }
 0x20d   : > { %3254 = vst [vmem:[%s4880_s9 + $0x50] sm:$0xff] %v3218_v4   ;;  %v2571_v21 = vmul.f32 0.2, %v2491_v30  ;;  %v2494_v60 = vadd.f32 %v3775_v5, %v2333_v23  ;;  %v3700_v51 = vpop.f32.mrb[139].mxu1  ;;  %v2485_v47 = vpop.f32.mrb[139].mxu0  ;;  %vm2539_vm8 = vcmp.ge.f32.partialorder %v2491_v30, 0.0 }
 0x20e   : > { %v2569_v39 = vmul.f32 0.2, %v2483_v44  ;;  %v3701_v41 = vadd.f32 %v3700_v51, %v3699_v27  ;;  %v2486_v32 = vadd.f32 %v2485_v47, %v2325_v57  ;;  %vm2537_vm9 = vcmp.ge.f32.partialorder %v2483_v44, 0.0 }
 0x20f   : > { %vm2540_vm10 = vcmp.ge.f32.partialorder %v2494_v60, 0.0  ;;  %v2572_v17 = vmul.f32 0.2, %v2494_v60  ;;  %v2338_v25 = vadd.f32 %v3698_v38, %v4843_v48  ;;  %v2603_v55 = vsel %vm2539_vm8, %v2491_v30, %v2571_v21 }
 0x210   : > { %vm2538_vm11 = vcmp.ge.f32.partialorder %v2486_v32, 0.0  ;;  %v2570_v33 = vmul.f32 0.2, %v2486_v32  ;;  %v2341_v24 = vadd.f32 %v3701_v41, %v4849_v12  ;;  %v2601_v11 = vsel %vm2537_vm9, %v2483_v44, %v2569_v39 }
 0x211   : > { %v2604_v61 = vsel %vm2540_vm10, %v2494_v60, %v2572_v17 }
 0x212   : > { %v3233_v3 = vpack.c.bf16 %v2604_v61, %v2603_v55  ;;  %v2602_v34 = vsel %vm2538_vm11, %v2486_v32, %v2570_v33  ;;  %v3702_v29 = vpop.f32.mrb[140].mxu1  ;;  %v3778_v50 = vpop.f32.mrb[140].mxu0 }
 0x213   : > { %v3228_v26 = vpack.c.bf16 %v2602_v34, %v2601_v11  ;;  %v3703_v57 = vpop.f32.mrb[141].mxu1  ;;  %v2498_v45 = vpop.f32.mrb[141].mxu0 }
 0x214   : > { %3257 = vst [vmem:[%s4880_s9 + $0x68] sm:$0xff] %v3233_v3   ;;  %v3704_v16 = vadd.f32 %v3703_v57, %v3702_v29  ;;  %v2499_v7 = vadd.f32 %v2498_v45, %v2338_v25  ;;  %v3705_v1 = vpop.f32.mrb[142].mxu1  ;;  %v3779_v48 = vpop.f32.mrb[142].mxu0 }
 0x215   : > { %3256 = vst [vmem:[%s4880_s9 + $0x60] sm:$0xff] %v3228_v26   ;;  %v3706_v20 = vpop.f32.mrb[143].mxu1  ;;  %v2501_v62 = vpop.f32.mrb[143].mxu0 }
 0x216   : > { %v2346_v12 = vadd.f32 %v3704_v16, %v4855_v8  ;;  %v3707_v0 = vadd.f32 %v3706_v20, %v3705_v1  ;;  %v2573_v43 = vmul.f32 0.2, %v2499_v7  ;;  %v2502_v18 = vadd.f32 %v2501_v62, %v2341_v24 }
 0x217   : > { %vm2541_vm12 = vcmp.ge.f32.partialorder %v2499_v7, 0.0 }
 0x218   : > { %v2507_v54 = vadd.f32 %v3778_v50, %v2346_v12  ;;  %v2349_v10 = vadd.f32 %v3707_v0, %v4861_v28  ;;  %vm2542_vm13 = vcmp.ge.f32.partialorder %v2502_v18, 0.0  ;;  %v2574_v6 = vmul.f32 0.2, %v2502_v18 }
 0x219   : > { %v2605_v49 = vsel %vm2541_vm12, %v2499_v7, %v2573_v43 }
 0x21a   : > { %v2575_v13 = vmul.f32 0.2, %v2507_v54  ;;  %v2510_v52 = vadd.f32 %v3779_v48, %v2349_v10  ;;  %vm2543_vm14 = vcmp.ge.f32.partialorder %v2507_v54, 0.0  ;;  %v2606_v37 = vsel %vm2542_vm13, %v2502_v18, %v2574_v6 }
 0x21b   : > { %v3238_v15 = vpack.c.bf16 %v2606_v37, %v2605_v49 }
 0x21c   : > { %vm2544_vm15 = vcmp.ge.f32.partialorder %v2510_v52, 0.0  ;;  %v2576_v9 = vmul.f32 0.2, %v2510_v52  ;;  %v2607_v8 = vsel %vm2543_vm14, %v2507_v54, %v2575_v13 }
 0x21d   : > { %3258 = vst [vmem:[%s4880_s9 + $0x70] sm:$0xff] %v3238_v15  }
 0x21e   : > { %v2608_v35 = vsel %vm2544_vm15, %v2510_v52, %v2576_v9 }
 0x21f   : > { %v3243_v46 = vpack.c.bf16 %v2608_v35, %v2607_v8 }
 0x221   : > { %3259 = vst [vmem:[%s4880_s9 + $0x78] sm:$0xff] %v3243_v46  }
 0x222 PF: > { %s13_s14 = sadd.s32 1, %s4123_s14   ;;  %s4951_s12 = smov %s4119_s13 }
 0x223   : > { %p10_p5 = scmp.ge.s32.totalorder %s13_s14, 4   ;;  %s4952_s13 = smov %s4954_s15 }
 0x225   :  { %12 = sbr.rel (!%p10_p5) target bundleno = 2 (0x2), region = 68 }

// kernel: _lambda_.10
= control target key start
LH: loop header
LB: loop body
LE: loop exit
PB: predicated region body
PF: predicated region fallthrough
CT: control target
= control target key end

     0   :  { %s2093_s12 = smov 0   ;;  %s2095_s13 = smov 0   ;;  %s2396_s0 = inlined_call_operand.vmem [shape: bf16[128,1152], index: 0, kind: input, shape index: {}]   ;;  %s2397_s1 = inlined_call_operand.vmem [shape: bf16[1152,128], index: 1, kind: input, shape index: {}]   ;;  %s2398_s2 = inlined_call_operand.vmem [shape: f32[1,128], index: 2, kind: input, shape index: {}]   ;;  %s2399_s3 = inlined_call_operand.vmem [shape: bf16[128,128], index: 3, kind: output, shape index: {}]  }
   0x1   :  { %s2097_s14 = smov 0  }
   0x2 LB: > { %s25_s15 = sadd.s32 1, %s2067_s13  ;;  %p1533_p0 = scmp.ge.s32.totalorder %s2071_s14, 1  ;;  %s2071_s14 = sphi %s2097_s14, %s13_s14   ;;  %s2067_s13 = sphi %s2095_s13, %s2401_s13   ;;  %s2063_s12 = sphi %s2093_s12, %s2400_s12  }
   0x3   : > { %p27_p1 = scmp.ge.s32.totalorder %s25_s15, 2  ;;  %p170_p2 = scmp.lt.s32.totalorder %s2071_s14, 3 }
   0x5   : > { %s2403_s15 = smov (%p27_p1, %s25_s15), 0  ;;  %p171_p3 = pnand %p1533_p0, %p170_p2 }
   0x6   : > { %v1925_v0 = vld [vmem:[%s2397_s1 + $0x40] sm:$0xff] (!%p171_p3)   ;;  %v1929_v4 = vld [vmem:[%s2397_s1 + $0x48] sm:$0xff] (!%p171_p3)   ;;  %v1933_v8 = vld [vmem:[%s2397_s1 + $0x50] sm:$0xff] (!%p171_p3)   ;;  %s1534_s23 = sshll.u32 (!%p171_p3), %s2063_s12, 3 }
   0x7   : > { %174 = sbr.rel (%p171_p3) target bundleno = 331 (0x14b), region = 32  ;;  %v1926_v1 = vld [vmem:[%s2397_s1 + $0xc0] sm:$0xff] (!%p171_p3)   ;;  %1688 = vmatprep.subr.bf16.mxu0 (!%p171_p3), %v1925_v0  ;;  %v1930_v5 = vld [vmem:[%s2397_s1 + $0xc8] sm:$0xff] (!%p171_p3)   ;;  %v1934_v9 = vld [vmem:[%s2397_s1 + $0xd0] sm:$0xff] (!%p171_p3)   ;;  %p206_p4 = scmp.lt.s32.totalorder (!%p171_p3), %s1534_s23, 15 }
   0x8   : > { %v1927_v2 = vld [vmem:[%s2397_s1] sm:$0xff] (!%p171_p3)   ;;  %1728 = vmatprep.subr.bf16.mxu1 (!%p171_p3), %v1926_v1  ;;  %v1931_v6 = vld [vmem:[%s2397_s1 + $0x8] sm:$0xff] (!%p171_p3)   ;;  %v1935_v10 = vld [vmem:[%s2397_s1 + $0x10] sm:$0xff] (!%p171_p3)  }
   0x9   : > { %v1928_v3 = vld [vmem:[%s2397_s1 + $0x80] sm:$0xff] (!%p171_p3)   ;;  %1689 = vmatpush3.bf16.msra.mxu0 (!%p171_p3), %v1927_v2  ;;  %v1932_v7 = vld [vmem:[%s2397_s1 + $0x88] sm:$0xff] (!%p171_p3)   ;;  %v1936_v11 = vld [vmem:[%s2397_s1 + $0x90] sm:$0xff] (!%p171_p3)  }
   0xa   : > { %1729 = vmatpush3.bf16.msra.mxu1 (!%p171_p3), %v1928_v3  ;;  %1690 = vmatprep.subr.bf16.mxu0 (!%p171_p3), %v1929_v4  ;;  %v1937_v12 = vld [vmem:[%s2397_s1 + $0x58] sm:$0xff] (!%p171_p3)   ;;  %v1941_v16 = vld [vmem:[%s2397_s1 + $0x60] sm:$0xff] (!%p171_p3)   ;;  %v1945_v20 = vld [vmem:[%s2397_s1 + $0x68] sm:$0xff] (!%p171_p3)  }
   0xb   : > { %1730 = vmatprep.subr.bf16.mxu1 (!%p171_p3), %v1930_v5  ;;  %v1938_v13 = vld [vmem:[%s2397_s1 + $0xd8] sm:$0xff] (!%p171_p3)   ;;  %v1942_v17 = vld [vmem:[%s2397_s1 + $0xe0] sm:$0xff] (!%p171_p3)   ;;  %v1946_v21 = vld [vmem:[%s2397_s1 + $0xe8] sm:$0xff] (!%p171_p3)  }
   0xc   : > { %v1939_v14 = vld [vmem:[%s2397_s1 + $0x18] sm:$0xff] (!%p171_p3)   ;;  %v1943_v18 = vld [vmem:[%s2397_s1 + $0x20] sm:$0xff] (!%p171_p3)   ;;  %v1947_v22 = vld [vmem:[%s2397_s1 + $0x28] sm:$0xff] (!%p171_p3)  }
   0xd   : > { %1691 = vmatpush3.bf16.msra.mxu0 (!%p171_p3), %v1931_v6  ;;  %v1940_v15 = vld [vmem:[%s2397_s1 + $0x98] sm:$0xff] (!%p171_p3)   ;;  %v1944_v19 = vld [vmem:[%s2397_s1 + $0xa0] sm:$0xff] (!%p171_p3)   ;;  %v1948_v23 = vld [vmem:[%s2397_s1 + $0xa8] sm:$0xff] (!%p171_p3)  }
   0xe   : > { %1731 = vmatpush3.bf16.msra.mxu1 %v1932_v7  ;;  %1692 = vmatprep.subr.bf16.mxu0 %v1933_v8  ;;  %s2405_s23 = smov (!%p206_p4, %s1534_s23), 15  ;;  %v1949_v24 = vld [vmem:[%s2397_s1 + $0x70] sm:$0xff]   ;;  %v1953_v28 = vld [vmem:[%s2397_s1 + $0x78] sm:$0xff]   ;;  %v1963_v36 = vld [vmem:[%s2397_s1 + $0x140] sm:$0xff]  }
   0xf   : > { %1732 = vmatprep.subr.bf16.mxu1 %v1934_v9  ;;  %v1950_v25 = vld [vmem:[%s2397_s1 + $0xf0] sm:$0xff]   ;;  %s1900_s22 = smul.u32 36, %s2405_s23  ;;  %v1954_v29 = vld [vmem:[%s2397_s1 + $0xf8] sm:$0xff]   ;;  %v1964_v37 = vld [vmem:[%s2397_s1 + $0x1c0] sm:$0xff]  }
  0x10   : > { %v1951_v26 = vld [vmem:[%s2397_s1 + $0x30] sm:$0xff]   ;;  %v1955_v30 = vld [vmem:[%s2397_s1 + $0x38] sm:$0xff]   ;;  %v1965_v38 = vld [vmem:[%s2397_s1 + $0x100] sm:$0xff]  }
  0x11   : > { %1693 = vmatpush3.bf16.msra.mxu0 %v1935_v10  ;;  %v1952_v27 = vld [vmem:[%s2397_s1 + $0xb0] sm:$0xff]   ;;  %s2210_s6 = scalar_lea.vmem %s2396_s0, %s1900_s22  ;;  %v1956_v31 = vld [vmem:[%s2397_s1 + $0xb8] sm:$0xff]   ;;  %v1966_v39 = vld [vmem:[%s2397_s1 + $0x180] sm:$0xff]  }
  0x12   : > { %1733 = vmatpush3.bf16.msra.mxu1 %v1936_v11  ;;  %1694 = vmatprep.subr.bf16.mxu0 %v1937_v12  ;;  %v1957_v32 = vld [vmem:[%s2210_s6] ss:$36 sps:$4 sm:$0xff]   ;;  %v1960_v34 = vld [vmem:[%s2210_s6 + $0x8] ss:$36 sps:$4 sm:$0xff]   ;;  %v1973_v45 = vld [vmem:[%s2210_s6 + $0x54] ss:$36 sps:$4 sm:$0xff]  }
  0x13   : > { %1734 = vmatprep.subr.bf16.mxu1 %v1938_v13  ;;  %v1959_v33 = vld [vmem:[%s2210_s6 + $0x4] ss:$36 sps:$4 sm:$0xff]   ;;  %v1962_v35 = vld [vmem:[%s2210_s6 + $0xc] ss:$36 sps:$4 sm:$0xff]   ;;  %v1981_v52 = vld [vmem:[%s2397_s1 + $0x158] sm:$0xff]  }
  0x14   : > { %1068 = vmatprep.mubr.bf16.mxu0 %v1959_v33  ;;  %1133 = vmatprep.mubr.bf16.mxu1 %v1962_v35  ;;  %v1967_v40 = vld [vmem:[%s2397_s1 + $0x148] sm:$0xff]   ;;  %v1976_v47 = vld [vmem:[%s2210_s6 + $0x50] ss:$36 sps:$4 sm:$0xff]   ;;  %v1982_v53 = vld [vmem:[%s2397_s1 + $0x1d8] sm:$0xff]  }
  0x15   : > { %1695 = vmatpush3.bf16.msra.mxu0 %v1939_v14  ;;  %v1968_v41 = vld [vmem:[%s2397_s1 + $0x1c8] sm:$0xff]   ;;  %v1977_v48 = vld [vmem:[%s2397_s1 + $0x150] sm:$0xff]   ;;  %v1983_v54 = vld [vmem:[%s2397_s1 + $0x118] sm:$0xff]  }
  0x16   : > { %1735 = vmatpush3.bf16.msra.mxu1 %v1940_v15  ;;  %1696 = vmatprep.subr.bf16.mxu0 %v1941_v16  ;;  %v1969_v42 = vld [vmem:[%s2397_s1 + $0x108] sm:$0xff]   ;;  %v1978_v49 = vld [vmem:[%s2397_s1 + $0x1d0] sm:$0xff]   ;;  %v1984_v55 = vld [vmem:[%s2397_s1 + $0x198] sm:$0xff]  }
  0x17   : > { %1736 = vmatprep.subr.bf16.mxu1 %v1942_v17  ;;  %v1970_v43 = vld [vmem:[%s2397_s1 + $0x188] sm:$0xff]   ;;  %v1979_v50 = vld [vmem:[%s2397_s1 + $0x110] sm:$0xff]   ;;  %v1987_v57 = vld [vmem:[%s2210_s6 + $0x9c] ss:$36 sps:$4 sm:$0xff]  }
  0x18   : > { %v1971_v44 = vld [vmem:[%s2210_s6 + $0x4c] ss:$36 sps:$4 sm:$0xff]   ;;  %v1985_v56 = vld [vmem:[%s2210_s6 + $0x94] ss:$36 sps:$4 sm:$0xff]   ;;  %v1991_v60 = vld [vmem:[%s2397_s1 + $0x160] sm:$0xff]  }
  0x19   : > { %1697 = vmatpush3.bf16.msra.mxu0 %v1943_v18  ;;  %v1975_v46 = vld [vmem:[%s2210_s6 + $0x48] ss:$36 sps:$4 sm:$0xff]   ;;  %v1980_v51 = vld [vmem:[%s2397_s1 + $0x190] sm:$0xff]   ;;  %v1990_v59 = vld [vmem:[%s2210_s6 + $0x98] ss:$36 sps:$4 sm:$0xff]  }
  0x1a   : > { %1737 = vmatpush3.bf16.msra.mxu1 %v1944_v19  ;;  %1698 = vmatprep.subr.bf16.mxu0 %v1945_v20  ;;  %v1989_v58 = vld [vmem:[%s2210_s6 + $0x90] ss:$36 sps:$4 sm:$0xff]   ;;  %v1992_v61 = vld [vmem:[%s2397_s1 + $0x1e0] sm:$0xff]   ;;  %v1995_v0 = vld [vmem:[%s2397_s1 + $0x168] sm:$0xff]  }
  0x1b   : > { %1738 = vmatprep.subr.bf16.mxu1 %v1946_v21  ;;  %v1993_v62 = vld [vmem:[%s2397_s1 + $0x120] sm:$0xff]   ;;  %v1996_v1 = vld [vmem:[%s2397_s1 + $0x1e8] sm:$0xff]   ;;  %v2003_v6 = vld [vmem:[%s2210_s6 + $0xd8] ss:$36 sps:$4 sm:$0xff]  }
  0x1c   : > { %v1994_v63 = vld [vmem:[%s2397_s1 + $0x1a0] sm:$0xff]   ;;  %v1997_v2 = vld [vmem:[%s2397_s1 + $0x128] sm:$0xff]   ;;  %v2005_v8 = vld [vmem:[%s2397_s1 + $0x170] sm:$0xff]  }
  0x1d   : > { %1699 = vmatpush3.bf16.msra.mxu0 %v1947_v22  ;;  %v1998_v3 = vld [vmem:[%s2397_s1 + $0x1a8] sm:$0xff]   ;;  %v1999_v4 = vld [vmem:[%s2210_s6 + $0xdc] ss:$36 sps:$4 sm:$0xff]   ;;  %v2006_v9 = vld [vmem:[%s2397_s1 + $0x1f0] sm:$0xff]  }
  0x1e   : > { %1739 = vmatpush3.bf16.msra.mxu1 %v1948_v23  ;;  %1700 = vmatprep.subr.bf16.mxu0 %v1949_v24  ;;  %v2001_v5 = vld [vmem:[%s2210_s6 + $0xe4] ss:$36 sps:$4 sm:$0xff]   ;;  %v2007_v10 = vld [vmem:[%s2397_s1 + $0x130] sm:$0xff]   ;;  %v2009_v12 = vld [vmem:[%s2397_s1 + $0x178] sm:$0xff]  }
  0x1f   : > { %1740 = vmatprep.subr.bf16.mxu1 %v1950_v25  ;;  %v2004_v7 = vld [vmem:[%s2210_s6 + $0xe0] ss:$36 sps:$4 sm:$0xff]   ;;  %v2008_v11 = vld [vmem:[%s2397_s1 + $0x1b0] sm:$0xff]   ;;  %v2010_v13 = vld [vmem:[%s2397_s1 + $0x1f8] sm:$0xff]  }
  0x20   : > { %v2011_v14 = vld [vmem:[%s2397_s1 + $0x138] sm:$0xff]   ;;  %v2013_v16 = vld [vmem:[%s2210_s6 + $0x10] ss:$36 sps:$4 sm:$0xff]   ;;  %v2019_v20 = vld [vmem:[%s2397_s1 + $0x200] sm:$0xff]  }
  0x21   : > { %1701 = vmatpush3.bf16.msra.mxu0 %v1951_v26  ;;  %v2012_v15 = vld [vmem:[%s2397_s1 + $0x1b8] sm:$0xff]   ;;  %v2020_v21 = vld [vmem:[%s2397_s1 + $0x208] sm:$0xff]   ;;  %v2026_v25 = vld [vmem:[%s2210_s6 + $0x60] ss:$36 sps:$4 sm:$0xff]  }
  0x22   : > { %1741 = vmatpush3.bf16.msra.mxu1 %v1952_v27  ;;  %1702 = vmatprep.subr.bf16.mxu0 %v1953_v28  ;;  %v2015_v17 = vld [vmem:[%s2210_s6 + $0x14] ss:$36 sps:$4 sm:$0xff]   ;;  %v2018_v19 = vld [vmem:[%s2210_s6 + $0x1c] ss:$36 sps:$4 sm:$0xff]   ;;  %v2023_v23 = vld [vmem:[%s2210_s6 + $0x64] ss:$36 sps:$4 sm:$0xff]  }
  0x23   : > { %1742 = vmatprep.subr.bf16.mxu1 %v1954_v29  ;;  %v2016_v18 = vld [vmem:[%s2210_s6 + $0x18] ss:$36 sps:$4 sm:$0xff]   ;;  %v2027_v26 = vld [vmem:[%s2397_s1 + $0x210] sm:$0xff]   ;;  %v2029_v27 = vld [vmem:[%s2210_s6 + $0xa4] ss:$36 sps:$4 sm:$0xff]  }
  0x24   : > { %v2021_v22 = vld [vmem:[%s2210_s6 + $0x5c] ss:$36 sps:$4 sm:$0xff]   ;;  %v2031_v28 = vld [vmem:[%s2210_s6 + $0xac] ss:$36 sps:$4 sm:$0xff]  }
  0x25   : > { %1703 = vmatpush3.bf16.msra.mxu0 %v1955_v30  ;;  %v2025_v24 = vld [vmem:[%s2210_s6 + $0x58] ss:$36 sps:$4 sm:$0xff]   ;;  %v2033_v30 = vld [vmem:[%s2210_s6 + $0xa0] ss:$36 sps:$4 sm:$0xff]   ;;  %v2037_v33 = vld [vmem:[%s2210_s6 + $0xec] ss:$36 sps:$4 sm:$0xff]  }
  0x26   : > { %1743 = vmatpush3.bf16.msra.mxu1 %v1956_v31  ;;  %1768 = vmatprep.subr.bf16.mxu0 %v1963_v36  ;;  %v2028_v29 = vld [vmem:[%s2397_s1 + $0x218] sm:$0xff]   ;;  %v2034_v31 = vld [vmem:[%s2210_s6 + $0xa8] ss:$36 sps:$4 sm:$0xff]  }
  0x27   : > { %1808 = vmatprep.subr.bf16.mxu1 %v1964_v37  ;;  %v2036_v35 = vld [vmem:[%s2397_s1 + $0x228] sm:$0xff]   ;;  %v2043_v37 = vld [vmem:[%s2397_s1 + $0x230] sm:$0xff]  }
  0x28   : > { %1069 = vmatmul.mubr.bf16.vlgmr.msra.gmra.mrb[0].mxu0 %v1957_v32  ;;  %v2035_v32 = vld [vmem:[%s2397_s1 + $0x220] sm:$0xff]   ;;  %v2041_v36 = vld [vmem:[%s2210_s6 + $0xe8] ss:$36 sps:$4 sm:$0xff]  }
  0x29   : > { %1134 = vmatmul.mubr.bf16.vlgmr.msra.gmra.mrb[0].mxu1 %v1960_v34  ;;  %1769 = vmatpush3.bf16.msra.mxu0 %v1965_v38  ;;  %v2039_v34 = vld [vmem:[%s2210_s6 + $0xf4] ss:$36 sps:$4 sm:$0xff]  }
  0x2a   : > { %1809 = vmatpush3.bf16.msra.mxu1 %v1966_v39  ;;  %1770 = vmatprep.subr.bf16.mxu0 %v1967_v40  ;;  %v2042_v38 = vld [vmem:[%s2210_s6 + $0xf0] ss:$36 sps:$4 sm:$0xff]   ;;  %v2045_v39 = vld [vmem:[%s2210_s6 + $0x20] ss:$36 sps:$4 sm:$0xff]  }
  0x2b   : > { %1810 = vmatprep.subr.bf16.mxu1 %v1968_v41  ;;  %1076 = vmatprep.mubr.bf16.mxu0 %v1971_v44  ;;  %v2046_v40 = vld [vmem:[%s2210_s6 + $0xb0] ss:$36 sps:$4 sm:$0xff]   ;;  %v2044_v41 = vld [vmem:[%s2397_s1 + $0x238] sm:$0xff]  }
  0x2c   : > { %1141 = vmatprep.mubr.bf16.mxu1 %v1973_v45 }
  0x2d   : > { %1771 = vmatpush3.bf16.msra.mxu0 %v1969_v42  ;;  %v2047_v42 = vld [vmem:[%s2210_s6 + $0x68] ss:$36 sps:$4 sm:$0xff]  }
  0x2e   : > { %1811 = vmatpush3.bf16.msra.mxu1 %v1970_v43  ;;  %1772 = vmatprep.subr.bf16.mxu0 %v1977_v48  ;;  %v2048_v43 = vld [vmem:[%s2210_s6 + $0xf8] ss:$36 sps:$4 sm:$0xff]   ;;  %s1537_s6 = sshll.u32 %s2405_s23, 2 }
  0x2f   : > { %1812 = vmatprep.subr.bf16.mxu1 %v1978_v49  ;;  %s226_s7 = scalar_lea.vmem %s2399_s3, %s1537_s6 }
  0x30   : > { %1077 = vmatmul.mubr.bf16.gmra.mrb[4].mxu0 %v1975_v46  ;;  %v1538_v46 = vld [vmem:[%s2398_s2] ss:$0 sm:$0xff] }
  0x31   : > { %1142 = vmatmul.mubr.bf16.gmra.mrb[4].mxu1 %v1976_v47  ;;  %1773 = vmatpush3.bf16.msra.mxu0 %v1979_v50 }
  0x32   : > { %1813 = vmatpush3.bf16.msra.mxu1 %v1980_v51  ;;  %1774 = vmatprep.subr.bf16.mxu0 %v1981_v52 }
  0x33   : > { %1814 = vmatprep.subr.bf16.mxu1 %v1982_v53  ;;  %1084 = vmatprep.mubr.bf16.mxu0 %v1985_v56 }
  0x34   : > { %1149 = vmatprep.mubr.bf16.mxu1 %v1987_v57 }
  0x35   : > { %1775 = vmatpush3.bf16.msra.mxu0 %v1983_v54 }
  0x36   : > { %1815 = vmatpush3.bf16.msra.mxu1 %v1984_v55  ;;  %1776 = vmatprep.subr.bf16.mxu0 %v1991_v60 }
  0x37   : > { %1816 = vmatprep.subr.bf16.mxu1 %v1992_v61 }
  0x38   : > { %1085 = vmatmul.mubr.bf16.gmra.mrb[8].mxu0 %v1989_v58 }
  0x39   : > { %1150 = vmatmul.mubr.bf16.gmra.mrb[8].mxu1 %v1990_v59  ;;  %1777 = vmatpush3.bf16.msra.mxu0 %v1993_v62 }
  0x3a   : > { %1817 = vmatpush3.bf16.msra.mxu1 %v1994_v63  ;;  %1778 = vmatprep.subr.bf16.mxu0 %v1995_v0 }
  0x3b   : > { %1818 = vmatprep.subr.bf16.mxu1 %v1996_v1  ;;  %1092 = vmatprep.mubr.bf16.mxu0 %v1999_v4 }
  0x3c   : > { %1157 = vmatprep.mubr.bf16.mxu1 %v2001_v5 }
  0x3d   : > { %1779 = vmatpush3.bf16.msra.mxu0 %v1997_v2 }
  0x3e   : > { %1819 = vmatpush3.bf16.msra.mxu1 %v1998_v3  ;;  %1780 = vmatprep.subr.bf16.mxu0 %v2005_v8 }
  0x3f   : > { %1820 = vmatprep.subr.bf16.mxu1 %v2006_v9 }
  0x40   : > { %1093 = vmatmul.mubr.bf16.gmra.mrb[12].mxu0 %v2003_v6 }
  0x41   : > { %1158 = vmatmul.mubr.bf16.gmra.mrb[12].mxu1 %v2004_v7  ;;  %1781 = vmatpush3.bf16.msra.mxu0 %v2007_v10 }
  0x42   : > { %1821 = vmatpush3.bf16.msra.mxu1 %v2008_v11  ;;  %1782 = vmatprep.subr.bf16.mxu0 %v2009_v12 }
  0x43   : > { %1822 = vmatprep.subr.bf16.mxu1 %v2010_v13  ;;  %1198 = vmatprep.mubr.bf16.mxu0 %v2015_v17 }
  0x44   : > { %1263 = vmatprep.mubr.bf16.mxu1 %v2018_v19 }
  0x45   : > { %1783 = vmatpush3.bf16.msra.mxu0 %v2011_v14 }
  0x46   : > { %1823 = vmatpush3.bf16.msra.mxu1 %v2012_v15  ;;  %1860 = vmatprep.subr.bf16.mxu0 %v2019_v20 }
  0x47   : > { %1884 = vmatprep.subr.bf16.mxu1 %v2019_v20 }
  0x48   : > { %1199 = vmatmul.mubr.bf16.vlgmr.msra.gmra.mrb[16].mxu0 %v2013_v16 }
  0x49   : > { %1264 = vmatmul.mubr.bf16.vlgmr.msra.gmra.mrb[16].mxu1 %v2016_v18  ;;  %1861 = vmatpush3.bf16.msra.mxu0 %v2019_v20 }
  0x4a   : > { %1892 = vmatpush3.bf16.msra.mxu1 %v2019_v20  ;;  %1862 = vmatprep.subr.bf16.mxu0 %v2020_v21 }
  0x4b   : > { %1885 = vmatprep.subr.bf16.mxu1 %v2020_v21  ;;  %1206 = vmatprep.mubr.bf16.mxu0 %v2021_v22 }
  0x4c   : > { %1271 = vmatprep.mubr.bf16.mxu1 %v2023_v23 }
  0x4d   : > { %1863 = vmatpush3.bf16.msra.mxu0 %v2020_v21 }
  0x4e   : > { %1893 = vmatpush3.bf16.msra.mxu1 %v2020_v21  ;;  %1864 = vmatprep.subr.bf16.mxu0 %v2027_v26 }
  0x4f   : > { %1886 = vmatprep.subr.bf16.mxu1 %v2027_v26 }
  0x50   : > { %1207 = vmatmul.mubr.bf16.gmra.mrb[20].mxu0 %v2025_v24 }
  0x51   : > { %1272 = vmatmul.mubr.bf16.gmra.mrb[20].mxu1 %v2026_v25  ;;  %1214 = vmatprep.mubr.bf16.mxu0 %v2029_v27 }
  0x52   : > { %1865 = vmatpush3.bf16.msra.mxu0 %v2027_v26  ;;  %1279 = vmatprep.mubr.bf16.mxu1 %v2031_v28 }
  0x53   : > { %1894 = vmatpush3.bf16.msra.mxu1 %v2027_v26  ;;  %1866 = vmatprep.subr.bf16.mxu0 %v2028_v29 }
  0x54   : > { %1887 = vmatprep.subr.bf16.mxu1 %v2028_v29 }
  0x56   : > { %1867 = vmatpush3.bf16.msra.mxu0 %v2028_v29 }
  0x57   : > { %1895 = vmatpush3.bf16.msra.mxu1 %v2028_v29  ;;  %1868 = vmatprep.subr.bf16.mxu0 %v2035_v32 }
  0x58   : > { %1215 = vmatmul.mubr.bf16.gmra.mrb[24].mxu0 %v2033_v30  ;;  %1888 = vmatprep.subr.bf16.mxu1 %v2035_v32 }
  0x59   : > { %1280 = vmatmul.mubr.bf16.gmra.mrb[24].mxu1 %v2034_v31  ;;  %1222 = vmatprep.mubr.bf16.mxu0 %v2037_v33 }
  0x5a   : > { %1869 = vmatpush3.bf16.msra.mxu0 %v2035_v32  ;;  %1287 = vmatprep.mubr.bf16.mxu1 %v2039_v34 }
  0x5b   : > { %1896 = vmatpush3.bf16.msra.mxu1 %v2035_v32  ;;  %1870 = vmatprep.subr.bf16.mxu0 %v2036_v35 }
  0x5c   : > { %1889 = vmatprep.subr.bf16.mxu1 %v2036_v35 }
  0x5e   : > { %1871 = vmatpush3.bf16.msra.mxu0 %v2036_v35 }
  0x5f   : > { %1897 = vmatpush3.bf16.msra.mxu1 %v2036_v35  ;;  %1872 = vmatprep.subr.bf16.mxu0 %v2043_v37 }
  0x60   : > { %1223 = vmatmul.mubr.bf16.gmra.mrb[28].mxu0 %v2041_v36  ;;  %1890 = vmatprep.subr.bf16.mxu1 %v2043_v37 }
  0x61   : > { %1288 = vmatmul.mubr.bf16.gmra.mrb[28].mxu1 %v2042_v38  ;;  %1876 = vmatprep.mubr.bf16.mxu0 %v2045_v39 }
  0x62   : > { %1873 = vmatpush3.bf16.msra.mxu0 %v2043_v37  ;;  %1880 = vmatprep.mubr.bf16.mxu1 %v2046_v40 }
  0x63   : > { %1898 = vmatpush3.bf16.msra.mxu1 %v2043_v37  ;;  %1874 = vmatprep.subr.bf16.mxu0 %v2044_v41 }
  0x64   : > { %1891 = vmatprep.subr.bf16.mxu1 %v2044_v41 }
  0x66   : > { %1875 = vmatpush3.bf16.msra.mxu0 %v2044_v41 }
  0x67   : > { %1899 = vmatpush3.bf16.msra.mxu1 %v2044_v41 }
  0x69   : > { %1877 = vmatmul.mubr.bf16.vlgmr.msra.gmra.mrb[32].mxu0 %v2047_v42 }
  0x6a   : > { %1881 = vmatmul.mubr.bf16.vlgmr.msra.gmra.mrb[32].mxu1 %v2048_v43 }
  0xfb   : > { %v1704_v44 = vpop.f32.mrb[0].mxu0 }
  0xfc   : > { %v1744_v45 = vpop.f32.mrb[0].mxu1  ;;  %v1705_v47 = vpop.f32.mrb[1].mxu0 }
  0xfd   : > { %v1706_v48 = vadd.f32 %v1705_v47, %v1704_v44  ;;  %v1745_v49 = vpop.f32.mrb[1].mxu1  ;;  %v1707_v50 = vpop.f32.mrb[2].mxu0 }
  0xfe   : > { %v1746_v51 = vadd.f32 %v1745_v49, %v1744_v45  ;;  %v1747_v52 = vpop.f32.mrb[2].mxu1  ;;  %v1708_v53 = vpop.f32.mrb[3].mxu0 }
  0xff   : > { %v1071_v54 = vadd.f32 %v1706_v48, %v1538_v46  ;;  %v1709_v55 = vadd.f32 %v1708_v53, %v1707_v50  ;;  %v1748_v56 = vpop.f32.mrb[3].mxu1 }
 0x100   : > { %v1749_v57 = vadd.f32 %v1748_v56, %v1747_v52 }
 0x101   : > { %v1136_v58 = vadd.f32 %v1746_v51, %v1071_v54  ;;  %v1074_v59 = vadd.f32 %v1709_v55, %v1538_v46 }
 0x103   : > { %v1139_v60 = vadd.f32 %v1749_v57, %v1074_v59  ;;  %v1710_v61 = vpop.f32.mrb[4].mxu0 }
 0x104   : > { %v1750_v62 = vpop.f32.mrb[4].mxu1  ;;  %v1711_v63 = vpop.f32.mrb[5].mxu0 }
 0x105   : > { %v1712_v0 = vadd.f32 %v1711_v63, %v1710_v61  ;;  %v1751_v1 = vpop.f32.mrb[5].mxu1  ;;  %v1713_v2 = vpop.f32.mrb[6].mxu0 }
 0x106   : > { %v1752_v3 = vadd.f32 %v1751_v1, %v1750_v62  ;;  %v1753_v4 = vpop.f32.mrb[6].mxu1  ;;  %v1714_v5 = vpop.f32.mrb[7].mxu0 }
 0x107   : > { %v1079_v6 = vadd.f32 %v1712_v0, %v1538_v46  ;;  %v1715_v7 = vadd.f32 %v1714_v5, %v1713_v2  ;;  %v1754_v8 = vpop.f32.mrb[7].mxu1 }
 0x108   : > { %v1755_v9 = vadd.f32 %v1754_v8, %v1753_v4 }
 0x109   : > { %v1144_v10 = vadd.f32 %v1752_v3, %v1079_v6  ;;  %v1082_v11 = vadd.f32 %v1715_v7, %v1538_v46 }
 0x10b   : > { %v1147_v12 = vadd.f32 %v1755_v9, %v1082_v11  ;;  %v1716_v13 = vpop.f32.mrb[8].mxu0 }
 0x10c   : > { %v1756_v14 = vpop.f32.mrb[8].mxu1  ;;  %v1717_v15 = vpop.f32.mrb[9].mxu0 }
 0x10d   : > { %v1718_v16 = vadd.f32 %v1717_v15, %v1716_v13  ;;  %v1757_v17 = vpop.f32.mrb[9].mxu1  ;;  %v1719_v18 = vpop.f32.mrb[10].mxu0 }
 0x10e   : > { %v1758_v19 = vadd.f32 %v1757_v17, %v1756_v14  ;;  %v1759_v20 = vpop.f32.mrb[10].mxu1  ;;  %v1720_v21 = vpop.f32.mrb[11].mxu0 }
 0x10f   : > { %v1087_v22 = vadd.f32 %v1718_v16, %v1538_v46  ;;  %v1721_v23 = vadd.f32 %v1720_v21, %v1719_v18  ;;  %v1760_v24 = vpop.f32.mrb[11].mxu1 }
 0x110   : > { %v1761_v25 = vadd.f32 %v1760_v24, %v1759_v20 }
 0x111   : > { %v1152_v26 = vadd.f32 %v1758_v19, %v1087_v22  ;;  %v1090_v27 = vadd.f32 %v1721_v23, %v1538_v46 }
 0x113   : > { %v1155_v28 = vadd.f32 %v1761_v25, %v1090_v27  ;;  %v1722_v29 = vpop.f32.mrb[12].mxu0 }
 0x114   : > { %v1762_v30 = vpop.f32.mrb[12].mxu1  ;;  %v1723_v31 = vpop.f32.mrb[13].mxu0 }
 0x115   : > { %v1763_v32 = vpop.f32.mrb[13].mxu1  ;;  %v1724_v33 = vadd.f32 %v1723_v31, %v1722_v29  ;;  %v1725_v35 = vpop.f32.mrb[14].mxu0 }
 0x116   : > { %v1764_v34 = vadd.f32 %v1763_v32, %v1762_v30  ;;  %v1765_v36 = vpop.f32.mrb[14].mxu1  ;;  %v1726_v37 = vpop.f32.mrb[15].mxu0 }
 0x117   : > { %v1766_v38 = vpop.f32.mrb[15].mxu1  ;;  %v1095_v39 = vadd.f32 %v1724_v33, %v1538_v46  ;;  %v1727_v40 = vadd.f32 %v1726_v37, %v1725_v35 }
 0x118   : > { %v1767_v41 = vadd.f32 %v1766_v38, %v1765_v36 }
 0x119   : > { %v1160_v42 = vadd.f32 %v1764_v34, %v1095_v39  ;;  %v1098_v43 = vadd.f32 %v1727_v40, %v1538_v46 }
 0x11b   : > { %v1163_v44 = vadd.f32 %v1767_v41, %v1098_v43  ;;  %v1784_v45 = vpop.f32.mrb[16].mxu0 }
 0x11c   : > { %v1785_v47 = vpop.f32.mrb[17].mxu0  ;;  %v1824_v48 = vpop.f32.mrb[16].mxu1 }
 0x11d   : > { %v1786_v49 = vadd.f32 %v1785_v47, %v1784_v45  ;;  %v1787_v50 = vpop.f32.mrb[18].mxu0  ;;  %v1825_v51 = vpop.f32.mrb[17].mxu1 }
 0x11e   : > { %v1788_v52 = vpop.f32.mrb[19].mxu0  ;;  %v1826_v54 = vadd.f32 %v1825_v51, %v1824_v48  ;;  %v1827_v55 = vpop.f32.mrb[18].mxu1 }
 0x11f   : > { %v1201_v53 = vadd.f32 %v1786_v49, %v1136_v58  ;;  %v1789_v56 = vadd.f32 %v1788_v52, %v1787_v50  ;;  %v1828_v57 = vpop.f32.mrb[19].mxu1 }
 0x120   : > { %v1829_v61 = vadd.f32 %v1828_v57, %v1827_v55 }
 0x121   : > { %v1204_v59 = vadd.f32 %v1789_v56, %v1139_v60  ;;  %v1266_v62 = vadd.f32 %v1826_v54, %v1201_v53 }
 0x123   : > { %v1790_v63 = vpop.f32.mrb[20].mxu0  ;;  %v2377_v0 = vadd.f32 %v1829_v61, %v1204_v59 }
 0x124   : > { %v1791_v46 = vpop.f32.mrb[21].mxu0  ;;  %v1830_v1 = vpop.f32.mrb[20].mxu1 }
 0x125   : > { %v1792_v2 = vadd.f32 %v1791_v46, %v1790_v63  ;;  %v1793_v3 = vpop.f32.mrb[22].mxu0  ;;  %v1831_v4 = vpop.f32.mrb[21].mxu1 }
 0x126   : > { %v1794_v5 = vpop.f32.mrb[23].mxu0  ;;  %v1832_v7 = vadd.f32 %v1831_v4, %v1830_v1  ;;  %v1833_v8 = vpop.f32.mrb[22].mxu1 }
 0x127   : > { %v1209_v6 = vadd.f32 %v1792_v2, %v1144_v10  ;;  %v1795_v58 = vadd.f32 %v1794_v5, %v1793_v3  ;;  %v1834_v9 = vpop.f32.mrb[23].mxu1 }
 0x128   : > { %v1835_v13 = vadd.f32 %v1834_v9, %v1833_v8 }
 0x129   : > { %v1212_v11 = vadd.f32 %v1795_v58, %v1147_v12  ;;  %v1274_v14 = vadd.f32 %v1832_v7, %v1209_v6 }
 0x12b   : > { %v1796_v60 = vpop.f32.mrb[24].mxu0  ;;  %v1277_v15 = vadd.f32 %v1835_v13, %v1212_v11 }
 0x12c   : > { %v1797_v16 = vpop.f32.mrb[25].mxu0  ;;  %v1836_v17 = vpop.f32.mrb[24].mxu1 }
 0x12d   : > { %v1798_v18 = vadd.f32 %v1797_v16, %v1796_v60  ;;  %v1799_v19 = vpop.f32.mrb[26].mxu0  ;;  %v1837_v20 = vpop.f32.mrb[25].mxu1 }
 0x12e   : > { %v1800_v21 = vpop.f32.mrb[27].mxu0  ;;  %v1838_v23 = vadd.f32 %v1837_v20, %v1836_v17  ;;  %v1839_v24 = vpop.f32.mrb[26].mxu1 }
 0x12f   : > { %v1217_v22 = vadd.f32 %v1798_v18, %v1152_v26  ;;  %v1801_v25 = vadd.f32 %v1800_v21, %v1799_v19  ;;  %v1840_v10 = vpop.f32.mrb[27].mxu1 }
 0x130   : > { %v1841_v29 = vadd.f32 %v1840_v10, %v1839_v24 }
 0x131   : > { %v1220_v27 = vadd.f32 %v1801_v25, %v1155_v28  ;;  %v1282_v30 = vadd.f32 %v1838_v23, %v1217_v22 }
 0x133   : > { %v1802_v31 = vpop.f32.mrb[28].mxu0  ;;  %v1285_v12 = vadd.f32 %v1841_v29, %v1220_v27 }
 0x134   : > { %v1803_v32 = vpop.f32.mrb[29].mxu0  ;;  %v1842_v33 = vpop.f32.mrb[28].mxu1 }
 0x135   : > { %v1804_v34 = vadd.f32 %v1803_v32, %v1802_v31  ;;  %v1805_v35 = vpop.f32.mrb[30].mxu0  ;;  %v1843_v36 = vpop.f32.mrb[29].mxu1 }
 0x136   : > { %v1806_v37 = vpop.f32.mrb[31].mxu0  ;;  %v1844_v39 = vadd.f32 %v1843_v36, %v1842_v33  ;;  %v1845_v40 = vpop.f32.mrb[30].mxu1 }
 0x137   : > { %v1225_v38 = vadd.f32 %v1804_v34, %v1160_v42  ;;  %v1807_v41 = vadd.f32 %v1806_v37, %v1805_v35  ;;  %v1846_v26 = vpop.f32.mrb[31].mxu1 }
 0x138   : > { %v1847_v45 = vadd.f32 %v1846_v26, %v1845_v40 }
 0x139   : > { %v1228_v43 = vadd.f32 %v1807_v41, %v1163_v44  ;;  %v1290_v47 = vadd.f32 %v1844_v39, %v1225_v38 }
 0x13b   : > { %v1293_v48 = vadd.f32 %v1847_v45, %v1228_v43 }
 0x13c   : > { %v1878_v28 = vpop.f32.mrb[32].mxu0 }
 0x13d   : > { %v1339_v49 = vadd.f32 %v1878_v28, %v1274_v14  ;;  %v1882_v50 = vpop.f32.mrb[32].mxu1  ;;  %v1330_v51 = vpop.f32.mrb[33].mxu0 }
 0x13e   : > { %v1355_v52 = vadd.f32 %v1882_v50, %v1290_v47  ;;  %v1331_v53 = vadd.f32 %v1330_v51, %v1266_v62  ;;  %v1346_v54 = vpop.f32.mrb[33].mxu1  ;;  %v1879_v55 = vpop.f32.mrb[34].mxu0 }
 0x13f   : > { %v1371_v56 = vmul.f32 0.2, %v1339_v49  ;;  %v1347_v57 = vadd.f32 %v1346_v54, %v1282_v30  ;;  %v1342_v42 = vadd.f32 %v1879_v55, %v1277_v15  ;;  %v1883_v59 = vpop.f32.mrb[34].mxu1  ;;  %v1333_v61 = vpop.f32.mrb[35].mxu0  ;;  %vm1363_vm0 = vcmp.ge.f32.partialorder %v1339_v49, 0.0 }
 0x140   : > { %vm1367_vm1 = vcmp.ge.f32.partialorder %v1355_v52, 0.0  ;;  %v1375_v44 = vmul.f32 0.2, %v1355_v52  ;;  %v1349_v63 = vpop.f32.mrb[35].mxu1  ;;  %vm1361_vm3 = vcmp.ge.f32.partialorder %v1331_v53, 0.0  ;;  %v1358_v2 = vadd.f32 %v1883_v59, %v1293_v48 }
 0x141   : > { %vm1364_vm2 = vcmp.ge.f32.partialorder %v1342_v42, 0.0  ;;  %v1369_v46 = vmul.f32 0.2, %v1331_v53  ;;  %v1372_v1 = vmul.f32 0.2, %v1342_v42  ;;  %v1379_v3 = vsel %vm1363_vm0, %v1339_v49, %v1371_v56 }
 0x142   : > { %vm1365_vm4 = vcmp.ge.f32.partialorder %v1347_v57, 0.0  ;;  %v1334_v62 = vadd.f32 %v1333_v61, %v2377_v0  ;;  %v1350_v4 = vadd.f32 %v1349_v63, %v1285_v12  ;;  %v1373_v5 = vmul.f32 0.2, %v1347_v57 }
 0x143   : > { %v1380_v6 = vsel %vm1364_vm2, %v1342_v42, %v1372_v1  ;;  %vm1368_vm5 = vcmp.ge.f32.partialorder %v1358_v2, 0.0  ;;  %v1376_v7 = vmul.f32 0.2, %v1358_v2  ;;  %v1383_v9 = vsel %vm1367_vm1, %v1355_v52, %v1375_v44 }
 0x144   : > { %v1673_v8 = vpack.c.bf16 %v1380_v6, %v1379_v3  ;;  %vm1362_vm6 = vcmp.ge.f32.partialorder %v1334_v62, 0.0  ;;  %v1370_v58 = vmul.f32 0.2, %v1334_v62  ;;  %vm1366_vm7 = vcmp.ge.f32.partialorder %v1350_v4, 0.0 }
 0x145   : > { %v1384_v11 = vsel %vm1368_vm5, %v1358_v2, %v1376_v7  ;;  %v1374_v13 = vmul.f32 0.2, %v1350_v4  ;;  %v1377_v14 = vsel %vm1361_vm3, %v1331_v53, %v1369_v46  ;;  %v1381_v15 = vsel %vm1365_vm4, %v1347_v57, %v1373_v5 }
 0x146   : > { %1685 = vst [vmem:[%s226_s7 + $0x8] sm:$0xff] %v1673_v8   ;;  %v1683_v0 = vpack.c.bf16 %v1384_v11, %v1383_v9  ;;  %v1378_v60 = vsel %vm1362_vm6, %v1334_v62, %v1370_v58 }
 0x147   : > { %v1668_v16 = vpack.c.bf16 %v1378_v60, %v1377_v14  ;;  %v1382_v17 = vsel %vm1366_vm7, %v1350_v4, %v1374_v13 }
 0x148   : > { %1687 = vst [vmem:[%s226_s7 + $0x18] sm:$0xff] %v1683_v0   ;;  %v1678_v18 = vpack.c.bf16 %v1382_v17, %v1381_v15 }
 0x149   : > { %1669 = vst [vmem:[%s226_s7] sm:$0xff] %v1668_v16  }
 0x14a   : > { %1686 = vst [vmem:[%s226_s7 + $0x10] sm:$0xff] %v1678_v18  }
 0x14b PF: > { %s13_s14 = sadd.s32 1, %s2071_s14   ;;  %s2400_s12 = smov %s2067_s13 }
 0x14c   : > { %p10_p5 = scmp.ge.s32.totalorder %s13_s14, 4   ;;  %s2401_s13 = smov %s2403_s15 }
 0x14e   :  { %12 = sbr.rel (!%p10_p5) target bundleno = 2 (0x2), region = 68 }

// kernel: _lambda_.12
= control target key start
LH: loop header
LB: loop body
LE: loop exit
PB: predicated region body
PF: predicated region fallthrough
CT: control target
= control target key end

     0   :  { %s1570_s12 = smov 0   ;;  %s1572_s13 = smov 0   ;;  %s1840_s0 = inlined_call_operand.vmem [shape: bf16[32,1152], index: 0, kind: input, shape index: {}]   ;;  %s1841_s1 = inlined_call_operand.vmem [shape: bf16[1152,128], index: 1, kind: input, shape index: {}]   ;;  %s1842_s2 = inlined_call_operand.vmem [shape: f32[1,128], index: 2, kind: input, shape index: {}]   ;;  %s1843_s3 = inlined_call_operand.vmem [shape: bf16[32,128], index: 3, kind: output, shape index: {}]  }
   0x1   :  { %s1574_s14 = smov 0  }
   0x2 LB: > { %s25_s15 = sadd.s32 1, %s1542_s13  ;;  %p1197_p0 = scmp.ge.s32.totalorder %s1546_s14, 1  ;;  %s1546_s14 = sphi %s1574_s14, %s13_s14   ;;  %s1542_s13 = sphi %s1572_s13, %s1845_s13   ;;  %s1538_s12 = sphi %s1570_s12, %s1844_s12  }
   0x3   : > { %p27_p1 = scmp.ge.s32.totalorder %s25_s15, 2  ;;  %p170_p2 = scmp.lt.s32.totalorder %s1546_s14, 3 }
   0x5   : > { %s1847_s15 = smov (%p27_p1, %s25_s15), 0  ;;  %p171_p3 = pnand %p1197_p0, %p170_p2 }
   0x6   : > { %v1439_v0 = vld [vmem:[%s1841_s1 + $0x40] sm:$0xff] (!%p171_p3)   ;;  %v1443_v4 = vld [vmem:[%s1841_s1 + $0x48] sm:$0xff] (!%p171_p3)   ;;  %v1447_v8 = vld [vmem:[%s1841_s1 + $0x50] sm:$0xff] (!%p171_p3)   ;;  %s1198_s21 = sshll.u32 (!%p171_p3), %s1538_s12, 1  ;;  %vm1549_vm0 = vmmov (!%p171_p3), 0  }
   0x7   : > { %174 = sbr.rel (%p171_p3) target bundleno = 325 (0x145), region = 32  ;;  %v1440_v1 = vld [vmem:[%s1841_s1] sm:$0xff] (!%p171_p3)   ;;  %1295 = vmatprep.subr.bf16.mxu0 (!%p171_p3), %v1439_v0  ;;  %v1444_v5 = vld [vmem:[%s1841_s1 + $0x8] sm:$0xff] (!%p171_p3)   ;;  %v1448_v9 = vld [vmem:[%s1841_s1 + $0x10] sm:$0xff] (!%p171_p3)   ;;  %p206_p4 = scmp.lt.s32.totalorder (!%p171_p3), %s1198_s21, 3 }
   0x8   : > { %v1441_v2 = vld [vmem:[%s1841_s1 + $0xc0] sm:$0xff] (!%p171_p3)   ;;  %1296 = vmatpush3.bf16.msra.mxu0 (!%p171_p3), %v1440_v1  ;;  %v1445_v6 = vld [vmem:[%s1841_s1 + $0xc8] sm:$0xff] (!%p171_p3)   ;;  %v1449_v10 = vld [vmem:[%s1841_s1 + $0xd0] sm:$0xff] (!%p171_p3)  }
   0x9   : > { %v1442_v3 = vld [vmem:[%s1841_s1 + $0x80] sm:$0xff] (!%p171_p3)   ;;  %1317 = vmatprep.subr.bf16.mxu1 (!%p171_p3), %v1441_v2  ;;  %1297 = vmatprep.subr.bf16.mxu0 (!%p171_p3), %v1443_v4  ;;  %v1446_v7 = vld [vmem:[%s1841_s1 + $0x88] sm:$0xff] (!%p171_p3)   ;;  %v1450_v11 = vld [vmem:[%s1841_s1 + $0x90] sm:$0xff] (!%p171_p3)  }
   0xa   : > { %1318 = vmatpush3.bf16.msra.mxu1 (!%p171_p3), %v1442_v3  ;;  %v1451_v12 = vld [vmem:[%s1841_s1 + $0x58] sm:$0xff] (!%p171_p3)   ;;  %v1455_v16 = vld [vmem:[%s1841_s1 + $0x60] sm:$0xff] (!%p171_p3)   ;;  %v1459_v20 = vld [vmem:[%s1841_s1 + $0x68] sm:$0xff] (!%p171_p3)  }
   0xb   : > { %1319 = vmatprep.subr.bf16.mxu1 (!%p171_p3), %v1445_v6  ;;  %v1452_v13 = vld [vmem:[%s1841_s1 + $0x18] sm:$0xff] (!%p171_p3)   ;;  %v1456_v17 = vld [vmem:[%s1841_s1 + $0x20] sm:$0xff] (!%p171_p3)   ;;  %v1460_v21 = vld [vmem:[%s1841_s1 + $0x28] sm:$0xff] (!%p171_p3)   ;;  %v1548_v6 = vmov (!%p171_p3), 0.0  }
   0xc   : > { %1298 = vmatpush3.bf16.msra.mxu0 (!%p171_p3), %v1444_v5  ;;  %v1453_v14 = vld [vmem:[%s1841_s1 + $0xd8] sm:$0xff] (!%p171_p3)   ;;  %v1457_v18 = vld [vmem:[%s1841_s1 + $0xe0] sm:$0xff] (!%p171_p3)   ;;  %v1461_v22 = vld [vmem:[%s1841_s1 + $0xe8] sm:$0xff] (!%p171_p3)  }
   0xd   : > { %1299 = vmatprep.subr.bf16.mxu0 (!%p171_p3), %v1447_v8  ;;  %v1454_v15 = vld [vmem:[%s1841_s1 + $0x98] sm:$0xff] (!%p171_p3)   ;;  %v1458_v19 = vld [vmem:[%s1841_s1 + $0xa0] sm:$0xff] (!%p171_p3)   ;;  %v1462_v23 = vld [vmem:[%s1841_s1 + $0xa8] sm:$0xff] (!%p171_p3)  }
   0xe   : > { %1320 = vmatpush3.bf16.msra.mxu1 %v1446_v7  ;;  %s1849_s21 = smov (!%p206_p4, %s1198_s21), 3  ;;  %v1463_v24 = vld [vmem:[%s1841_s1 + $0x70] sm:$0xff]   ;;  %v1467_v28 = vld [vmem:[%s1841_s1 + $0x78] sm:$0xff]   ;;  %v1474_v34 = vld [vmem:[%s1841_s1 + $0x140] sm:$0xff]  }
   0xf   : > { %1321 = vmatprep.subr.bf16.mxu1 %v1449_v10  ;;  %s1412_s20 = smul.u32 36, %s1849_s21  ;;  %v1464_v25 = vld [vmem:[%s1841_s1 + $0x30] sm:$0xff]   ;;  %v1468_v29 = vld [vmem:[%s1841_s1 + $0x38] sm:$0xff]   ;;  %v1478_v37 = vld [vmem:[%s1841_s1 + $0x100] sm:$0xff]  }
  0x10   : > { %1300 = vmatpush3.bf16.msra.mxu0 %v1448_v9  ;;  %v1465_v26 = vld [vmem:[%s1841_s1 + $0xf0] sm:$0xff]   ;;  %v1469_v30 = vld [vmem:[%s1841_s1 + $0xf8] sm:$0xff]   ;;  %v1479_v38 = vld [vmem:[%s1841_s1 + $0x1c0] sm:$0xff]  }
  0x11   : > { %1301 = vmatprep.subr.bf16.mxu0 %v1451_v12  ;;  %v1466_v27 = vld [vmem:[%s1841_s1 + $0xb0] sm:$0xff]   ;;  %s1684_s4 = scalar_lea.vmem %s1840_s0, %s1412_s20  ;;  %v1473_v33 = vld [vmem:[%s1841_s1 + $0xb8] sm:$0xff]   ;;  %v1480_v39 = vld [vmem:[%s1841_s1 + $0x180] sm:$0xff]  }
  0x12   : > { %1322 = vmatpush3.bf16.msra.mxu1 %v1450_v11  ;;  %v1470_v31 = vld [vmem:[%s1684_s4] ss:$36 sps:$4 sm:$0xff]   ;;  %v1475_v35 = vld [vmem:[%s1684_s4 + $0x8] ss:$36 sps:$4 sm:$0xff]   ;;  %v1485_v44 = vld [vmem:[%s1841_s1 + $0x150] sm:$0xff]  }
  0x13   : > { %1323 = vmatprep.subr.bf16.mxu1 %v1453_v14  ;;  %v1472_v32 = vld [vmem:[%s1684_s4 + $0x4] ss:$36 sps:$4 sm:$0xff]   ;;  %v1477_v36 = vld [vmem:[%s1684_s4 + $0xc] ss:$36 sps:$4 sm:$0xff]   ;;  %v1489_v48 = vld [vmem:[%s1841_s1 + $0x158] sm:$0xff]  }
  0x14   : > { %1302 = vmatpush3.bf16.msra.mxu0 %v1452_v13  ;;  %900 = vmatprep.mubr.bf16.mxu0 %v1472_v32  ;;  %v1481_v40 = vld [vmem:[%s1841_s1 + $0x148] sm:$0xff]   ;;  %v1486_v45 = vld [vmem:[%s1841_s1 + $0x110] sm:$0xff]   ;;  %v1490_v49 = vld [vmem:[%s1841_s1 + $0x118] sm:$0xff]  }
  0x15   : > { %1303 = vmatprep.subr.bf16.mxu0 %v1455_v16  ;;  %941 = vmatprep.mubr.bf16.mxu1 %v1477_v36  ;;  %v1482_v41 = vld [vmem:[%s1841_s1 + $0x108] sm:$0xff]   ;;  %v1487_v46 = vld [vmem:[%s1841_s1 + $0x1d0] sm:$0xff]   ;;  %v1491_v50 = vld [vmem:[%s1841_s1 + $0x1d8] sm:$0xff]  }
  0x16   : > { %1324 = vmatpush3.bf16.msra.mxu1 %v1454_v15  ;;  %v1483_v42 = vld [vmem:[%s1841_s1 + $0x1c8] sm:$0xff]   ;;  %v1488_v47 = vld [vmem:[%s1841_s1 + $0x190] sm:$0xff]   ;;  %v1492_v51 = vld [vmem:[%s1841_s1 + $0x198] sm:$0xff]  }
  0x17   : > { %1325 = vmatprep.subr.bf16.mxu1 %v1457_v18  ;;  %v1484_v43 = vld [vmem:[%s1841_s1 + $0x188] sm:$0xff]   ;;  %v1493_v52 = vld [vmem:[%s1841_s1 + $0x160] sm:$0xff]   ;;  %v1501_v60 = vld [vmem:[%s1841_s1 + $0x170] sm:$0xff]  }
  0x18   : > { %1304 = vmatpush3.bf16.msra.mxu0 %v1456_v17  ;;  %v1494_v53 = vld [vmem:[%s1841_s1 + $0x120] sm:$0xff]   ;;  %v1497_v56 = vld [vmem:[%s1841_s1 + $0x168] sm:$0xff]   ;;  %v1502_v61 = vld [vmem:[%s1841_s1 + $0x130] sm:$0xff]  }
  0x19   : > { %1305 = vmatprep.subr.bf16.mxu0 %v1459_v20  ;;  %v1495_v54 = vld [vmem:[%s1841_s1 + $0x1e0] sm:$0xff]   ;;  %v1498_v57 = vld [vmem:[%s1841_s1 + $0x128] sm:$0xff]   ;;  %v1503_v62 = vld [vmem:[%s1841_s1 + $0x1f0] sm:$0xff]  }
  0x1a   : > { %1326 = vmatpush3.bf16.msra.mxu1 %v1458_v19  ;;  %v1496_v55 = vld [vmem:[%s1841_s1 + $0x1a0] sm:$0xff]   ;;  %v1499_v58 = vld [vmem:[%s1841_s1 + $0x1e8] sm:$0xff]   ;;  %v1504_v63 = vld [vmem:[%s1841_s1 + $0x1b0] sm:$0xff]  }
  0x1b   : > { %1327 = vmatprep.subr.bf16.mxu1 %v1461_v22  ;;  %v1500_v59 = vld [vmem:[%s1841_s1 + $0x1a8] sm:$0xff]   ;;  %v1505_v0 = vld [vmem:[%s1841_s1 + $0x178] sm:$0xff]   ;;  %v1508_v3 = vld [vmem:[%s1684_s4 + $0x10] ss:$36 sps:$4 sm:$0xff]  }
  0x1c   : > { %1306 = vmatpush3.bf16.msra.mxu0 %v1460_v21  ;;  %v1506_v1 = vld [vmem:[%s1841_s1 + $0x138] sm:$0xff]   ;;  %v1515_v9 = vld [vmem:[%s1841_s1 + $0x200] sm:$0xff]   ;;  %v1516_v10 = vld [vmem:[%s1841_s1 + $0x208] sm:$0xff]  }
  0x1d   : > { %1307 = vmatprep.subr.bf16.mxu0 %v1463_v24  ;;  %v1507_v2 = vld [vmem:[%s1841_s1 + $0x1f8] sm:$0xff]   ;;  %v1517_v11 = vld [vmem:[%s1841_s1 + $0x210] sm:$0xff]   ;;  %v1519_v13 = vld [vmem:[%s1841_s1 + $0x220] sm:$0xff]  }
  0x1e   : > { %1328 = vmatpush3.bf16.msra.mxu1 %v1462_v23  ;;  %v1510_v4 = vld [vmem:[%s1684_s4 + $0x14] ss:$36 sps:$4 sm:$0xff]   ;;  %v1514_v8 = vld [vmem:[%s1684_s4 + $0x1c] ss:$36 sps:$4 sm:$0xff]   ;;  %v1520_v14 = vld [vmem:[%s1841_s1 + $0x228] sm:$0xff]  }
  0x1f   : > { %1329 = vmatprep.subr.bf16.mxu1 %v1465_v26  ;;  %v1511_v5 = vld [vmem:[%s1841_s1 + $0x1b8] sm:$0xff]   ;;  %v1521_v15 = vld [vmem:[%s1841_s1 + $0x230] sm:$0xff]   ;;  %v1523_v17 = vld [vmem:[%s1684_s4 + $0x20] ss:$36 sps:$4 sm:$0xff]  }
  0x20   : > { %1308 = vmatpush3.bf16.msra.mxu0 %v1464_v25  ;;  %v1512_v7 = vld [vmem:[%s1684_s4 + $0x18] ss:$36 sps:$4 sm:$0xff]   ;;  %v1202_v19 = vld [vmem:[%s1842_s2] ss:$0 sm:$0xff]  ;;  %s1201_s4 = sshll.u32 %s1849_s21, 2 }
  0x21   : > { %1309 = vmatprep.subr.bf16.mxu0 %v1467_v28  ;;  %v1518_v12 = vld [vmem:[%s1841_s1 + $0x218] sm:$0xff]   ;;  %s226_s7 = scalar_lea.vmem %s1843_s3, %s1201_s4 }
  0x22   : > { %1330 = vmatpush3.bf16.msra.mxu1 %v1466_v27  ;;  %v1522_v16 = vld [vmem:[%s1841_s1 + $0x238] sm:$0xff]  }
  0x23   : > { %1331 = vmatprep.subr.bf16.mxu1 %v1469_v30 }
  0x24   : > { %1310 = vmatpush3.bf16.msra.mxu0 %v1468_v29 }
  0x25   : > { %1339 = vmatprep.subr.bf16.mxu0 %v1474_v34 }
  0x26   : > { %1332 = vmatpush3.bf16.msra.mxu1 %v1473_v33 }
  0x27   : > { %901 = vmatmul.mubr.bf16.vlgmr.msra.gmra.mrb[0].mxu0 %v1470_v31  ;;  %1361 = vmatprep.subr.bf16.mxu1 %v1479_v38 }
  0x28   : > { %1340 = vmatpush3.bf16.msra.mxu0 %v1478_v37  ;;  %982 = vmatprep.mubr.bf16.mxu0 %v1510_v4 }
  0x29   : > { %942 = vmatmul.mubr.bf16.vlgmr.msra.gmra.mrb[0].mxu1 %v1475_v35  ;;  %1341 = vmatprep.subr.bf16.mxu0 %v1481_v40 }
  0x2a   : > { %1362 = vmatpush3.bf16.msra.mxu1 %v1480_v39  ;;  %1023 = vmatprep.mubr.bf16.mxu1 %v1514_v8 }
  0x2b   : > { %1363 = vmatprep.subr.bf16.mxu1 %v1483_v42 }
  0x2c   : > { %1342 = vmatpush3.bf16.msra.mxu0 %v1482_v41 }
  0x2d   : > { %1343 = vmatprep.subr.bf16.mxu0 %v1485_v44 }
  0x2e   : > { %1364 = vmatpush3.bf16.msra.mxu1 %v1484_v43 }
  0x2f   : > { %1365 = vmatprep.subr.bf16.mxu1 %v1487_v46 }
  0x30   : > { %1344 = vmatpush3.bf16.msra.mxu0 %v1486_v45 }
  0x31   : > { %1345 = vmatprep.subr.bf16.mxu0 %v1489_v48 }
  0x32   : > { %1366 = vmatpush3.bf16.msra.mxu1 %v1488_v47 }
  0x33   : > { %1367 = vmatprep.subr.bf16.mxu1 %v1491_v50 }
  0x34   : > { %1346 = vmatpush3.bf16.msra.mxu0 %v1490_v49 }
  0x35   : > { %1347 = vmatprep.subr.bf16.mxu0 %v1493_v52 }
  0x36   : > { %1368 = vmatpush3.bf16.msra.mxu1 %v1492_v51 }
  0x37   : > { %1369 = vmatprep.subr.bf16.mxu1 %v1495_v54 }
  0x38   : > { %1348 = vmatpush3.bf16.msra.mxu0 %v1494_v53 }
  0x39   : > { %1349 = vmatprep.subr.bf16.mxu0 %v1497_v56 }
  0x3a   : > { %1370 = vmatpush3.bf16.msra.mxu1 %v1496_v55 }
  0x3b   : > { %1371 = vmatprep.subr.bf16.mxu1 %v1499_v58 }
  0x3c   : > { %1350 = vmatpush3.bf16.msra.mxu0 %v1498_v57 }
  0x3d   : > { %1351 = vmatprep.subr.bf16.mxu0 %v1501_v60 }
  0x3e   : > { %1372 = vmatpush3.bf16.msra.mxu1 %v1500_v59 }
  0x3f   : > { %1373 = vmatprep.subr.bf16.mxu1 %v1503_v62 }
  0x40   : > { %1352 = vmatpush3.bf16.msra.mxu0 %v1502_v61 }
  0x41   : > { %1353 = vmatprep.subr.bf16.mxu0 %v1505_v0 }
  0x42   : > { %1374 = vmatpush3.bf16.msra.mxu1 %v1504_v63 }
  0x43   : > { %1375 = vmatprep.subr.bf16.mxu1 %v1507_v2 }
  0x44   : > { %1354 = vmatpush3.bf16.msra.mxu0 %v1506_v1 }
  0x45   : > { %1392 = vmatprep.subr.bf16.mxu0 %v1548_v6 }
  0x46   : > { %1376 = vmatpush3.bf16.msra.mxu1 %v1511_v5 }
  0x47   : > { %983 = vmatmul.mubr.bf16.vlgmr.msra.gmra.mrb[4].mxu0 %v1508_v3 }
  0x48   : > { %1408 = vmatprep.mubr.msk.bf16.mxu0 %vm1549_vm0, %v1548_v6  ;;  %1393 = vmatpush3.bf16.msra.mxu0 %v1515_v9 }
  0x49   : > { %1024 = vmatmul.mubr.bf16.vlgmr.msra.gmra.mrb[4].mxu1 %v1512_v7  ;;  %1394 = vmatprep.subr.bf16.mxu0 %v1548_v6 }
  0x4c   : > { %1395 = vmatpush3.bf16.msra.mxu0 %v1516_v10 }
  0x4d   : > { %1396 = vmatprep.subr.bf16.mxu0 %v1548_v6 }
  0x50   : > { %1397 = vmatpush3.bf16.msra.mxu0 %v1517_v11 }
  0x51   : > { %1398 = vmatprep.subr.bf16.mxu0 %v1548_v6 }
  0x54   : > { %1399 = vmatpush3.bf16.msra.mxu0 %v1518_v12 }
  0x55   : > { %1400 = vmatprep.subr.bf16.mxu0 %v1548_v6 }
  0x58   : > { %1401 = vmatpush3.bf16.msra.mxu0 %v1519_v13 }
  0x59   : > { %1402 = vmatprep.subr.bf16.mxu0 %v1548_v6 }
  0x5c   : > { %1403 = vmatpush3.bf16.msra.mxu0 %v1520_v14 }
  0x5d   : > { %1404 = vmatprep.subr.bf16.mxu0 %v1548_v6 }
  0x60   : > { %1405 = vmatpush3.bf16.msra.mxu0 %v1521_v15 }
  0x61   : > { %1406 = vmatprep.subr.bf16.mxu0 %v1548_v6 }
  0x64   : > { %1407 = vmatpush3.bf16.msra.mxu0 %v1522_v16 }
  0x67   : > { %1409 = vmatmul.mubr.bf16.vlgmr.msra.gmra.mrb[8].mxu0 %v1523_v17 }
  0xfa   : > { %v1311_v18 = vpop.f32.mrb[0].mxu0 }
  0xfb   : > { %v1312_v20 = vpop.f32.mrb[1].mxu0 }
  0xfc   : > { %v1313_v21 = vadd.f32 %v1312_v20, %v1311_v18  ;;  %v1314_v22 = vpop.f32.mrb[2].mxu0  ;;  %v1333_v23 = vpop.f32.mrb[0].mxu1 }
  0xfd   : > { %v1315_v24 = vpop.f32.mrb[3].mxu0  ;;  %v1334_v27 = vpop.f32.mrb[1].mxu1 }
  0xfe   : > { %v903_v25 = vadd.f32 %v1313_v21, %v1202_v19  ;;  %v1316_v26 = vadd.f32 %v1315_v24, %v1314_v22  ;;  %v1335_v28 = vadd.f32 %v1334_v27, %v1333_v23  ;;  %v1336_v29 = vpop.f32.mrb[2].mxu1 }
  0xff   : > { %v1337_v31 = vpop.f32.mrb[3].mxu1 }
 0x100   : > { %v906_v30 = vadd.f32 %v1316_v26, %v1202_v19  ;;  %v944_v32 = vadd.f32 %v1335_v28, %v903_v25  ;;  %v1338_v33 = vadd.f32 %v1337_v31, %v1336_v29 }
 0x102   : > { %v947_v34 = vadd.f32 %v1338_v33, %v906_v30 }
 0x11a   : > { %v1355_v35 = vpop.f32.mrb[4].mxu0 }
 0x11b   : > { %v1356_v36 = vpop.f32.mrb[5].mxu0 }
 0x11c   : > { %v1357_v37 = vadd.f32 %v1356_v36, %v1355_v35  ;;  %v1358_v38 = vpop.f32.mrb[6].mxu0  ;;  %v1377_v39 = vpop.f32.mrb[4].mxu1 }
 0x11d   : > { %v1359_v40 = vpop.f32.mrb[7].mxu0  ;;  %v1378_v43 = vpop.f32.mrb[5].mxu1 }
 0x11e   : > { %v985_v41 = vadd.f32 %v1357_v37, %v944_v32  ;;  %v1360_v42 = vadd.f32 %v1359_v40, %v1358_v38  ;;  %v1379_v44 = vadd.f32 %v1378_v43, %v1377_v39  ;;  %v1380_v45 = vpop.f32.mrb[6].mxu1 }
 0x11f   : > { %v1381_v47 = vpop.f32.mrb[7].mxu1 }
 0x120   : > { %v988_v46 = vadd.f32 %v1360_v42, %v947_v34  ;;  %v1382_v48 = vadd.f32 %v1381_v47, %v1380_v45  ;;  %v1026_v49 = vadd.f32 %v1379_v44, %v985_v41 }
 0x122   : > { %v1029_v50 = vadd.f32 %v1382_v48, %v988_v46 }
 0x13a   : > { %v1066_v51 = vpop.f32.mrb[8].mxu0 }
 0x13b   : > { %v1067_v52 = vadd.f32 %v1066_v51, %v1026_v49  ;;  %v1410_v53 = vpop.f32.mrb[9].mxu0 }
 0x13c   : > { %v1069_v54 = vpop.f32.mrb[10].mxu0 }
 0x13d   : > { %v1075_v55 = vmul.f32 0.2, %v1067_v52  ;;  %v1070_v56 = vadd.f32 %v1069_v54, %v1029_v50  ;;  %v1411_v57 = vpop.f32.mrb[11].mxu0  ;;  %vm1073_vm1 = vcmp.ge.f32.partialorder %v1067_v52, 0.0 }
 0x13f   : > { %vm1074_vm2 = vcmp.ge.f32.partialorder %v1070_v56, 0.0  ;;  %v1076_v58 = vmul.f32 0.2, %v1070_v56  ;;  %v1077_v59 = vsel %vm1073_vm1, %v1067_v52, %v1075_v55 }
 0x141   : > { %v1078_v60 = vsel %vm1074_vm2, %v1070_v56, %v1076_v58 }
 0x142   : > { %v1293_v61 = vpack.c.bf16 %v1078_v60, %v1077_v59 }
 0x144   : > { %1294 = vst [vmem:[%s226_s7] sm:$0xff] %v1293_v61  }
 0x145 PF: > { %s13_s14 = sadd.s32 1, %s1546_s14   ;;  %s1844_s12 = smov %s1542_s13 }
 0x146   : > { %p10_p5 = scmp.ge.s32.totalorder %s13_s14, 4   ;;  %s1845_s13 = smov %s1847_s15 }
 0x148   :  { %12 = sbr.rel (!%p10_p5) target bundleno = 2 (0x2), region = 68 }

// kernel: _lambda_.13
= control target key start
LH: loop header
LB: loop body
LE: loop exit
PB: predicated region body
PF: predicated region fallthrough
CT: control target
= control target key end

     0   :  { %s2319_s12 = smov 0   ;;  %s2321_s13 = smov 0   ;;  %s2823_s0 = inlined_call_operand.vmem [shape: bf16[32,1152], index: 0, kind: input, shape index: {}]   ;;  %s2824_s1 = inlined_call_operand.vmem [shape: bf16[1152,256], index: 1, kind: input, shape index: {}]   ;;  %s2825_s2 = inlined_call_operand.vmem [shape: f32[1,256], index: 2, kind: input, shape index: {}]   ;;  %s2826_s3 = inlined_call_operand.vmem [shape: bf16[32,256], index: 3, kind: output, shape index: {}]  }
   0x1   :  { %s2323_s14 = smov 0   ;;  %s2325_s15 = smov 0  }
   0x2   :  { %s2327_s16 = smov 0   ;;  %s2329_s17 = smov 0  }
   0x3   :  { %s2331_s18 = smov 0   ;;  %s2333_s19 = smov 0  }
   0x4   :  { %s2335_s20 = smov 0  }
   0x5 LB: > { %s1839_s21 = sadd.s32 4294967295, %s2295_s20   ;;  %s22_s22 = sadd.s32 1, %s2287_s18  ;;  %s2295_s20 = sphi %s2335_s20, %s13_s20   ;;  %s2291_s19 = sphi %s2333_s19, %s2835_s19   ;;  %s2287_s18 = sphi %s2331_s18, %s2834_s18   ;;  %s2283_s17 = sphi %s2329_s17, %s2833_s17   ;;  %s2279_s16 = sphi %s2327_s16, %s2832_s16   ;;  %s2275_s15 = sphi %s2325_s15, %s2831_s15   ;;  %s2271_s14 = sphi %s2323_s14, %s2830_s14   ;;  %s2267_s13 = sphi %s2321_s13, %s2829_s13   ;;  %s2263_s12 = sphi %s2319_s12, %s2828_s12  }
   0x6   : > { %p23_p0 = scmp.ge.s32.totalorder %s22_s22, 2  ;;  %s25_s23 = sadd.s32 1, %s2291_s19 }
   0x7   : > { %s58_s24 = sadd.s32 1, %s2275_s15  ;;  %p65_p1 = scmp.ne.s32.totalorder %s2275_s15, %s2271_s14 }
   0x8   : > { %s2837_s22 = smov (%p23_p0, %s22_s22), 0  ;;  %s2839_s23 = smov (!%p23_p0, %s25_s23), %s2291_s19 }
   0x9   : > { %s55_s25 = ssub.s32 %s2287_s18, %s2837_s22  ;;  %p66_p2 = scmp.eq.s32.totalorder %s2295_s20, 0 }
   0xa   : > { %p27_p3 = scmp.ge.s32.totalorder %s2839_s23, 2  ;;  %p56_p4 = scmp.eq.s32.totalorder %s55_s25, 0 }
   0xb   : > { %p67_p5 = por %p66_p2, %p65_p1  ;;  %s112_s26 = sadd.s32 1, %s2267_s13 }
   0xc   : > { %s2841_s23 = smov (%p27_p3, %s2839_s23), 0  ;;  %p122_p6 = scmp.ne.s32.totalorder %s2267_s13, %s2263_s12 }
   0xd   : > { %s2380_s27 = scalar_select %p56_p4, %s2275_s15, %s58_s24  }
   0xe   : > { %s107_s28 = ssub.s32 %s2291_s19, %s2841_s23  ;;  %p123_p7 = scmp.eq.s32.totalorder %s1839_s21, 3 }
   0xf   : > { %s109_s29 = sor.u32 %s107_s28, %s55_s25  ;;  %p1842_p10 = scmp.ge.s32.totalorder %s2295_s20, 4 }
  0x10   : > { %p110_p8 = scmp.eq.s32.totalorder %s109_s29, 0  ;;  %p2386_p9 = por %p123_p7, %p122_p6 }
  0x11   : > { %145 = sbr.rel (%p1842_p10) target bundleno = 124 (0x7c), region = 16 }
  0x12   : > { %s2391_s4 = scalar_select %p110_p8, %s2267_s13, %s112_s26  }
  0x18   : > { %158 = sbr.rel (!%p67_p5) target bundleno = 124 (0x7c), region = 24  ;;  %s160_s5 = sand.u32 (%p67_p5), 1, %s2275_s15  }
  0x19   : > { %s1843_s6 = sshll.u32 (%p67_p5), %s2287_s18, 2  ;;  %s2063_s7 = smul.u32 (%p67_p5), 576, %s160_s5 }
  0x1a   : > { %s2399_s10 = scalar_lea.vmem (%p67_p5), %s2824_s1, %s1843_s6 }
  0x1b   : > { %v180_v0 = vld [vmem:[%s2399_s10] sm:$0xf] (%p67_p5)  ;;  %v182_v1 = vld [vmem:[%s2399_s10 + $0x8] sm:$0xf] (%p67_p5)  ;;  %v184_v2 = vld [vmem:[%s2399_s10 + $0x10] sm:$0xf] (%p67_p5) }
  0x1c   : > { %v186_v3 = vld [vmem:[%s2399_s10 + $0x18] sm:$0xf] (%p67_p5)  ;;  %v188_v4 = vld [vmem:[%s2399_s10 + $0x20] sm:$0xf] (%p67_p5)  ;;  %s2406_s11 = scalar_lea.vmem (%p67_p5), [#allocation2], %s2063_s7 }
  0x1d   : > { %181 = vst [vmem:[%s2406_s11] sm:$0xf] (%p67_p5), %v180_v0  ;;  %183 = vst [vmem:[%s2406_s11 + $0x4] sm:$0xf] (%p67_p5), %v182_v1  ;;  %v190_v5 = vld [vmem:[%s2399_s10 + $0x28] sm:$0xf] (%p67_p5) }
  0x1e   : > { %185 = vst [vmem:[%s2406_s11 + $0x8] sm:$0xf] (%p67_p5), %v184_v2  ;;  %187 = vst [vmem:[%s2406_s11 + $0xc] sm:$0xf] (%p67_p5), %v186_v3  ;;  %v192_v6 = vld [vmem:[%s2399_s10 + $0x30] sm:$0xf] (%p67_p5) }
  0x1f   : > { %189 = vst [vmem:[%s2406_s11 + $0x10] sm:$0xf] %v188_v4  ;;  %v194_v7 = vld [vmem:[%s2399_s10 + $0x38] sm:$0xf]  ;;  %191 = vst [vmem:[%s2406_s11 + $0x14] sm:$0xf] %v190_v5 }
  0x20   : > { %193 = vst [vmem:[%s2406_s11 + $0x18] sm:$0xf] %v192_v6  ;;  %195 = vst [vmem:[%s2406_s11 + $0x1c] sm:$0xf] %v194_v7  ;;  %v196_v8 = vld [vmem:[%s2399_s10 + $0x40] sm:$0xf] }
  0x21   : > { %v198_v9 = vld [vmem:[%s2399_s10 + $0x48] sm:$0xf]  ;;  %v200_v10 = vld [vmem:[%s2399_s10 + $0x50] sm:$0xf]  ;;  %197 = vst [vmem:[%s2406_s11 + $0x20] sm:$0xf] %v196_v8 }
  0x22   : > { %199 = vst [vmem:[%s2406_s11 + $0x24] sm:$0xf] %v198_v9  ;;  %201 = vst [vmem:[%s2406_s11 + $0x28] sm:$0xf] %v200_v10  ;;  %v202_v11 = vld [vmem:[%s2399_s10 + $0x58] sm:$0xf] }
  0x23   : > { %v204_v12 = vld [vmem:[%s2399_s10 + $0x60] sm:$0xf]  ;;  %v206_v13 = vld [vmem:[%s2399_s10 + $0x68] sm:$0xf]  ;;  %203 = vst [vmem:[%s2406_s11 + $0x2c] sm:$0xf] %v202_v11 }
  0x24   : > { %205 = vst [vmem:[%s2406_s11 + $0x30] sm:$0xf] %v204_v12  ;;  %207 = vst [vmem:[%s2406_s11 + $0x34] sm:$0xf] %v206_v13  ;;  %v208_v14 = vld [vmem:[%s2399_s10 + $0x70] sm:$0xf] }
  0x25   : > { %v210_v15 = vld [vmem:[%s2399_s10 + $0x78] sm:$0xf]  ;;  %v212_v16 = vld [vmem:[%s2399_s10 + $0x80] sm:$0xf]  ;;  %209 = vst [vmem:[%s2406_s11 + $0x38] sm:$0xf] %v208_v14 }
  0x26   : > { %211 = vst [vmem:[%s2406_s11 + $0x3c] sm:$0xf] %v210_v15  ;;  %213 = vst [vmem:[%s2406_s11 + $0x40] sm:$0xf] %v212_v16  ;;  %v214_v17 = vld [vmem:[%s2399_s10 + $0x88] sm:$0xf] }
  0x27   : > { %v216_v18 = vld [vmem:[%s2399_s10 + $0x90] sm:$0xf]  ;;  %v218_v19 = vld [vmem:[%s2399_s10 + $0x98] sm:$0xf]  ;;  %215 = vst [vmem:[%s2406_s11 + $0x44] sm:$0xf] %v214_v17 }
  0x28   : > { %217 = vst [vmem:[%s2406_s11 + $0x48] sm:$0xf] %v216_v18  ;;  %219 = vst [vmem:[%s2406_s11 + $0x4c] sm:$0xf] %v218_v19  ;;  %v220_v20 = vld [vmem:[%s2399_s10 + $0xa0] sm:$0xf] }
  0x29   : > { %v222_v21 = vld [vmem:[%s2399_s10 + $0xa8] sm:$0xf]  ;;  %v224_v22 = vld [vmem:[%s2399_s10 + $0xb0] sm:$0xf]  ;;  %221 = vst [vmem:[%s2406_s11 + $0x50] sm:$0xf] %v220_v20 }
  0x2a   : > { %223 = vst [vmem:[%s2406_s11 + $0x54] sm:$0xf] %v222_v21  ;;  %225 = vst [vmem:[%s2406_s11 + $0x58] sm:$0xf] %v224_v22  ;;  %v226_v23 = vld [vmem:[%s2399_s10 + $0xb8] sm:$0xf] }
  0x2b   : > { %v228_v24 = vld [vmem:[%s2399_s10 + $0xc0] sm:$0xf]  ;;  %v230_v25 = vld [vmem:[%s2399_s10 + $0xc8] sm:$0xf]  ;;  %227 = vst [vmem:[%s2406_s11 + $0x5c] sm:$0xf] %v226_v23 }
  0x2c   : > { %229 = vst [vmem:[%s2406_s11 + $0x60] sm:$0xf] %v228_v24  ;;  %231 = vst [vmem:[%s2406_s11 + $0x64] sm:$0xf] %v230_v25  ;;  %v232_v26 = vld [vmem:[%s2399_s10 + $0xd0] sm:$0xf] }
  0x2d   : > { %v234_v27 = vld [vmem:[%s2399_s10 + $0xd8] sm:$0xf]  ;;  %v236_v28 = vld [vmem:[%s2399_s10 + $0xe0] sm:$0xf]  ;;  %233 = vst [vmem:[%s2406_s11 + $0x68] sm:$0xf] %v232_v26 }
  0x2e   : > { %235 = vst [vmem:[%s2406_s11 + $0x6c] sm:$0xf] %v234_v27  ;;  %237 = vst [vmem:[%s2406_s11 + $0x70] sm:$0xf] %v236_v28  ;;  %v238_v29 = vld [vmem:[%s2399_s10 + $0xe8] sm:$0xf] }
  0x2f   : > { %v240_v30 = vld [vmem:[%s2399_s10 + $0xf0] sm:$0xf]  ;;  %v242_v31 = vld [vmem:[%s2399_s10 + $0xf8] sm:$0xf]  ;;  %239 = vst [vmem:[%s2406_s11 + $0x74] sm:$0xf] %v238_v29 }
  0x30   : > { %241 = vst [vmem:[%s2406_s11 + $0x78] sm:$0xf] %v240_v30  ;;  %243 = vst [vmem:[%s2406_s11 + $0x7c] sm:$0xf] %v242_v31  ;;  %v244_v32 = vld [vmem:[%s2399_s10 + $0x100] sm:$0xf] }
  0x31   : > { %v246_v33 = vld [vmem:[%s2399_s10 + $0x108] sm:$0xf]  ;;  %v248_v34 = vld [vmem:[%s2399_s10 + $0x110] sm:$0xf]  ;;  %245 = vst [vmem:[%s2406_s11 + $0x80] sm:$0xf] %v244_v32 }
  0x32   : > { %247 = vst [vmem:[%s2406_s11 + $0x84] sm:$0xf] %v246_v33  ;;  %249 = vst [vmem:[%s2406_s11 + $0x88] sm:$0xf] %v248_v34  ;;  %v250_v35 = vld [vmem:[%s2399_s10 + $0x118] sm:$0xf] }
  0x33   : > { %v252_v36 = vld [vmem:[%s2399_s10 + $0x120] sm:$0xf]  ;;  %v254_v37 = vld [vmem:[%s2399_s10 + $0x128] sm:$0xf]  ;;  %251 = vst [vmem:[%s2406_s11 + $0x8c] sm:$0xf] %v250_v35 }
  0x34   : > { %253 = vst [vmem:[%s2406_s11 + $0x90] sm:$0xf] %v252_v36  ;;  %255 = vst [vmem:[%s2406_s11 + $0x94] sm:$0xf] %v254_v37  ;;  %v256_v38 = vld [vmem:[%s2399_s10 + $0x130] sm:$0xf] }
  0x35   : > { %v258_v39 = vld [vmem:[%s2399_s10 + $0x138] sm:$0xf]  ;;  %v260_v40 = vld [vmem:[%s2399_s10 + $0x140] sm:$0xf]  ;;  %257 = vst [vmem:[%s2406_s11 + $0x98] sm:$0xf] %v256_v38 }
  0x36   : > { %259 = vst [vmem:[%s2406_s11 + $0x9c] sm:$0xf] %v258_v39  ;;  %261 = vst [vmem:[%s2406_s11 + $0xa0] sm:$0xf] %v260_v40  ;;  %v262_v41 = vld [vmem:[%s2399_s10 + $0x148] sm:$0xf] }
  0x37   : > { %v264_v42 = vld [vmem:[%s2399_s10 + $0x150] sm:$0xf]  ;;  %v266_v43 = vld [vmem:[%s2399_s10 + $0x158] sm:$0xf]  ;;  %263 = vst [vmem:[%s2406_s11 + $0xa4] sm:$0xf] %v262_v41 }
  0x38   : > { %265 = vst [vmem:[%s2406_s11 + $0xa8] sm:$0xf] %v264_v42  ;;  %267 = vst [vmem:[%s2406_s11 + $0xac] sm:$0xf] %v266_v43  ;;  %v268_v44 = vld [vmem:[%s2399_s10 + $0x160] sm:$0xf] }
  0x39   : > { %v270_v45 = vld [vmem:[%s2399_s10 + $0x168] sm:$0xf]  ;;  %v272_v46 = vld [vmem:[%s2399_s10 + $0x170] sm:$0xf]  ;;  %269 = vst [vmem:[%s2406_s11 + $0xb0] sm:$0xf] %v268_v44 }
  0x3a   : > { %271 = vst [vmem:[%s2406_s11 + $0xb4] sm:$0xf] %v270_v45  ;;  %273 = vst [vmem:[%s2406_s11 + $0xb8] sm:$0xf] %v272_v46  ;;  %v274_v47 = vld [vmem:[%s2399_s10 + $0x178] sm:$0xf] }
  0x3b   : > { %v276_v48 = vld [vmem:[%s2399_s10 + $0x180] sm:$0xf]  ;;  %v278_v49 = vld [vmem:[%s2399_s10 + $0x188] sm:$0xf]  ;;  %275 = vst [vmem:[%s2406_s11 + $0xbc] sm:$0xf] %v274_v47 }
  0x3c   : > { %277 = vst [vmem:[%s2406_s11 + $0xc0] sm:$0xf] %v276_v48  ;;  %279 = vst [vmem:[%s2406_s11 + $0xc4] sm:$0xf] %v278_v49  ;;  %v280_v50 = vld [vmem:[%s2399_s10 + $0x190] sm:$0xf] }
  0x3d   : > { %v282_v51 = vld [vmem:[%s2399_s10 + $0x198] sm:$0xf]  ;;  %v284_v52 = vld [vmem:[%s2399_s10 + $0x1a0] sm:$0xf]  ;;  %281 = vst [vmem:[%s2406_s11 + $0xc8] sm:$0xf] %v280_v50 }
  0x3e   : > { %283 = vst [vmem:[%s2406_s11 + $0xcc] sm:$0xf] %v282_v51  ;;  %285 = vst [vmem:[%s2406_s11 + $0xd0] sm:$0xf] %v284_v52  ;;  %v286_v53 = vld [vmem:[%s2399_s10 + $0x1a8] sm:$0xf] }
  0x3f   : > { %v288_v54 = vld [vmem:[%s2399_s10 + $0x1b0] sm:$0xf]  ;;  %v290_v55 = vld [vmem:[%s2399_s10 + $0x1b8] sm:$0xf]  ;;  %287 = vst [vmem:[%s2406_s11 + $0xd4] sm:$0xf] %v286_v53 }
  0x40   : > { %289 = vst [vmem:[%s2406_s11 + $0xd8] sm:$0xf] %v288_v54  ;;  %291 = vst [vmem:[%s2406_s11 + $0xdc] sm:$0xf] %v290_v55  ;;  %v292_v56 = vld [vmem:[%s2399_s10 + $0x1c0] sm:$0xf] }
  0x41   : > { %v294_v57 = vld [vmem:[%s2399_s10 + $0x1c8] sm:$0xf]  ;;  %v296_v58 = vld [vmem:[%s2399_s10 + $0x1d0] sm:$0xf]  ;;  %293 = vst [vmem:[%s2406_s11 + $0xe0] sm:$0xf] %v292_v56 }
  0x42   : > { %295 = vst [vmem:[%s2406_s11 + $0xe4] sm:$0xf] %v294_v57  ;;  %297 = vst [vmem:[%s2406_s11 + $0xe8] sm:$0xf] %v296_v58  ;;  %v298_v59 = vld [vmem:[%s2399_s10 + $0x1d8] sm:$0xf] }
  0x43   : > { %v300_v60 = vld [vmem:[%s2399_s10 + $0x1e0] sm:$0xf]  ;;  %v302_v61 = vld [vmem:[%s2399_s10 + $0x1e8] sm:$0xf]  ;;  %299 = vst [vmem:[%s2406_s11 + $0xec] sm:$0xf] %v298_v59 }
  0x44   : > { %301 = vst [vmem:[%s2406_s11 + $0xf0] sm:$0xf] %v300_v60  ;;  %303 = vst [vmem:[%s2406_s11 + $0xf4] sm:$0xf] %v302_v61  ;;  %v304_v62 = vld [vmem:[%s2399_s10 + $0x1f0] sm:$0xf] }
  0x45   : > { %v306_v63 = vld [vmem:[%s2399_s10 + $0x1f8] sm:$0xf]  ;;  %v308_v0 = vld [vmem:[%s2399_s10 + $0x200] sm:$0xf]  ;;  %305 = vst [vmem:[%s2406_s11 + $0xf8] sm:$0xf] %v304_v62 }
  0x46   : > { %307 = vst [vmem:[%s2406_s11 + $0xfc] sm:$0xf] %v306_v63  ;;  %309 = vst [vmem:[%s2406_s11 + $0x100] sm:$0xf] %v308_v0  ;;  %v310_v1 = vld [vmem:[%s2399_s10 + $0x208] sm:$0xf] }
  0x47   : > { %v312_v2 = vld [vmem:[%s2399_s10 + $0x210] sm:$0xf]  ;;  %v314_v3 = vld [vmem:[%s2399_s10 + $0x218] sm:$0xf]  ;;  %311 = vst [vmem:[%s2406_s11 + $0x104] sm:$0xf] %v310_v1 }
  0x48   : > { %313 = vst [vmem:[%s2406_s11 + $0x108] sm:$0xf] %v312_v2  ;;  %315 = vst [vmem:[%s2406_s11 + $0x10c] sm:$0xf] %v314_v3  ;;  %v316_v4 = vld [vmem:[%s2399_s10 + $0x220] sm:$0xf] }
  0x49   : > { %v318_v5 = vld [vmem:[%s2399_s10 + $0x228] sm:$0xf]  ;;  %v320_v6 = vld [vmem:[%s2399_s10 + $0x230] sm:$0xf]  ;;  %317 = vst [vmem:[%s2406_s11 + $0x110] sm:$0xf] %v316_v4 }
  0x4a   : > { %319 = vst [vmem:[%s2406_s11 + $0x114] sm:$0xf] %v318_v5  ;;  %321 = vst [vmem:[%s2406_s11 + $0x118] sm:$0xf] %v320_v6  ;;  %v322_v7 = vld [vmem:[%s2399_s10 + $0x238] sm:$0xf] }
  0x4b   : > { %v324_v8 = vld [vmem:[%s2399_s10 + $0x240] sm:$0xf]  ;;  %v326_v9 = vld [vmem:[%s2399_s10 + $0x248] sm:$0xf]  ;;  %323 = vst [vmem:[%s2406_s11 + $0x11c] sm:$0xf] %v322_v7 }
  0x4c   : > { %325 = vst [vmem:[%s2406_s11 + $0x120] sm:$0xf] %v324_v8  ;;  %327 = vst [vmem:[%s2406_s11 + $0x124] sm:$0xf] %v326_v9  ;;  %v328_v10 = vld [vmem:[%s2399_s10 + $0x250] sm:$0xf] }
  0x4d   : > { %v330_v11 = vld [vmem:[%s2399_s10 + $0x258] sm:$0xf]  ;;  %v332_v12 = vld [vmem:[%s2399_s10 + $0x260] sm:$0xf]  ;;  %329 = vst [vmem:[%s2406_s11 + $0x128] sm:$0xf] %v328_v10 }
  0x4e   : > { %331 = vst [vmem:[%s2406_s11 + $0x12c] sm:$0xf] %v330_v11  ;;  %333 = vst [vmem:[%s2406_s11 + $0x130] sm:$0xf] %v332_v12  ;;  %v334_v13 = vld [vmem:[%s2399_s10 + $0x268] sm:$0xf] }
  0x4f   : > { %v336_v14 = vld [vmem:[%s2399_s10 + $0x270] sm:$0xf]  ;;  %v338_v15 = vld [vmem:[%s2399_s10 + $0x278] sm:$0xf]  ;;  %335 = vst [vmem:[%s2406_s11 + $0x134] sm:$0xf] %v334_v13 }
  0x50   : > { %337 = vst [vmem:[%s2406_s11 + $0x138] sm:$0xf] %v336_v14  ;;  %339 = vst [vmem:[%s2406_s11 + $0x13c] sm:$0xf] %v338_v15  ;;  %v340_v16 = vld [vmem:[%s2399_s10 + $0x280] sm:$0xf] }
  0x51   : > { %v342_v17 = vld [vmem:[%s2399_s10 + $0x288] sm:$0xf]  ;;  %v344_v18 = vld [vmem:[%s2399_s10 + $0x290] sm:$0xf]  ;;  %341 = vst [vmem:[%s2406_s11 + $0x140] sm:$0xf] %v340_v16 }
  0x52   : > { %343 = vst [vmem:[%s2406_s11 + $0x144] sm:$0xf] %v342_v17  ;;  %345 = vst [vmem:[%s2406_s11 + $0x148] sm:$0xf] %v344_v18  ;;  %v346_v19 = vld [vmem:[%s2399_s10 + $0x298] sm:$0xf] }
  0x53   : > { %v348_v20 = vld [vmem:[%s2399_s10 + $0x2a0] sm:$0xf]  ;;  %v350_v21 = vld [vmem:[%s2399_s10 + $0x2a8] sm:$0xf]  ;;  %347 = vst [vmem:[%s2406_s11 + $0x14c] sm:$0xf] %v346_v19 }
  0x54   : > { %349 = vst [vmem:[%s2406_s11 + $0x150] sm:$0xf] %v348_v20  ;;  %351 = vst [vmem:[%s2406_s11 + $0x154] sm:$0xf] %v350_v21  ;;  %v352_v22 = vld [vmem:[%s2399_s10 + $0x2b0] sm:$0xf] }
  0x55   : > { %v354_v23 = vld [vmem:[%s2399_s10 + $0x2b8] sm:$0xf]  ;;  %v356_v24 = vld [vmem:[%s2399_s10 + $0x2c0] sm:$0xf]  ;;  %353 = vst [vmem:[%s2406_s11 + $0x158] sm:$0xf] %v352_v22 }
  0x56   : > { %355 = vst [vmem:[%s2406_s11 + $0x15c] sm:$0xf] %v354_v23  ;;  %357 = vst [vmem:[%s2406_s11 + $0x160] sm:$0xf] %v356_v24  ;;  %v358_v25 = vld [vmem:[%s2399_s10 + $0x2c8] sm:$0xf] }
  0x57   : > { %v360_v26 = vld [vmem:[%s2399_s10 + $0x2d0] sm:$0xf]  ;;  %v362_v27 = vld [vmem:[%s2399_s10 + $0x2d8] sm:$0xf]  ;;  %359 = vst [vmem:[%s2406_s11 + $0x164] sm:$0xf] %v358_v25 }
  0x58   : > { %361 = vst [vmem:[%s2406_s11 + $0x168] sm:$0xf] %v360_v26  ;;  %363 = vst [vmem:[%s2406_s11 + $0x16c] sm:$0xf] %v362_v27  ;;  %v364_v28 = vld [vmem:[%s2399_s10 + $0x2e0] sm:$0xf] }
  0x59   : > { %v366_v29 = vld [vmem:[%s2399_s10 + $0x2e8] sm:$0xf]  ;;  %v368_v30 = vld [vmem:[%s2399_s10 + $0x2f0] sm:$0xf]  ;;  %365 = vst [vmem:[%s2406_s11 + $0x170] sm:$0xf] %v364_v28 }
  0x5a   : > { %367 = vst [vmem:[%s2406_s11 + $0x174] sm:$0xf] %v366_v29  ;;  %369 = vst [vmem:[%s2406_s11 + $0x178] sm:$0xf] %v368_v30  ;;  %v370_v31 = vld [vmem:[%s2399_s10 + $0x2f8] sm:$0xf] }
  0x5b   : > { %v372_v32 = vld [vmem:[%s2399_s10 + $0x300] sm:$0xf]  ;;  %v374_v33 = vld [vmem:[%s2399_s10 + $0x308] sm:$0xf]  ;;  %371 = vst [vmem:[%s2406_s11 + $0x17c] sm:$0xf] %v370_v31 }
  0x5c   : > { %373 = vst [vmem:[%s2406_s11 + $0x180] sm:$0xf] %v372_v32  ;;  %375 = vst [vmem:[%s2406_s11 + $0x184] sm:$0xf] %v374_v33  ;;  %v376_v34 = vld [vmem:[%s2399_s10 + $0x310] sm:$0xf] }
  0x5d   : > { %v378_v35 = vld [vmem:[%s2399_s10 + $0x318] sm:$0xf]  ;;  %v380_v36 = vld [vmem:[%s2399_s10 + $0x320] sm:$0xf]  ;;  %377 = vst [vmem:[%s2406_s11 + $0x188] sm:$0xf] %v376_v34 }
  0x5e   : > { %379 = vst [vmem:[%s2406_s11 + $0x18c] sm:$0xf] %v378_v35  ;;  %381 = vst [vmem:[%s2406_s11 + $0x190] sm:$0xf] %v380_v36  ;;  %v382_v37 = vld [vmem:[%s2399_s10 + $0x328] sm:$0xf] }
  0x5f   : > { %v384_v38 = vld [vmem:[%s2399_s10 + $0x330] sm:$0xf]  ;;  %v386_v39 = vld [vmem:[%s2399_s10 + $0x338] sm:$0xf]  ;;  %383 = vst [vmem:[%s2406_s11 + $0x194] sm:$0xf] %v382_v37 }
  0x60   : > { %385 = vst [vmem:[%s2406_s11 + $0x198] sm:$0xf] %v384_v38  ;;  %387 = vst [vmem:[%s2406_s11 + $0x19c] sm:$0xf] %v386_v39  ;;  %v388_v40 = vld [vmem:[%s2399_s10 + $0x340] sm:$0xf] }
  0x61   : > { %v390_v41 = vld [vmem:[%s2399_s10 + $0x348] sm:$0xf]  ;;  %v392_v42 = vld [vmem:[%s2399_s10 + $0x350] sm:$0xf]  ;;  %389 = vst [vmem:[%s2406_s11 + $0x1a0] sm:$0xf] %v388_v40 }
  0x62   : > { %391 = vst [vmem:[%s2406_s11 + $0x1a4] sm:$0xf] %v390_v41  ;;  %393 = vst [vmem:[%s2406_s11 + $0x1a8] sm:$0xf] %v392_v42  ;;  %v394_v43 = vld [vmem:[%s2399_s10 + $0x358] sm:$0xf] }
  0x63   : > { %v396_v44 = vld [vmem:[%s2399_s10 + $0x360] sm:$0xf]  ;;  %v398_v45 = vld [vmem:[%s2399_s10 + $0x368] sm:$0xf]  ;;  %395 = vst [vmem:[%s2406_s11 + $0x1ac] sm:$0xf] %v394_v43 }
  0x64   : > { %397 = vst [vmem:[%s2406_s11 + $0x1b0] sm:$0xf] %v396_v44  ;;  %399 = vst [vmem:[%s2406_s11 + $0x1b4] sm:$0xf] %v398_v45  ;;  %v400_v46 = vld [vmem:[%s2399_s10 + $0x370] sm:$0xf] }
  0x65   : > { %v402_v47 = vld [vmem:[%s2399_s10 + $0x378] sm:$0xf]  ;;  %v404_v48 = vld [vmem:[%s2399_s10 + $0x380] sm:$0xf]  ;;  %401 = vst [vmem:[%s2406_s11 + $0x1b8] sm:$0xf] %v400_v46 }
  0x66   : > { %403 = vst [vmem:[%s2406_s11 + $0x1bc] sm:$0xf] %v402_v47  ;;  %405 = vst [vmem:[%s2406_s11 + $0x1c0] sm:$0xf] %v404_v48  ;;  %v406_v49 = vld [vmem:[%s2399_s10 + $0x388] sm:$0xf] }
  0x67   : > { %v408_v50 = vld [vmem:[%s2399_s10 + $0x390] sm:$0xf]  ;;  %v410_v51 = vld [vmem:[%s2399_s10 + $0x398] sm:$0xf]  ;;  %407 = vst [vmem:[%s2406_s11 + $0x1c4] sm:$0xf] %v406_v49 }
  0x68   : > { %409 = vst [vmem:[%s2406_s11 + $0x1c8] sm:$0xf] %v408_v50  ;;  %411 = vst [vmem:[%s2406_s11 + $0x1cc] sm:$0xf] %v410_v51  ;;  %v412_v52 = vld [vmem:[%s2399_s10 + $0x3a0] sm:$0xf] }
  0x69   : > { %v414_v53 = vld [vmem:[%s2399_s10 + $0x3a8] sm:$0xf]  ;;  %v416_v54 = vld [vmem:[%s2399_s10 + $0x3b0] sm:$0xf]  ;;  %413 = vst [vmem:[%s2406_s11 + $0x1d0] sm:$0xf] %v412_v52 }
  0x6a   : > { %415 = vst [vmem:[%s2406_s11 + $0x1d4] sm:$0xf] %v414_v53  ;;  %417 = vst [vmem:[%s2406_s11 + $0x1d8] sm:$0xf] %v416_v54  ;;  %v418_v55 = vld [vmem:[%s2399_s10 + $0x3b8] sm:$0xf] }
  0x6b   : > { %v420_v56 = vld [vmem:[%s2399_s10 + $0x3c0] sm:$0xf]  ;;  %v422_v57 = vld [vmem:[%s2399_s10 + $0x3c8] sm:$0xf]  ;;  %419 = vst [vmem:[%s2406_s11 + $0x1dc] sm:$0xf] %v418_v55 }
  0x6c   : > { %421 = vst [vmem:[%s2406_s11 + $0x1e0] sm:$0xf] %v420_v56  ;;  %423 = vst [vmem:[%s2406_s11 + $0x1e4] sm:$0xf] %v422_v57  ;;  %v424_v58 = vld [vmem:[%s2399_s10 + $0x3d0] sm:$0xf] }
  0x6d   : > { %v426_v59 = vld [vmem:[%s2399_s10 + $0x3d8] sm:$0xf]  ;;  %v428_v60 = vld [vmem:[%s2399_s10 + $0x3e0] sm:$0xf]  ;;  %425 = vst [vmem:[%s2406_s11 + $0x1e8] sm:$0xf] %v424_v58 }
  0x6e   : > { %427 = vst [vmem:[%s2406_s11 + $0x1ec] sm:$0xf] %v426_v59  ;;  %429 = vst [vmem:[%s2406_s11 + $0x1f0] sm:$0xf] %v428_v60  ;;  %v430_v61 = vld [vmem:[%s2399_s10 + $0x3e8] sm:$0xf] }
  0x6f   : > { %v432_v62 = vld [vmem:[%s2399_s10 + $0x3f0] sm:$0xf]  ;;  %v434_v63 = vld [vmem:[%s2399_s10 + $0x3f8] sm:$0xf]  ;;  %431 = vst [vmem:[%s2406_s11 + $0x1f4] sm:$0xf] %v430_v61 }
  0x70   : > { %433 = vst [vmem:[%s2406_s11 + $0x1f8] sm:$0xf] %v432_v62  ;;  %435 = vst [vmem:[%s2406_s11 + $0x1fc] sm:$0xf] %v434_v63  ;;  %v436_v0 = vld [vmem:[%s2399_s10 + $0x400] sm:$0xf] }
  0x71   : > { %v438_v1 = vld [vmem:[%s2399_s10 + $0x408] sm:$0xf]  ;;  %v440_v2 = vld [vmem:[%s2399_s10 + $0x410] sm:$0xf]  ;;  %437 = vst [vmem:[%s2406_s11 + $0x200] sm:$0xf] %v436_v0 }
  0x72   : > { %439 = vst [vmem:[%s2406_s11 + $0x204] sm:$0xf] %v438_v1  ;;  %441 = vst [vmem:[%s2406_s11 + $0x208] sm:$0xf] %v440_v2  ;;  %v442_v3 = vld [vmem:[%s2399_s10 + $0x418] sm:$0xf] }
  0x73   : > { %v444_v4 = vld [vmem:[%s2399_s10 + $0x420] sm:$0xf]  ;;  %v446_v5 = vld [vmem:[%s2399_s10 + $0x428] sm:$0xf]  ;;  %443 = vst [vmem:[%s2406_s11 + $0x20c] sm:$0xf] %v442_v3 }
  0x74   : > { %445 = vst [vmem:[%s2406_s11 + $0x210] sm:$0xf] %v444_v4  ;;  %447 = vst [vmem:[%s2406_s11 + $0x214] sm:$0xf] %v446_v5  ;;  %v448_v6 = vld [vmem:[%s2399_s10 + $0x430] sm:$0xf] }
  0x75   : > { %v450_v7 = vld [vmem:[%s2399_s10 + $0x438] sm:$0xf]  ;;  %v452_v8 = vld [vmem:[%s2399_s10 + $0x440] sm:$0xf]  ;;  %449 = vst [vmem:[%s2406_s11 + $0x218] sm:$0xf] %v448_v6 }
  0x76   : > { %451 = vst [vmem:[%s2406_s11 + $0x21c] sm:$0xf] %v450_v7  ;;  %453 = vst [vmem:[%s2406_s11 + $0x220] sm:$0xf] %v452_v8  ;;  %v454_v9 = vld [vmem:[%s2399_s10 + $0x448] sm:$0xf] }
  0x77   : > { %v456_v10 = vld [vmem:[%s2399_s10 + $0x450] sm:$0xf]  ;;  %v458_v11 = vld [vmem:[%s2399_s10 + $0x458] sm:$0xf]  ;;  %455 = vst [vmem:[%s2406_s11 + $0x224] sm:$0xf] %v454_v9 }
  0x78   : > { %457 = vst [vmem:[%s2406_s11 + $0x228] sm:$0xf] %v456_v10  ;;  %459 = vst [vmem:[%s2406_s11 + $0x22c] sm:$0xf] %v458_v11  ;;  %v460_v12 = vld [vmem:[%s2399_s10 + $0x460] sm:$0xf] }
  0x79   : > { %v462_v13 = vld [vmem:[%s2399_s10 + $0x468] sm:$0xf]  ;;  %v464_v14 = vld [vmem:[%s2399_s10 + $0x470] sm:$0xf]  ;;  %461 = vst [vmem:[%s2406_s11 + $0x230] sm:$0xf] %v460_v12 }
  0x7a   : > { %463 = vst [vmem:[%s2406_s11 + $0x234] sm:$0xf] %v462_v13  ;;  %465 = vst [vmem:[%s2406_s11 + $0x238] sm:$0xf] %v464_v14  ;;  %v466_v15 = vld [vmem:[%s2399_s10 + $0x478] sm:$0xf] }
  0x7b   : > { %467 = vst [vmem:[%s2406_s11 + $0x23c] sm:$0xf] %v466_v15 }
  0x7c PF: > { %p1844_p11 = scmp.ge.s32.totalorder %s2295_s20, 1  ;;  %p783_p12 = scmp.lt.s32.totalorder %s2295_s20, 5 }
  0x7e   : > { %p784_p13 = pnand %p1844_p11, %p783_p12 }
  0x7f   : > { %s790_s21 = sand.u32 (!%p784_p13), 1, %s2271_s14   ;;  %s1846_s14 = sshll.u32 (!%p784_p13), %s2283_s17, 1  ;;  %vm2298_vm0 = vmmov (!%p784_p13), 0  }
  0x80   : > { %787 = sbr.rel (%p784_p13) target bundleno = 459 (0x1cb), region = 69  ;;  %p822_p0 = scmp.lt.s32.totalorder (!%p784_p13), %s1846_s14, 3 }
  0x81   : > { %s2064_s24 = smul.u32 (!%p784_p13), 576, %s790_s21  ;;  %p828_p1 = scmp.lt.s32.totalorder (!%p784_p13), %s2279_s16, 1 }
  0x82   : > { %s818_s10 = sand.u32 (!%p784_p13), 1, %s2263_s12  }
  0x83   : > { %s2694_s25 = scalar_lea.vmem (!%p784_p13), [#allocation2], %s2064_s24  ;;  %s1845_s11 = sshll.u32 (!%p784_p13), %s818_s10, 3 }
  0x84   : > { %v2140_v16 = vld [vmem:[%s2694_s25 + $0x40] sm:$0xff] (!%p784_p13)   ;;  %v2144_v20 = vld [vmem:[%s2694_s25 + $0x48] sm:$0xff] (!%p784_p13)   ;;  %v2148_v24 = vld [vmem:[%s2694_s25 + $0x50] sm:$0xff] (!%p784_p13)   ;;  %s820_s21 = scalar_lea.vmem (!%p784_p13), [#allocation3], %s1845_s11 }
  0x85   : > { %v2141_v17 = vld [vmem:[%s2694_s25] sm:$0xff] (!%p784_p13)   ;;  %1946 = vmatprep.subr.bf16.mxu0 (!%p784_p13), %v2140_v16  ;;  %v2145_v21 = vld [vmem:[%s2694_s25 + $0x8] sm:$0xff] (!%p784_p13)   ;;  %v2149_v25 = vld [vmem:[%s2694_s25 + $0x10] sm:$0xff] (!%p784_p13)  }
  0x86   : > { %v2142_v18 = vld [vmem:[%s2694_s25 + $0xc0] sm:$0xff] (!%p784_p13)   ;;  %1947 = vmatpush3.bf16.msra.mxu0 (!%p784_p13), %v2141_v17  ;;  %v2146_v22 = vld [vmem:[%s2694_s25 + $0xc8] sm:$0xff] (!%p784_p13)   ;;  %v2150_v26 = vld [vmem:[%s2694_s25 + $0xd0] sm:$0xff] (!%p784_p13)  }
  0x87   : > { %v2143_v19 = vld [vmem:[%s2694_s25 + $0x80] sm:$0xff]   ;;  %1968 = vmatprep.subr.bf16.mxu1 %v2142_v18  ;;  %1948 = vmatprep.subr.bf16.mxu0 %v2144_v20  ;;  %v2147_v23 = vld [vmem:[%s2694_s25 + $0x88] sm:$0xff]   ;;  %v2151_v27 = vld [vmem:[%s2694_s25 + $0x90] sm:$0xff]   ;;  %s2843_s14 = smov (!%p822_p0, %s1846_s14), 3  ;;  %s1940_s24 = sshll.u32 (%p2386_p9), %s2283_s17, 2 }
  0x88   : > { %1969 = vmatpush3.bf16.msra.mxu1 %v2143_v19  ;;  %v2152_v28 = vld [vmem:[%s2694_s25 + $0x58] sm:$0xff]   ;;  %v2156_v32 = vld [vmem:[%s2694_s25 + $0x60] sm:$0xff]   ;;  %v2160_v36 = vld [vmem:[%s2694_s25 + $0x68] sm:$0xff]   ;;  %s2065_s26 = smul.u32 36, %s2843_s14  ;;  %s1702_s12 = sadd.s32 (%p2386_p9), %s2279_s16, %s1940_s24 }
  0x89   : > { %1970 = vmatprep.subr.bf16.mxu1 %v2146_v22  ;;  %v2153_v29 = vld [vmem:[%s2694_s25 + $0x18] sm:$0xff]   ;;  %v2157_v33 = vld [vmem:[%s2694_s25 + $0x20] sm:$0xff]   ;;  %v2161_v37 = vld [vmem:[%s2694_s25 + $0x28] sm:$0xff]   ;;  %v2297_v22 = vmov 0.0   ;;  %s829_s6 = scalar_select %p828_p1, %s2279_s16, 1 }
  0x8a   : > { %1949 = vmatpush3.bf16.msra.mxu0 %v2145_v21  ;;  %v2154_v30 = vld [vmem:[%s2694_s25 + $0xd8] sm:$0xff]   ;;  %v2158_v34 = vld [vmem:[%s2694_s25 + $0xe0] sm:$0xff]   ;;  %v2162_v38 = vld [vmem:[%s2694_s25 + $0xe8] sm:$0xff]   ;;  %s2729_s5 = scalar_lea.vmem %s2823_s0, %s2065_s26 }
  0x8b   : > { %1950 = vmatprep.subr.bf16.mxu0 %v2148_v24  ;;  %v2155_v31 = vld [vmem:[%s2694_s25 + $0x98] sm:$0xff]   ;;  %v2159_v35 = vld [vmem:[%s2694_s25 + $0xa0] sm:$0xff]   ;;  %v2163_v39 = vld [vmem:[%s2694_s25 + $0xa8] sm:$0xff]   ;;  %s830_s9 = scalar_lea.vmem %s2825_s2, %s829_s6 }
  0x8c   : > { %1971 = vmatpush3.bf16.msra.mxu1 %v2147_v23  ;;  %v2164_v40 = vld [vmem:[%s2694_s25 + $0x70] sm:$0xff]   ;;  %v2168_v44 = vld [vmem:[%s2694_s25 + $0x78] sm:$0xff]   ;;  %v2171_v47 = vld [vmem:[%s2729_s5] ss:$36 sps:$4 sm:$0xff]  }
  0x8d   : > { %1972 = vmatprep.subr.bf16.mxu1 %v2150_v26  ;;  %v2165_v41 = vld [vmem:[%s2694_s25 + $0x30] sm:$0xff]   ;;  %v2169_v45 = vld [vmem:[%s2694_s25 + $0x38] sm:$0xff]   ;;  %v2173_v48 = vld [vmem:[%s2729_s5 + $0x4] ss:$36 sps:$4 sm:$0xff]  }
  0x8e   : > { %1951 = vmatpush3.bf16.msra.mxu0 %v2149_v25  ;;  %v2166_v42 = vld [vmem:[%s2694_s25 + $0xf0] sm:$0xff]   ;;  %v2170_v46 = vld [vmem:[%s2694_s25 + $0xf8] sm:$0xff]   ;;  %1504 = vmatprep.mubr.bf16.mxu0 %v2173_v48  ;;  %v2175_v50 = vld [vmem:[%s2694_s25 + $0x140] sm:$0xff]  }
  0x8f   : > { %1952 = vmatprep.subr.bf16.mxu0 %v2152_v28  ;;  %v2167_v43 = vld [vmem:[%s2694_s25 + $0xb0] sm:$0xff]   ;;  %v2174_v49 = vld [vmem:[%s2694_s25 + $0xb8] sm:$0xff]   ;;  %v2176_v51 = vld [vmem:[%s2729_s5 + $0x8] ss:$36 sps:$4 sm:$0xff]  }
  0x90   : > { %1973 = vmatpush3.bf16.msra.mxu1 %v2151_v27  ;;  %v2178_v52 = vld [vmem:[%s2729_s5 + $0xc] ss:$36 sps:$4 sm:$0xff]   ;;  %v2179_v53 = vld [vmem:[%s2694_s25 + $0x100] sm:$0xff]   ;;  %v2190_v0 = vld [vmem:[%s2694_s25 + $0x158] sm:$0xff]  }
  0x91   : > { %1974 = vmatprep.subr.bf16.mxu1 %v2154_v30  ;;  %1545 = vmatprep.mubr.bf16.mxu1 %v2178_v52  ;;  %v2180_v54 = vld [vmem:[%s2694_s25 + $0x1c0] sm:$0xff]   ;;  %v2182_v56 = vld [vmem:[%s2694_s25 + $0x148] sm:$0xff]   ;;  %v2186_v60 = vld [vmem:[%s2694_s25 + $0x150] sm:$0xff]  }
  0x92   : > { %1953 = vmatpush3.bf16.msra.mxu0 %v2153_v29  ;;  %v2181_v55 = vld [vmem:[%s2694_s25 + $0x180] sm:$0xff]   ;;  %v2183_v57 = vld [vmem:[%s2694_s25 + $0x108] sm:$0xff]   ;;  %v2187_v61 = vld [vmem:[%s2694_s25 + $0x110] sm:$0xff]  }
  0x93   : > { %1954 = vmatprep.subr.bf16.mxu0 %v2156_v32  ;;  %v2184_v58 = vld [vmem:[%s2694_s25 + $0x1c8] sm:$0xff]   ;;  %v2188_v62 = vld [vmem:[%s2694_s25 + $0x1d0] sm:$0xff]   ;;  %v2191_v1 = vld [vmem:[%s2694_s25 + $0x118] sm:$0xff]  }
  0x94   : > { %1975 = vmatpush3.bf16.msra.mxu1 %v2155_v31  ;;  %v2185_v59 = vld [vmem:[%s2694_s25 + $0x188] sm:$0xff]   ;;  %v2189_v63 = vld [vmem:[%s2694_s25 + $0x190] sm:$0xff]   ;;  %v2192_v2 = vld [vmem:[%s2694_s25 + $0x1d8] sm:$0xff]  }
  0x95   : > { %1976 = vmatprep.subr.bf16.mxu1 %v2158_v34  ;;  %v2193_v3 = vld [vmem:[%s2694_s25 + $0x198] sm:$0xff]   ;;  %v2194_v4 = vld [vmem:[%s2694_s25 + $0x160] sm:$0xff]   ;;  %v2198_v8 = vld [vmem:[%s2694_s25 + $0x168] sm:$0xff]  }
  0x96   : > { %1955 = vmatpush3.bf16.msra.mxu0 %v2157_v33  ;;  %v2195_v5 = vld [vmem:[%s2694_s25 + $0x120] sm:$0xff]   ;;  %v2199_v9 = vld [vmem:[%s2694_s25 + $0x128] sm:$0xff]   ;;  %v2202_v12 = vld [vmem:[%s2694_s25 + $0x170] sm:$0xff]  }
  0x97   : > { %1956 = vmatprep.subr.bf16.mxu0 %v2160_v36  ;;  %v2196_v6 = vld [vmem:[%s2694_s25 + $0x1e0] sm:$0xff]   ;;  %v2200_v10 = vld [vmem:[%s2694_s25 + $0x1e8] sm:$0xff]   ;;  %v2203_v13 = vld [vmem:[%s2694_s25 + $0x130] sm:$0xff]  }
  0x98   : > { %1977 = vmatpush3.bf16.msra.mxu1 %v2159_v35  ;;  %v2197_v7 = vld [vmem:[%s2694_s25 + $0x1a0] sm:$0xff]   ;;  %v2201_v11 = vld [vmem:[%s2694_s25 + $0x1a8] sm:$0xff]   ;;  %v2204_v14 = vld [vmem:[%s2694_s25 + $0x1f0] sm:$0xff]  }
  0x99   : > { %1978 = vmatprep.subr.bf16.mxu1 %v2162_v38  ;;  %v2205_v15 = vld [vmem:[%s2694_s25 + $0x1b0] sm:$0xff]   ;;  %v2206_v16 = vld [vmem:[%s2694_s25 + $0x178] sm:$0xff]   ;;  %v2216_v25 = vld [vmem:[%s2694_s25 + $0x200] sm:$0xff]  }
  0x9a   : > { %1957 = vmatpush3.bf16.msra.mxu0 %v2161_v37  ;;  %v2207_v17 = vld [vmem:[%s2694_s25 + $0x138] sm:$0xff]   ;;  %v2209_v19 = vld [vmem:[%s2729_s5 + $0x10] ss:$36 sps:$4 sm:$0xff]   ;;  %v2217_v26 = vld [vmem:[%s2694_s25 + $0x208] sm:$0xff]  }
  0x9b   : > { %1958 = vmatprep.subr.bf16.mxu0 %v2164_v40  ;;  %v2208_v18 = vld [vmem:[%s2694_s25 + $0x1f8] sm:$0xff]   ;;  %v2218_v27 = vld [vmem:[%s2694_s25 + $0x210] sm:$0xff]   ;;  %v2220_v29 = vld [vmem:[%s2694_s25 + $0x220] sm:$0xff]  }
  0x9c   : > { %1979 = vmatpush3.bf16.msra.mxu1 %v2163_v39  ;;  %v2211_v20 = vld [vmem:[%s2729_s5 + $0x14] ss:$36 sps:$4 sm:$0xff]   ;;  %v2215_v24 = vld [vmem:[%s2729_s5 + $0x1c] ss:$36 sps:$4 sm:$0xff]   ;;  %v2221_v30 = vld [vmem:[%s2694_s25 + $0x228] sm:$0xff]  }
  0x9d   : > { %1980 = vmatprep.subr.bf16.mxu1 %v2166_v42  ;;  %v2212_v21 = vld [vmem:[%s2694_s25 + $0x1b8] sm:$0xff]   ;;  %v2222_v31 = vld [vmem:[%s2694_s25 + $0x230] sm:$0xff]   ;;  %v2224_v33 = vld [vmem:[%s2729_s5 + $0x20] ss:$36 sps:$4 sm:$0xff]  }
  0x9e   : > { %1959 = vmatpush3.bf16.msra.mxu0 %v2165_v41  ;;  %v2213_v23 = vld [vmem:[%s2729_s5 + $0x18] ss:$36 sps:$4 sm:$0xff]   ;;  %v1848_v35 = vld [vmem:[%s830_s9] ss:$0 sm:$0xff] }
  0x9f   : > { %1960 = vmatprep.subr.bf16.mxu0 %v2168_v44  ;;  %v2219_v28 = vld [vmem:[%s2694_s25 + $0x218] sm:$0xff]  }
  0xa0   : > { %1981 = vmatpush3.bf16.msra.mxu1 %v2167_v43  ;;  %v2223_v32 = vld [vmem:[%s2694_s25 + $0x238] sm:$0xff]   ;;  %s1935_s25 = sshll.u32 (%p2386_p9), %s1702_s12, 2 }
  0xa1   : > { %1982 = vmatprep.subr.bf16.mxu1 %v2170_v46  ;;  %s1704_s28 = scalar_lea.vmem (%p2386_p9), %s2826_s3, %s1935_s25 }
  0xa2   : > { %1961 = vmatpush3.bf16.msra.mxu0 %v2169_v45 }
  0xa3   : > { %1990 = vmatprep.subr.bf16.mxu0 %v2175_v50 }
  0xa4   : > { %1983 = vmatpush3.bf16.msra.mxu1 %v2174_v49 }
  0xa5   : > { %1505 = vmatmul.mubr.bf16.vlgmr.msra.gmra.mrb[0].mxu0 %v2171_v47  ;;  %2012 = vmatprep.subr.bf16.mxu1 %v2180_v54 }
  0xa6   : > { %1991 = vmatpush3.bf16.msra.mxu0 %v2179_v53  ;;  %1586 = vmatprep.mubr.bf16.mxu0 %v2211_v20 }
  0xa7   : > { %1546 = vmatmul.mubr.bf16.vlgmr.msra.gmra.mrb[0].mxu1 %v2176_v51  ;;  %1992 = vmatprep.subr.bf16.mxu0 %v2182_v56 }
  0xa8   : > { %2013 = vmatpush3.bf16.msra.mxu1 %v2181_v55  ;;  %1627 = vmatprep.mubr.bf16.mxu1 %v2215_v24 }
  0xa9   : > { %2014 = vmatprep.subr.bf16.mxu1 %v2184_v58 }
  0xaa   : > { %1993 = vmatpush3.bf16.msra.mxu0 %v2183_v57 }
  0xab   : > { %1994 = vmatprep.subr.bf16.mxu0 %v2186_v60 }
  0xac   : > { %2015 = vmatpush3.bf16.msra.mxu1 %v2185_v59 }
  0xad   : > { %2016 = vmatprep.subr.bf16.mxu1 %v2188_v62 }
  0xae   : > { %1995 = vmatpush3.bf16.msra.mxu0 %v2187_v61 }
  0xaf   : > { %1996 = vmatprep.subr.bf16.mxu0 %v2190_v0 }
  0xb0   : > { %2017 = vmatpush3.bf16.msra.mxu1 %v2189_v63 }
  0xb1   : > { %2018 = vmatprep.subr.bf16.mxu1 %v2192_v2 }
  0xb2   : > { %1997 = vmatpush3.bf16.msra.mxu0 %v2191_v1 }
  0xb3   : > { %1998 = vmatprep.subr.bf16.mxu0 %v2194_v4 }
  0xb4   : > { %2019 = vmatpush3.bf16.msra.mxu1 %v2193_v3 }
  0xb5   : > { %2020 = vmatprep.subr.bf16.mxu1 %v2196_v6 }
  0xb6   : > { %1999 = vmatpush3.bf16.msra.mxu0 %v2195_v5 }
  0xb7   : > { %2000 = vmatprep.subr.bf16.mxu0 %v2198_v8 }
  0xb8   : > { %2021 = vmatpush3.bf16.msra.mxu1 %v2197_v7 }
  0xb9   : > { %2022 = vmatprep.subr.bf16.mxu1 %v2200_v10 }
  0xba   : > { %2001 = vmatpush3.bf16.msra.mxu0 %v2199_v9 }
  0xbb   : > { %2002 = vmatprep.subr.bf16.mxu0 %v2202_v12 }
  0xbc   : > { %2023 = vmatpush3.bf16.msra.mxu1 %v2201_v11 }
  0xbd   : > { %2024 = vmatprep.subr.bf16.mxu1 %v2204_v14 }
  0xbe   : > { %2003 = vmatpush3.bf16.msra.mxu0 %v2203_v13 }
  0xbf   : > { %2004 = vmatprep.subr.bf16.mxu0 %v2206_v16 }
  0xc0   : > { %2025 = vmatpush3.bf16.msra.mxu1 %v2205_v15 }
  0xc1   : > { %2026 = vmatprep.subr.bf16.mxu1 %v2208_v18 }
  0xc2   : > { %2005 = vmatpush3.bf16.msra.mxu0 %v2207_v17 }
  0xc3   : > { %2043 = vmatprep.subr.bf16.mxu0 %v2297_v22 }
  0xc4   : > { %2027 = vmatpush3.bf16.msra.mxu1 %v2212_v21 }
  0xc5   : > { %1587 = vmatmul.mubr.bf16.vlgmr.msra.gmra.mrb[4].mxu0 %v2209_v19 }
  0xc6   : > { %2059 = vmatprep.mubr.msk.bf16.mxu0 %vm2298_vm0, %v2297_v22  ;;  %2044 = vmatpush3.bf16.msra.mxu0 %v2216_v25 }
  0xc7   : > { %1628 = vmatmul.mubr.bf16.vlgmr.msra.gmra.mrb[4].mxu1 %v2213_v23  ;;  %2045 = vmatprep.subr.bf16.mxu0 %v2297_v22 }
  0xca   : > { %2046 = vmatpush3.bf16.msra.mxu0 %v2217_v26 }
  0xcb   : > { %2047 = vmatprep.subr.bf16.mxu0 %v2297_v22 }
  0xce   : > { %2048 = vmatpush3.bf16.msra.mxu0 %v2218_v27 }
  0xcf   : > { %2049 = vmatprep.subr.bf16.mxu0 %v2297_v22 }
  0xd2   : > { %2050 = vmatpush3.bf16.msra.mxu0 %v2219_v28 }
  0xd3   : > { %2051 = vmatprep.subr.bf16.mxu0 %v2297_v22 }
  0xd6   : > { %2052 = vmatpush3.bf16.msra.mxu0 %v2220_v29 }
  0xd7   : > { %2053 = vmatprep.subr.bf16.mxu0 %v2297_v22 }
  0xda   : > { %2054 = vmatpush3.bf16.msra.mxu0 %v2221_v30 }
  0xdb   : > { %2055 = vmatprep.subr.bf16.mxu0 %v2297_v22 }
  0xde   : > { %2056 = vmatpush3.bf16.msra.mxu0 %v2222_v31 }
  0xdf   : > { %2057 = vmatprep.subr.bf16.mxu0 %v2297_v22 }
  0xe2   : > { %2058 = vmatpush3.bf16.msra.mxu0 %v2223_v32 }
  0xe5   : > { %2060 = vmatmul.mubr.bf16.vlgmr.msra.gmra.mrb[8].mxu0 %v2224_v33 }
 0x178   : > { %v1962_v34 = vpop.f32.mrb[0].mxu0 }
 0x179   : > { %v1963_v36 = vpop.f32.mrb[1].mxu0 }
 0x17a   : > { %v1964_v37 = vadd.f32 %v1963_v36, %v1962_v34  ;;  %v1965_v38 = vpop.f32.mrb[2].mxu0  ;;  %v1984_v39 = vpop.f32.mrb[0].mxu1 }
 0x17b   : > { %v1966_v40 = vpop.f32.mrb[3].mxu0  ;;  %v1985_v43 = vpop.f32.mrb[1].mxu1 }
 0x17c   : > { %v1507_v41 = vadd.f32 %v1964_v37, %v1848_v35  ;;  %v1967_v42 = vadd.f32 %v1966_v40, %v1965_v38  ;;  %v1986_v44 = vadd.f32 %v1985_v43, %v1984_v39  ;;  %v1987_v45 = vpop.f32.mrb[2].mxu1 }
 0x17d   : > { %v1988_v47 = vpop.f32.mrb[3].mxu1 }
 0x17e   : > { %v1510_v46 = vadd.f32 %v1967_v42, %v1848_v35  ;;  %v1548_v48 = vadd.f32 %v1986_v44, %v1507_v41  ;;  %v1989_v49 = vadd.f32 %v1988_v47, %v1987_v45 }
 0x180   : > { %v1551_v50 = vadd.f32 %v1989_v49, %v1510_v46 }
 0x198   : > { %v2006_v51 = vpop.f32.mrb[4].mxu0 }
 0x199   : > { %v2007_v52 = vpop.f32.mrb[5].mxu0 }
 0x19a   : > { %v2008_v53 = vadd.f32 %v2007_v52, %v2006_v51  ;;  %v2009_v54 = vpop.f32.mrb[6].mxu0  ;;  %v2028_v55 = vpop.f32.mrb[4].mxu1 }
 0x19b   : > { %v2010_v56 = vpop.f32.mrb[7].mxu0  ;;  %v2029_v59 = vpop.f32.mrb[5].mxu1 }
 0x19c   : > { %v1589_v57 = vadd.f32 %v2008_v53, %v1548_v48  ;;  %v2011_v58 = vadd.f32 %v2010_v56, %v2009_v54  ;;  %v2030_v60 = vadd.f32 %v2029_v59, %v2028_v55  ;;  %v2031_v61 = vpop.f32.mrb[6].mxu1 }
 0x19d   : > { %v2032_v63 = vpop.f32.mrb[7].mxu1 }
 0x19e   : > { %v1592_v62 = vadd.f32 %v2011_v58, %v1551_v50  ;;  %v2033_v0 = vadd.f32 %v2032_v63, %v2031_v61  ;;  %v1630_v1 = vadd.f32 %v2030_v60, %v1589_v57 }
 0x1a0   : > { %v1633_v2 = vadd.f32 %v2033_v0, %v1592_v62 }
 0x1b8   : > { %v1670_v3 = vpop.f32.mrb[8].mxu0 }
 0x1b9   : > { %v1671_v4 = vadd.f32 %v1670_v3, %v1630_v1  ;;  %v2061_v5 = vpop.f32.mrb[9].mxu0 }
 0x1ba   : > { %v1673_v6 = vpop.f32.mrb[10].mxu0 }
 0x1bb   : > { %v1679_v7 = vmul.f32 0.2, %v1671_v4  ;;  %v1674_v8 = vadd.f32 %v1673_v6, %v1633_v2  ;;  %v2062_v9 = vpop.f32.mrb[11].mxu0  ;;  %vm1677_vm1 = vcmp.ge.f32.partialorder %v1671_v4, 0.0 }
 0x1bc   : > { %1699 = sbr.rel (!%p2386_p9) target bundleno = 459 (0x1cb), region = 77 }
 0x1bd   : > { %vm1678_vm2 = vcmp.ge.f32.partialorder %v1674_v8, 0.0  ;;  %v1680_v10 = vmul.f32 0.2, %v1674_v8  ;;  %v1681_v11 = vsel %vm1677_vm1, %v1671_v4, %v1679_v7 }
 0x1bf   : > { %v1682_v12 = vsel %vm1678_vm2, %v1674_v8, %v1680_v10 }
 0x1c0   : > { %v1944_v13 = vpack.c.bf16 %v1682_v12, %v1681_v11 }
 0x1c2   : > { %1945 = vst [vmem:[%s820_s21] sm:$0xff] %v1944_v13  }
 0x1c9   : > { %v1720_v14 = vld [vmem:[%s820_s21] sm:$0xf]  ;;  %v1722_v15 = vld [vmem:[%s820_s21 + $0x4] sm:$0xf] }
 0x1ca   : > { %1721 = vst [vmem:[%s1704_s28] sm:$0xf] %v1720_v14  ;;  %1723 = vst [vmem:[%s1704_s28 + $0x8] sm:$0xf] %v1722_v15 }
 0x1cb PF: > { %s13_s20 = sadd.s32 1, %s2295_s20   ;;  %s2828_s12 = smov %s2267_s13 }
 0x1cc   : > { %p10_p2 = scmp.ge.s32.totalorder %s13_s20, 6   ;;  %s2829_s13 = smov %s2391_s4 }
 0x1cd   : > { %s2830_s14 = smov %s2275_s15  ;;  %s2831_s15 = smov %s2380_s27 }
 0x1ce   : > { %s2832_s16 = smov %s2287_s18  ;;  %s2833_s17 = smov %s2291_s19 }
 0x1cf   : > { %s2834_s18 = smov %s2837_s22  ;;  %s2835_s19 = smov %s2841_s23 }
 0x1d0   :  { %12 = sbr.rel (!%p10_p2) target bundleno = 5 (0x5), region = 155 }

</bundles_post_ra>
